<compile_context>
chip_gen: v7x
topology: tpu7x:2x2x1
jax: 0.10.0
libtpu: 0.0.40
codegen_flags: <defaults>
</compile_context>

<pallas_src>
import functools

import jax
import jax.numpy as jnp
from jax import lax
from jax.experimental import pallas as pl
from jax.experimental.pallas import tpu as pltpu


def _round_up(x, m):
    return ((x + m - 1) // m) * m


def _default_vmem_limit():
    # Leave headroom: v7x has only 64 MiB VMEM per TensorCore; v5e/v6e 128 MiB.
    try:
        cap = pltpu.get_tpu_info().vmem_capacity_bytes
        return int(min(cap * 3 // 4, 100 * 1024 * 1024))
    except Exception:
        return 48 * 1024 * 1024


def _decoder_block_kernel(emb_ref, ctx_ref, h0_ref, c0_ref,
                          wih0_ref, b0_ref, whh0_ref,
                          w1s_ref, b1_ref,
                          win_ref, bin_ref, wout_ref, bout_ref,
                          out_ref, attn_ref, hT_ref, cT_ref,
                          h_st, c_st, xw0_st, h1_st,
                          *, hidden_size, time_block, seq_len, ctx_len,
                          needs_time_mask, needs_ctx_mask, approx_recip):
    """One grid step = `time_block` decoder steps for one batch block."""
    H = hidden_size
    TB = time_block
    Bb = emb_ref.shape[0]
    E = emb_ref.shape[2]
    ti = pl.program_id(1)
    t_base = ti * TB

    # Load this batch block's initial recurrent state at its first time block.
    @pl.when(ti == 0)
    def _():
        h_st[...] = h0_ref[...]
        c_st[...] = c0_ref[...]

    # ---- Recurrence-free layer-0 input projection for the whole block:
    # a single (Bb*TB, E) @ (E, 4H) MXU call with b0 folded in, staged in VMEM.
    emb_flat = emb_ref[...].reshape(Bb * TB, E)
    xw0 = jnp.dot(emb_flat, wih0_ref[...],
                  preferred_element_type=jnp.float32) + b0_ref[...]
    xw0_st[...] = xw0.reshape(Bb, TB, 4 * H)

    # Hoist loop-invariant weight / bias loads (JAX does not CSE broadcasts).
    whh0 = whh0_ref[...]
    w1s = w1s_ref[...]
    b1 = b1_ref[...]
    mx_dt = whh0.dtype

    def lstm_tail(gates, c_prev):
        # Gate columns were permuted to [i, f, o, g] in the wrapper, so one
        # sigmoid covers a contiguous 3H lane span and one tanh covers g.
        sig = jax.nn.sigmoid(gates[:, :3 * H])
        i_g = sig[:, 0:H]
        f_g = sig[:, H:2 * H]
        o_g = sig[:, 2 * H:3 * H]
        g_g = jnp.tanh(gates[:, 3 * H:])
        c_new = f_g * c_prev + i_g * g_g
        h_new = o_g * jnp.tanh(c_new)
        return h_new, c_new

    # ---- Serial recurrence: only 2 MXU pushes + gate nonlinearities per step
    # remain on the h->h chain; attention runs batched after the loop.
    for s in range(TB):
        def _step(s=s):
            # layer 0 (input projection already staged)
            h_p = h_st[0]
            c_p = c_st[0]
            gates0 = xw0_st[:, s, :] + jnp.dot(
                h_p.astype(mx_dt), whh0, preferred_element_type=jnp.float32)
            h0n, c0n = lstm_tail(gates0, c_p)
            h_st[0] = h0n
            c_st[0] = c0n
            # layer 1: fused [x, h_prev] @ [W_ih1; W_hh1]  (one MXU push)
            h_p = h_st[1]
            c_p = c_st[1]
            xcat = jnp.concatenate([h0n, h_p], axis=-1).astype(mx_dt)
            gates1 = jnp.dot(xcat, w1s, preferred_element_type=jnp.float32) + b1
            h1n, c1n = lstm_tail(gates1, c_p)
            h_st[1] = h1n
            c_st[1] = c1n
            h1_st[:, s, :] = h1n

        if needs_time_mask:
            # Skip padded-tail steps entirely; h/c stay untouched, and the
            # (garbage) attention rows produced for them are sliced off.
            pl.when(t_base + s < seq_len)(_step)
        else:
            _step()

    # ---- Batched attention for the whole block (off the serial chain).
    cdt = win_ref.dtype
    h1 = h1_st[...]                                   # (Bb, TB, H) f32
    h1_flat = h1.reshape(Bb * TB, H)
    gamma = jnp.dot(h1_flat.astype(cdt), win_ref[...],
                    preferred_element_type=jnp.float32) + bin_ref[...]
    gamma = gamma.reshape(Bb, TB, H)

    ctx = ctx_ref[...]                                # (Bb, S_pad, H)
    scores = jnp.einsum('bth,bsh->bts', gamma.astype(ctx.dtype), ctx,
                        preferred_element_type=jnp.float32)
    if needs_ctx_mask:
        smask = lax.broadcasted_iota(jnp.int32, scores.shape, 2) < ctx_len
        scores = jnp.where(smask, scores, -1e30)
    scores = scores - jnp.max(scores, axis=-1, keepdims=True)
    e = jnp.exp(scores)
    inv_den = pl.reciprocal(jnp.sum(e, axis=-1, keepdims=True),
                            approx=approx_recip)
    wts = e * inv_den                                 # (Bb, TB, S_pad) f32
    c_t = jnp.einsum('bts,bsh->bth', wts.astype(ctx.dtype), ctx,
                     preferred_element_type=jnp.float32)

    # linear_out(concat([c_t, h1])) as one fused matmul (columns padded to Hp).
    cat = jnp.concatenate([c_t.reshape(Bb * TB, H), h1_flat], axis=-1)
    out = jnp.tanh(jnp.dot(cat.astype(cdt), wout_ref[...],
                           preferred_element_type=jnp.float32) + bout_ref[...])
    out_ref[...] = out.reshape(Bb, TB, -1).astype(out_ref.dtype)
    attn_ref[...] = wts.astype(attn_ref.dtype)

    @pl.when(ti == pl.num_programs(1) - 1)
    def _():
        hT_ref[...] = h_st[...]
        cT_ref[...] = c_st[...]


def rnn_decoder_forward(inputs, init_state, contexts, params, *,
                        time_block=8, matmul_dtype=jnp.float32):
    """inputs: int32 [T, B]; init_state: (h0, c0) each [L, B, H];
    contexts: [B, S, H]. Returns (outputs [T,B,H], (hT, cT), embs [T,B,E],
    attns [T,B,S])."""
    h0, c0 = init_state
    T, B = inputs.shape
    L, _, H = h0.shape
    S = contexts.shape[1]
    E = params['emb'].shape[1]
    assert L == 2, "kernel is specialized for num_layers=2"

    # Embedding lookup (gather glue stays in plain JAX).
    embs = jnp.take(params['emb'], inputs, axis=0)               # (T, B, E) f32

    TB = max(1, min(time_block, T))        # larger (16-32) pays off on v6e/v7x
    n_tb = -(-T // TB)
    T_pad = n_tb * TB

    # Split the batch across grid blocks (feeds v7x's 2nd TensorCore) only if
    # each block keeps >= 8 sublane rows; otherwise keep one big block.
    if B % 2 == 0 and B // 2 >= 8:
        Bb = B // 2
    else:
        Bb = B
    n_bb = B // Bb

    # Batch-major, time-padded embedding slab -> blocks are (Bb, TB, E) with a
    # second-to-last dim of TB >= 8 (sublane-dense).
    embs_bm = jnp.transpose(embs, (1, 0, 2))
    if T_pad != T:
        embs_bm = jnp.pad(embs_bm, ((0, 0), (0, T_pad - T), (0, 0)))
    embs_bm = embs_bm.astype(matmul_dtype)

    # Lane-dense attention output: pad S up to a multiple of 128 (masked in
    # kernel, sliced off in the wrapper).
    S_pad = _round_up(S, 128)
    ctx_in = contexts
    if S_pad != S:
        ctx_in = jnp.pad(ctx_in, ((0, 0), (0, S_pad - S), (0, 0)))
    ctx_in = ctx_in.astype(matmul_dtype)

    # Lane-dense decoder output: pad linear_out columns up to a multiple of 128.
    Hp = _round_up(H, 128)

    def reorder_gates(w):     # PyTorch [i|f|g|o] -> kernel [i|f|o|g]
        i, f, g, o = jnp.split(w, 4, axis=-1)
        return jnp.concatenate([i, f, o, g], axis=-1)

    wih0 = reorder_gates(params['wih0']).astype(matmul_dtype)
    whh0 = reorder_gates(params['whh0']).astype(matmul_dtype)
    b0 = reorder_gates(params['b0'])                           # stays f32
    w1s = reorder_gates(jnp.concatenate([params['wih1'], params['whh1']],
                                        axis=0)).astype(matmul_dtype)
    b1 = reorder_gates(params['b1'])
    w_in = params['w_in'].astype(matmul_dtype)
    b_in = params['b_in']
    wout = jnp.concatenate([params['w_out_c'], params['w_out_h']], axis=0)
    b_out = params['b_out']
    if Hp != H:
        wout = jnp.pad(wout, ((0, 0), (0, Hp - H)))
        b_out = jnp.pad(b_out, ((0, 0), (0, Hp - H)))
    wout = wout.astype(matmul_dtype)

    weight_args = (wih0, b0, whh0, w1s, b1, w_in, b_in, wout, b_out)

    def full_spec(a):
        nd = a.ndim
        # Grid-invariant block index -> Pallas keeps it resident (no re-copy).
        return pl.BlockSpec(a.shape, lambda bi, ti, _nd=nd: (0,) * _nd)

    kernel = functools.partial(
        _decoder_block_kernel, hidden_size=H, time_block=TB, seq_len=T,
        ctx_len=S, needs_time_mask=(T_pad != T), needs_ctx_mask=(S_pad != S),
        approx_recip=(matmul_dtype != jnp.float32))

    outputs_bm, attns_bm, hT, cT = pl.pallas_call(
        kernel,
        out_shape=(
            jax.ShapeDtypeStruct((B, T_pad, Hp), jnp.float32),
            jax.ShapeDtypeStruct((B, T_pad, S_pad), jnp.float32),
            jax.ShapeDtypeStruct((L, B, H), jnp.float32),
            jax.ShapeDtypeStruct((L, B, H), jnp.float32),
        ),
        grid_spec=pltpu.PrefetchScalarGridSpec(
            num_scalar_prefetch=0,
            grid=(n_bb, n_tb),
            in_specs=[
                pl.BlockSpec((Bb, TB, E), lambda bi, ti: (bi, ti, 0)),     # embs
                pl.BlockSpec((Bb, S_pad, H), lambda bi, ti: (bi, 0, 0)),   # ctx
                pl.BlockSpec((L, Bb, H), lambda bi, ti: (0, bi, 0)),       # h0
                pl.BlockSpec((L, Bb, H), lambda bi, ti: (0, bi, 0)),       # c0
            ] + [full_spec(w) for w in weight_args],
            out_specs=[
                pl.BlockSpec((Bb, TB, Hp), lambda bi, ti: (bi, ti, 0)),    # out
                pl.BlockSpec((Bb, TB, S_pad), lambda bi, ti: (bi, ti, 0)), # attn
                pl.BlockSpec((L, Bb, H), lambda bi, ti: (0, bi, 0)),       # hT
                pl.BlockSpec((L, Bb, H), lambda bi, ti: (0, bi, 0)),       # cT
            ],
            scratch_shapes=[
                pltpu.VMEM((L, Bb, H), jnp.float32),        # h state carry
                pltpu.VMEM((L, Bb, H), jnp.float32),        # c state carry
                pltpu.VMEM((Bb, TB, 4 * H), jnp.float32),   # staged emb@Wih0+b0
                pltpu.VMEM((Bb, TB, H), jnp.float32),       # layer-1 h slab
            ],
        ),
        compiler_params=pltpu.CompilerParams(
            dimension_semantics=("parallel", "arbitrary"),
            vmem_limit_bytes=_default_vmem_limit()),
    )(embs_bm, ctx_in, h0, c0, *weight_args)

    outputs = jnp.transpose(outputs_bm[:, :T, :H], (1, 0, 2))
    attns = jnp.transpose(attns_bm[:, :T, :S], (1, 0, 2))
    return outputs, (hT, cT), embs, attns


# ----------------------------- pure-JAX reference -----------------------------
def _reference_forward(inputs, init_state, contexts, params):
    h0, c0 = init_state
    T, B = inputs.shape
    H = h0.shape[-1]
    embs = jnp.take(params['emb'], inputs, axis=0)
    h = [h0[0], h0[1]]
    c = [c0[0], c0[1]]
    outs, attns = [], []
    layer_params = ((params['wih0'], params['whh0'], params['b0']),
                    (params['wih1'], params['whh1'], params['b1']))
    for t in range(T):
        x = embs[t]
        for li, (wih, whh, b) in enumerate(layer_params):
            gates = x @ wih + h[li] @ whh + b
            i_g = jax.nn.sigmoid(gates[:, :H])
            f_g = jax.nn.sigmoid(gates[:, H:2 * H])
            g_g = jnp.tanh(gates[:, 2 * H:3 * H])
            o_g = jax.nn.sigmoid(gates[:, 3 * H:])
            c[li] = f_g * c[li] + i_g * g_g
            h[li] = o_g * jnp.tanh(c[li])
            x = h[li]
        gamma = x @ params['w_in'] + params['b_in']
        w = jax.nn.softmax(jnp.einsum('bsh,bh->bs', contexts, gamma), axis=-1)
        c_t = jnp.einsum('bs,bsh->bh', w, contexts)
        out = jnp.tanh(c_t @ params['w_out_c'] + x @ params['w_out_h']
                       + params['b_out'])
        outs.append(out)
        attns.append(w)
    return (jnp.stack(outs), (jnp.stack(h), jnp.stack(c)), embs, jnp.stack(attns))


if __name__ == "__main__":
    # Small shapes consistent with the module. T=12 with time_block=8 also
    # exercises the padded-tail pl.when masking path and multi-block state carry.
    T, B = 12, 4         # decoder time steps, batch
    S = 8                # encoder context length
    E = 16               # emb_size
    H = 32               # decoder_hidden_size
    L = 2                # num_layers
    V = 20               # vocab_size

    key = jax.random.PRNGKey(0)
    ks = jax.random.split(key, 16)
    scale = 0.1
    params = {
        'emb':     scale * jax.random.normal(ks[0], (V, E), jnp.float32),
        'wih0':    scale * jax.random.normal(ks[1], (E, 4 * H), jnp.float32),
        'whh0':    scale * jax.random.normal(ks[2], (H, 4 * H), jnp.float32),
        'b0':      scale * jax.random.normal(ks[3], (1, 4 * H), jnp.float32),
        'wih1':    scale * jax.random.normal(ks[4], (H, 4 * H), jnp.float32),
        'whh1':    scale * jax.random.normal(ks[5], (H, 4 * H), jnp.float32),
        'b1':      scale * jax.random.normal(ks[6], (1, 4 * H), jnp.float32),
        'w_in':    scale * jax.random.normal(ks[7], (H, H), jnp.float32),
        'b_in':    scale * jax.random.normal(ks[8], (1, H), jnp.float32),
        'w_out_c': scale * jax.random.normal(ks[9], (H, H), jnp.float32),
        'w_out_h': scale * jax.random.normal(ks[10], (H, H), jnp.float32),
        'b_out':   scale * jax.random.normal(ks[11], (1, H), jnp.float32),
    }

    inputs = jax.random.randint(ks[12], (T, B), 0, V, jnp.int32)
    contexts = scale * jax.random.normal(ks[13], (B, S, H), jnp.float32)
    h0 = scale * jax.random.normal(ks[14], (L, B, H), jnp.float32)
    c0 = scale * jax.random.normal(ks[15], (L, B, H), jnp.float32)

    # --- f32 MXU path (tight check) ---
    outputs, (hT, cT), embs, attns = rnn_decoder_forward(
        inputs, (h0, c0), contexts, params, time_block=8,
        matmul_dtype=jnp.float32)
    jax.block_until_ready((outputs, hT, cT, embs, attns))

    r_out, (r_h, r_c), r_embs, r_attn = _reference_forward(
        inputs, (h0, c0), contexts, params)
    assert jnp.allclose(outputs, r_out, atol=1e-4), "outputs mismatch (f32)"
    assert jnp.allclose(attns, r_attn, atol=1e-4), "attn mismatch (f32)"
    assert jnp.allclose(hT, r_h, atol=1e-4), "h state mismatch (f32)"
    assert jnp.allclose(cT, r_c, atol=1e-4), "c state mismatch (f32)"
    assert jnp.allclose(embs, r_embs), "embs mismatch"

    # --- bf16 MXU-operand path (f32 accumulate / f32 state; loose check) ---
    outputs_b, (hT_b, cT_b), _, attns_b = rnn_decoder_forward(
        inputs, (h0, c0), contexts, params, time_block=8,
        matmul_dtype=jnp.bfloat16)
    jax.block_until_ready((outputs_b, hT_b, cT_b, attns_b))
    assert jnp.allclose(outputs_b, r_out, atol=5e-2), "outputs mismatch (bf16)"
    assert jnp.allclose(attns_b, r_attn, atol=5e-2), "attn mismatch (bf16)"
    assert jnp.allclose(hT_b, r_h, atol=5e-2), "h state mismatch (bf16)"
    assert jnp.allclose(cT_b, r_c, atol=5e-2), "c state mismatch (bf16)"

    print("KERNEL_OK")
</pallas_src>

<mosaic_0001>
module attributes {stable_mosaic.version = 11 : i64} {
  func.func @_decoder_block_kernel(%arg0: i32, %arg1: i32, %arg2: memref<4x8x16xf32, #tpu.memory_space<vmem>>, %arg3: memref<4x128x32xf32, #tpu.memory_space<vmem>>, %arg4: memref<2x4x32xf32, #tpu.memory_space<vmem>>, %arg5: memref<2x4x32xf32, #tpu.memory_space<vmem>>, %arg6: memref<16x128xf32, #tpu.memory_space<vmem>>, %arg7: memref<1x128xf32, #tpu.memory_space<vmem>>, %arg8: memref<32x128xf32, #tpu.memory_space<vmem>>, %arg9: memref<64x128xf32, #tpu.memory_space<vmem>>, %arg10: memref<1x128xf32, #tpu.memory_space<vmem>>, %arg11: memref<32x32xf32, #tpu.memory_space<vmem>>, %arg12: memref<1x32xf32, #tpu.memory_space<vmem>>, %arg13: memref<64x128xf32, #tpu.memory_space<vmem>>, %arg14: memref<1x128xf32, #tpu.memory_space<vmem>>, %arg15: memref<4x8x128xf32, #tpu.memory_space<vmem>>, %arg16: memref<4x8x128xf32, #tpu.memory_space<vmem>>, %arg17: memref<2x4x32xf32, #tpu.memory_space<vmem>>, %arg18: memref<2x4x32xf32, #tpu.memory_space<vmem>>, %arg19: memref<2x4x32xf32, #tpu.memory_space<vmem>>, %arg20: memref<2x4x32xf32, #tpu.memory_space<vmem>>, %arg21: memref<4x8x128xf32, #tpu.memory_space<vmem>>, %arg22: memref<4x8x32xf32, #tpu.memory_space<vmem>>) attributes {dimension_semantics = [#tpu.dimension_semantics<parallel>, #tpu.dimension_semantics<arbitrary>], iteration_bounds = array<i64: 1, 2>, scalar_prefetch = 0 : i64, scratch_operands = 4 : i64, tpu.core_type = #tpu.core_type<tc>, window_params = [{transform_indices = @transform_0, window_bounds = array<i64: 4, 8, 16>}, {transform_indices = @transform_1, window_bounds = array<i64: 4, 128, 32>}, {transform_indices = @transform_2, window_bounds = array<i64: 2, 4, 32>}, {transform_indices = @transform_3, window_bounds = array<i64: 2, 4, 32>}, {pipeline_mode = #tpu.pipeline_mode<synchronous>, transform_indices = @transform_4, window_bounds = array<i64: 16, 128>}, {pipeline_mode = #tpu.pipeline_mode<synchronous>, transform_indices = @transform_5, window_bounds = array<i64: 1, 128>}, {pipeline_mode = #tpu.pipeline_mode<synchronous>, transform_indices = @transform_6, window_bounds = array<i64: 32, 128>}, {pipeline_mode = #tpu.pipeline_mode<synchronous>, transform_indices = @transform_7, window_bounds = array<i64: 64, 128>}, {pipeline_mode = #tpu.pipeline_mode<synchronous>, transform_indices = @transform_8, window_bounds = array<i64: 1, 128>}, {pipeline_mode = #tpu.pipeline_mode<synchronous>, transform_indices = @transform_9, window_bounds = array<i64: 32, 32>}, {pipeline_mode = #tpu.pipeline_mode<synchronous>, transform_indices = @transform_10, window_bounds = array<i64: 1, 32>}, {pipeline_mode = #tpu.pipeline_mode<synchronous>, transform_indices = @transform_11, window_bounds = array<i64: 64, 128>}, {pipeline_mode = #tpu.pipeline_mode<synchronous>, transform_indices = @transform_12, window_bounds = array<i64: 1, 128>}, {transform_indices = @transform_13, window_bounds = array<i64: 4, 8, 128>}, {transform_indices = @transform_14, window_bounds = array<i64: 4, 8, 128>}, {transform_indices = @transform_15, window_bounds = array<i64: 2, 4, 32>}, {transform_indices = @transform_16, window_bounds = array<i64: 2, 4, 32>}]} {
    %c8_i32 = arith.constant 8 : i32
    %0 = arith.muli %arg1, %c8_i32 : i32
    %c0_i32 = arith.constant 0 : i32
    %1 = arith.cmpi eq, %arg1, %c0_i32 : i32
    %2 = arith.extui %1 : i1 to i32
    %c0_i32_0 = arith.constant 0 : i32
    %3 = arith.cmpi ne, %2, %c0_i32_0 : i32
    scf.if %3 {
      %c0_62 = arith.constant 0 : index
      %c0_63 = arith.constant 0 : index
      %c0_64 = arith.constant 0 : index
      %88 = vector.load %arg4[%c0_62, %c0_63, %c0_64] : memref<2x4x32xf32, #tpu.memory_space<vmem>>, vector<2x4x32xf32>
      %c0_65 = arith.constant 0 : index
      %c0_66 = arith.constant 0 : index
      %c0_67 = arith.constant 0 : index
      %89 = vector.load %arg19[%c0_65, %c0_66, %c0_67] : memref<2x4x32xf32, #tpu.memory_space<vmem>>, vector<2x4x32xf32>
      tpu.vector_store %arg19[%c0_65, %c0_66, %c0_67], %88 {strides = array<i32>} : memref<2x4x32xf32, #tpu.memory_space<vmem>>, vector<2x4x32xf32>,
      %c0_68 = arith.constant 0 : index
      %c0_69 = arith.constant 0 : index
      %c0_70 = arith.constant 0 : index
      %90 = vector.load %arg5[%c0_68, %c0_69, %c0_70] : memref<2x4x32xf32, #tpu.memory_space<vmem>>, vector<2x4x32xf32>
      %c0_71 = arith.constant 0 : index
      %c0_72 = arith.constant 0 : index
      %c0_73 = arith.constant 0 : index
      %91 = vector.load %arg20[%c0_71, %c0_72, %c0_73] : memref<2x4x32xf32, #tpu.memory_space<vmem>>, vector<2x4x32xf32>
      tpu.vector_store %arg20[%c0_71, %c0_72, %c0_73], %90 {strides = array<i32>} : memref<2x4x32xf32, #tpu.memory_space<vmem>>, vector<2x4x32xf32>,
    } else {
    }
    %c0 = arith.constant 0 : index
    %c0_1 = arith.constant 0 : index
    %c0_2 = arith.constant 0 : index
    %4 = vector.load %arg2[%c0, %c0_1, %c0_2] : memref<4x8x16xf32, #tpu.memory_space<vmem>>, vector<4x8x16xf32>
    %5 = vector.shape_cast %4 : vector<4x8x16xf32> to vector<32x16xf32>
    %c0_3 = arith.constant 0 : index
    %c0_4 = arith.constant 0 : index
    %6 = vector.load %arg6[%c0_3, %c0_4] : memref<16x128xf32, #tpu.memory_space<vmem>>, vector<16x128xf32>
    %cst = arith.constant dense<0.000000e+00> : vector<32x128xf32>
    %7 = tpu.matmul %5, %6, %cst {dimension_numbers = #tpu.dot_dimension_numbers<[1], [0], [0], [1], [0, 0, 1, 1], [], []>} : vector<32x16xf32>, vector<16x128xf32>, vector<32x128xf32> -> vector<32x128xf32>
    %c0_5 = arith.constant 0 : index
    %c0_6 = arith.constant 0 : index
    %8 = vector.load %arg7[%c0_5, %c0_6] : memref<1x128xf32, #tpu.memory_space<vmem>>, vector<1x128xf32>
    %9 = vector.broadcast %8 : vector<1x128xf32> to vector<32x128xf32>
    %10 = arith.addf %7, %9 : vector<32x128xf32>
    %11 = vector.shape_cast %10 : vector<32x128xf32> to vector<4x8x128xf32>
    %c0_7 = arith.constant 0 : index
    %c0_8 = arith.constant 0 : index
    %c0_9 = arith.constant 0 : index
    %12 = vector.load %arg21[%c0_7, %c0_8, %c0_9] : memref<4x8x128xf32, #tpu.memory_space<vmem>>, vector<4x8x128xf32>
    tpu.vector_store %arg21[%c0_7, %c0_8, %c0_9], %11 {strides = array<i32>} : memref<4x8x128xf32, #tpu.memory_space<vmem>>, vector<4x8x128xf32>,
    %c0_10 = arith.constant 0 : index
    %c0_11 = arith.constant 0 : index
    %13 = vector.load %arg8[%c0_10, %c0_11] : memref<32x128xf32, #tpu.memory_space<vmem>>, vector<32x128xf32>
    %c0_12 = arith.constant 0 : index
    %c0_13 = arith.constant 0 : index
    %14 = vector.load %arg9[%c0_12, %c0_13] : memref<64x128xf32, #tpu.memory_space<vmem>>, vector<64x128xf32>
    %c0_14 = arith.constant 0 : index
    %c0_15 = arith.constant 0 : index
    %15 = vector.load %arg10[%c0_14, %c0_15] : memref<1x128xf32, #tpu.memory_space<vmem>>, vector<1x128xf32>
    %c0_i32_16 = arith.constant 0 : i32
    %16 = arith.addi %0, %c0_i32_16 : i32
    %c12_i32 = arith.constant 12 : i32
    %17 = arith.cmpi slt, %16, %c12_i32 : i32
    %18 = arith.extui %17 : i1 to i32
    %c0_i32_17 = arith.constant 0 : i32
    %19 = arith.cmpi ne, %18, %c0_i32_17 : i32
    scf.if %19 {
      %c0_62 = arith.constant 0 : index
      %c0_63 = arith.constant 0 : index
      %c0_64 = arith.constant 0 : index
      %88 = vector.load %arg19[%c0_62, %c0_63, %c0_64] : memref<2x4x32xf32, #tpu.memory_space<vmem>>, vector<1x4x32xf32>
      %89 = vector.shape_cast %88 : vector<1x4x32xf32> to vector<4x32xf32>
      %c0_65 = arith.constant 0 : index
      %c0_66 = arith.constant 0 : index
      %c0_67 = arith.constant 0 : index
      %90 = vector.load %arg20[%c0_65, %c0_66, %c0_67] : memref<2x4x32xf32, #tpu.memory_space<vmem>>, vector<1x4x32xf32>
      %91 = vector.shape_cast %90 : vector<1x4x32xf32> to vector<4x32xf32>
      %c0_68 = arith.constant 0 : index
      %c0_69 = arith.constant 0 : index
      %c0_70 = arith.constant 0 : index
      %92 = vector.load %arg21[%c0_68, %c0_69, %c0_70] : memref<4x8x128xf32, #tpu.memory_space<vmem>>, vector<4x1x128xf32>
      %93 = vector.shape_cast %92 : vector<4x1x128xf32> to vector<4x128xf32>
      %cst_71 = arith.constant dense<0.000000e+00> : vector<4x128xf32>
      %94 = tpu.matmul %89, %13, %cst_71 {dimension_numbers = #tpu.dot_dimension_numbers<[1], [0], [0], [1], [0, 0, 1, 1], [], []>} : vector<4x32xf32>, vector<32x128xf32>, vector<4x128xf32> -> vector<4x128xf32>
      %95 = arith.addf %93, %94 : vector<4x128xf32>
      %96 = vector.extract_strided_slice %95 {offsets = [0, 0], sizes = [4, 96], strides = [1, 1]} : vector<4x128xf32> to vector<4x96xf32>
      %97 = arith.negf %96 : vector<4x96xf32>
      %98 = math.exp %97 : vector<4x96xf32>
      %cst_72 = arith.constant 1.000000e+00 : f32
      %99 = vector.broadcast %cst_72 : f32 to vector<4x96xf32>
      %100 = arith.addf %99, %98 : vector<4x96xf32>
      %101 = arith.divf %99, %100 : vector<4x96xf32>
      %102 = vector.extract_strided_slice %101 {offsets = [0, 0], sizes = [4, 32], strides = [1, 1]} : vector<4x96xf32> to vector<4x32xf32>
      %103 = vector.extract_strided_slice %101 {offsets = [0, 32], sizes = [4, 32], strides = [1, 1]} : vector<4x96xf32> to vector<4x32xf32>
      %104 = vector.extract_strided_slice %101 {offsets = [0, 64], sizes = [4, 32], strides = [1, 1]} : vector<4x96xf32> to vector<4x32xf32>
      %105 = vector.extract_strided_slice %95 {offsets = [0, 96], sizes = [4, 32], strides = [1, 1]} : vector<4x128xf32> to vector<4x32xf32>
      %106 = math.tanh %105 : vector<4x32xf32>
      %107 = arith.mulf %103, %91 : vector<4x32xf32>
      %108 = arith.mulf %102, %106 : vector<4x32xf32>
      %109 = arith.addf %107, %108 : vector<4x32xf32>
      %110 = math.tanh %109 : vector<4x32xf32>
      %111 = arith.mulf %104, %110 : vector<4x32xf32>
      %c0_73 = arith.constant 0 : index
      %c0_74 = arith.constant 0 : index
      %c0_75 = arith.constant 0 : index
      %112 = vector.load %arg19[%c0_73, %c0_74, %c0_75] : memref<2x4x32xf32, #tpu.memory_space<vmem>>, vector<1x4x32xf32>
      %113 = vector.shape_cast %112 : vector<1x4x32xf32> to vector<4x32xf32>
      %114 = vector.shape_cast %111 : vector<4x32xf32> to vector<1x4x32xf32>
      tpu.vector_store %arg19[%c0_73, %c0_74, %c0_75], %114 {strides = array<i32>} : memref<2x4x32xf32, #tpu.memory_space<vmem>>, vector<1x4x32xf32>,
      %c0_76 = arith.constant 0 : index
      %c0_77 = arith.constant 0 : index
      %c0_78 = arith.constant 0 : index
      %115 = vector.load %arg20[%c0_76, %c0_77, %c0_78] : memref<2x4x32xf32, #tpu.memory_space<vmem>>, vector<1x4x32xf32>
      %116 = vector.shape_cast %115 : vector<1x4x32xf32> to vector<4x32xf32>
      %117 = vector.shape_cast %109 : vector<4x32xf32> to vector<1x4x32xf32>
      tpu.vector_store %arg20[%c0_76, %c0_77, %c0_78], %117 {strides = array<i32>} : memref<2x4x32xf32, #tpu.memory_space<vmem>>, vector<1x4x32xf32>,
      %c1 = arith.constant 1 : index
      %c0_79 = arith.constant 0 : index
      %c0_80 = arith.constant 0 : index
      %118 = vector.load %arg19[%c1, %c0_79, %c0_80] : memref<2x4x32xf32, #tpu.memory_space<vmem>>, vector<1x4x32xf32>
      %119 = vector.shape_cast %118 : vector<1x4x32xf32> to vector<4x32xf32>
      %c1_81 = arith.constant 1 : index
      %c0_82 = arith.constant 0 : index
      %c0_83 = arith.constant 0 : index
      %120 = vector.load %arg20[%c1_81, %c0_82, %c0_83] : memref<2x4x32xf32, #tpu.memory_space<vmem>>, vector<1x4x32xf32>
      %121 = vector.shape_cast %120 : vector<1x4x32xf32> to vector<4x32xf32>
      %122 = tpu.concatenate %111, %119 in 1 : vector<4x32xf32>, vector<4x32xf32> -> vector<4x64xf32>
      %cst_84 = arith.constant dense<0.000000e+00> : vector<4x128xf32>
      %123 = tpu.matmul %122, %14, %cst_84 {dimension_numbers = #tpu.dot_dimension_numbers<[1], [0], [0], [1], [0, 0, 1, 1], [], []>} : vector<4x64xf32>, vector<64x128xf32>, vector<4x128xf32> -> vector<4x128xf32>
      %124 = vector.broadcast %15 : vector<1x128xf32> to vector<4x128xf32>
      %125 = arith.addf %123, %124 : vector<4x128xf32>
      %126 = vector.extract_strided_slice %125 {offsets = [0, 0], sizes = [4, 96], strides = [1, 1]} : vector<4x128xf32> to vector<4x96xf32>
      %127 = arith.negf %126 : vector<4x96xf32>
      %128 = math.exp %127 : vector<4x96xf32>
      %cst_85 = arith.constant 1.000000e+00 : f32
      %129 = vector.broadcast %cst_85 : f32 to vector<4x96xf32>
      %130 = arith.addf %129, %128 : vector<4x96xf32>
      %131 = arith.divf %129, %130 : vector<4x96xf32>
      %132 = vector.extract_strided_slice %131 {offsets = [0, 0], sizes = [4, 32], strides = [1, 1]} : vector<4x96xf32> to vector<4x32xf32>
      %133 = vector.extract_strided_slice %131 {offsets = [0, 32], sizes = [4, 32], strides = [1, 1]} : vector<4x96xf32> to vector<4x32xf32>
      %134 = vector.extract_strided_slice %131 {offsets = [0, 64], sizes = [4, 32], strides = [1, 1]} : vector<4x96xf32> to vector<4x32xf32>
      %135 = vector.extract_strided_slice %125 {offsets = [0, 96], sizes = [4, 32], strides = [1, 1]} : vector<4x128xf32> to vector<4x32xf32>
      %136 = math.tanh %135 : vector<4x32xf32>
      %137 = arith.mulf %133, %121 : vector<4x32xf32>
      %138 = arith.mulf %132, %136 : vector<4x32xf32>
      %139 = arith.addf %137, %138 : vector<4x32xf32>
      %140 = math.tanh %139 : vector<4x32xf32>
      %141 = arith.mulf %134, %140 : vector<4x32xf32>
      %c1_86 = arith.constant 1 : index
      %c0_87 = arith.constant 0 : index
      %c0_88 = arith.constant 0 : index
      %142 = vector.load %arg19[%c1_86, %c0_87, %c0_88] : memref<2x4x32xf32, #tpu.memory_space<vmem>>, vector<1x4x32xf32>
      %143 = vector.shape_cast %142 : vector<1x4x32xf32> to vector<4x32xf32>
      %144 = vector.shape_cast %141 : vector<4x32xf32> to vector<1x4x32xf32>
      tpu.vector_store %arg19[%c1_86, %c0_87, %c0_88], %144 {strides = array<i32>} : memref<2x4x32xf32, #tpu.memory_space<vmem>>, vector<1x4x32xf32>,
      %c1_89 = arith.constant 1 : index
      %c0_90 = arith.constant 0 : index
      %c0_91 = arith.constant 0 : index
      %145 = vector.load %arg20[%c1_89, %c0_90, %c0_91] : memref<2x4x32xf32, #tpu.memory_space<vmem>>, vector<1x4x32xf32>
      %146 = vector.shape_cast %145 : vector<1x4x32xf32> to vector<4x32xf32>
      %147 = vector.shape_cast %139 : vector<4x32xf32> to vector<1x4x32xf32>
      tpu.vector_store %arg20[%c1_89, %c0_90, %c0_91], %147 {strides = array<i32>} : memref<2x4x32xf32, #tpu.memory_space<vmem>>, vector<1x4x32xf32>,
      %c0_92 = arith.constant 0 : index
      %c0_93 = arith.constant 0 : index
      %c0_94 = arith.constant 0 : index
      %148 = vector.load %arg22[%c0_92, %c0_93, %c0_94] : memref<4x8x32xf32, #tpu.memory_space<vmem>>, vector<4x1x32xf32>
      %149 = vector.shape_cast %148 : vector<4x1x32xf32> to vector<4x32xf32>
      %150 = vector.shape_cast %141 : vector<4x32xf32> to vector<4x1x32xf32>
      tpu.vector_store %arg22[%c0_92, %c0_93, %c0_94], %150 {strides = array<i32>} : memref<4x8x32xf32, #tpu.memory_space<vmem>>, vector<4x1x32xf32>,
    } else {
    }
    %c1_i32 = arith.constant 1 : i32
    %20 = arith.addi %0, %c1_i32 : i32
    %c12_i32_18 = arith.constant 12 : i32
    %21 = arith.cmpi slt, %20, %c12_i32_18 : i32
    %22 = arith.extui %21 : i1 to i32
    %c0_i32_19 = arith.constant 0 : i32
    %23 = arith.cmpi ne, %22, %c0_i32_19 : i32
    scf.if %23 {
      %c0_62 = arith.constant 0 : index
      %c0_63 = arith.constant 0 : index
      %c0_64 = arith.constant 0 : index
      %88 = vector.load %arg19[%c0_62, %c0_63, %c0_64] : memref<2x4x32xf32, #tpu.memory_space<vmem>>, vector<1x4x32xf32>
      %89 = vector.shape_cast %88 : vector<1x4x32xf32> to vector<4x32xf32>
      %c0_65 = arith.constant 0 : index
      %c0_66 = arith.constant 0 : index
      %c0_67 = arith.constant 0 : index
      %90 = vector.load %arg20[%c0_65, %c0_66, %c0_67] : memref<2x4x32xf32, #tpu.memory_space<vmem>>, vector<1x4x32xf32>
      %91 = vector.shape_cast %90 : vector<1x4x32xf32> to vector<4x32xf32>
      %c0_68 = arith.constant 0 : index
      %c1 = arith.constant 1 : index
      %c0_69 = arith.constant 0 : index
      %92 = vector.load %arg21[%c0_68, %c1, %c0_69] : memref<4x8x128xf32, #tpu.memory_space<vmem>>, vector<4x1x128xf32>
      %93 = vector.shape_cast %92 : vector<4x1x128xf32> to vector<4x128xf32>
      %cst_70 = arith.constant dense<0.000000e+00> : vector<4x128xf32>
      %94 = tpu.matmul %89, %13, %cst_70 {dimension_numbers = #tpu.dot_dimension_numbers<[1], [0], [0], [1], [0, 0, 1, 1], [], []>} : vector<4x32xf32>, vector<32x128xf32>, vector<4x128xf32> -> vector<4x128xf32>
      %95 = arith.addf %93, %94 : vector<4x128xf32>
      %96 = vector.extract_strided_slice %95 {offsets = [0, 0], sizes = [4, 96], strides = [1, 1]} : vector<4x128xf32> to vector<4x96xf32>
      %97 = arith.negf %96 : vector<4x96xf32>
      %98 = math.exp %97 : vector<4x96xf32>
      %cst_71 = arith.constant 1.000000e+00 : f32
      %99 = vector.broadcast %cst_71 : f32 to vector<4x96xf32>
      %100 = arith.addf %99, %98 : vector<4x96xf32>
      %101 = arith.divf %99, %100 : vector<4x96xf32>
      %102 = vector.extract_strided_slice %101 {offsets = [0, 0], sizes = [4, 32], strides = [1, 1]} : vector<4x96xf32> to vector<4x32xf32>
      %103 = vector.extract_strided_slice %101 {offsets = [0, 32], sizes = [4, 32], strides = [1, 1]} : vector<4x96xf32> to vector<4x32xf32>
      %104 = vector.extract_strided_slice %101 {offsets = [0, 64], sizes = [4, 32], strides = [1, 1]} : vector<4x96xf32> to vector<4x32xf32>
      %105 = vector.extract_strided_slice %95 {offsets = [0, 96], sizes = [4, 32], strides = [1, 1]} : vector<4x128xf32> to vector<4x32xf32>
      %106 = math.tanh %105 : vector<4x32xf32>
      %107 = arith.mulf %103, %91 : vector<4x32xf32>
      %108 = arith.mulf %102, %106 : vector<4x32xf32>
      %109 = arith.addf %107, %108 : vector<4x32xf32>
      %110 = math.tanh %109 : vector<4x32xf32>
      %111 = arith.mulf %104, %110 : vector<4x32xf32>
      %c0_72 = arith.constant 0 : index
      %c0_73 = arith.constant 0 : index
      %c0_74 = arith.constant 0 : index
      %112 = vector.load %arg19[%c0_72, %c0_73, %c0_74] : memref<2x4x32xf32, #tpu.memory_space<vmem>>, vector<1x4x32xf32>
      %113 = vector.shape_cast %112 : vector<1x4x32xf32> to vector<4x32xf32>
      %114 = vector.shape_cast %111 : vector<4x32xf32> to vector<1x4x32xf32>
      tpu.vector_store %arg19[%c0_72, %c0_73, %c0_74], %114 {strides = array<i32>} : memref<2x4x32xf32, #tpu.memory_space<vmem>>, vector<1x4x32xf32>,
      %c0_75 = arith.constant 0 : index
      %c0_76 = arith.constant 0 : index
      %c0_77 = arith.constant 0 : index
      %115 = vector.load %arg20[%c0_75, %c0_76, %c0_77] : memref<2x4x32xf32, #tpu.memory_space<vmem>>, vector<1x4x32xf32>
      %116 = vector.shape_cast %115 : vector<1x4x32xf32> to vector<4x32xf32>
      %117 = vector.shape_cast %109 : vector<4x32xf32> to vector<1x4x32xf32>
      tpu.vector_store %arg20[%c0_75, %c0_76, %c0_77], %117 {strides = array<i32>} : memref<2x4x32xf32, #tpu.memory_space<vmem>>, vector<1x4x32xf32>,
      %c1_78 = arith.constant 1 : index
      %c0_79 = arith.constant 0 : index
      %c0_80 = arith.constant 0 : index
      %118 = vector.load %arg19[%c1_78, %c0_79, %c0_80] : memref<2x4x32xf32, #tpu.memory_space<vmem>>, vector<1x4x32xf32>
      %119 = vector.shape_cast %118 : vector<1x4x32xf32> to vector<4x32xf32>
      %c1_81 = arith.constant 1 : index
      %c0_82 = arith.constant 0 : index
      %c0_83 = arith.constant 0 : index
      %120 = vector.load %arg20[%c1_81, %c0_82, %c0_83] : memref<2x4x32xf32, #tpu.memory_space<vmem>>, vector<1x4x32xf32>
      %121 = vector.shape_cast %120 : vector<1x4x32xf32> to vector<4x32xf32>
      %122 = tpu.concatenate %111, %119 in 1 : vector<4x32xf32>, vector<4x32xf32> -> vector<4x64xf32>
      %cst_84 = arith.constant dense<0.000000e+00> : vector<4x128xf32>
      %123 = tpu.matmul %122, %14, %cst_84 {dimension_numbers = #tpu.dot_dimension_numbers<[1], [0], [0], [1], [0, 0, 1, 1], [], []>} : vector<4x64xf32>, vector<64x128xf32>, vector<4x128xf32> -> vector<4x128xf32>
      %124 = vector.broadcast %15 : vector<1x128xf32> to vector<4x128xf32>
      %125 = arith.addf %123, %124 : vector<4x128xf32>
      %126 = vector.extract_strided_slice %125 {offsets = [0, 0], sizes = [4, 96], strides = [1, 1]} : vector<4x128xf32> to vector<4x96xf32>
      %127 = arith.negf %126 : vector<4x96xf32>
      %128 = math.exp %127 : vector<4x96xf32>
      %cst_85 = arith.constant 1.000000e+00 : f32
      %129 = vector.broadcast %cst_85 : f32 to vector<4x96xf32>
      %130 = arith.addf %129, %128 : vector<4x96xf32>
      %131 = arith.divf %129, %130 : vector<4x96xf32>
      %132 = vector.extract_strided_slice %131 {offsets = [0, 0], sizes = [4, 32], strides = [1, 1]} : vector<4x96xf32> to vector<4x32xf32>
      %133 = vector.extract_strided_slice %131 {offsets = [0, 32], sizes = [4, 32], strides = [1, 1]} : vector<4x96xf32> to vector<4x32xf32>
      %134 = vector.extract_strided_slice %131 {offsets = [0, 64], sizes = [4, 32], strides = [1, 1]} : vector<4x96xf32> to vector<4x32xf32>
      %135 = vector.extract_strided_slice %125 {offsets = [0, 96], sizes = [4, 32], strides = [1, 1]} : vector<4x128xf32> to vector<4x32xf32>
      %136 = math.tanh %135 : vector<4x32xf32>
      %137 = arith.mulf %133, %121 : vector<4x32xf32>
      %138 = arith.mulf %132, %136 : vector<4x32xf32>
      %139 = arith.addf %137, %138 : vector<4x32xf32>
      %140 = math.tanh %139 : vector<4x32xf32>
      %141 = arith.mulf %134, %140 : vector<4x32xf32>
      %c1_86 = arith.constant 1 : index
      %c0_87 = arith.constant 0 : index
      %c0_88 = arith.constant 0 : index
      %142 = vector.load %arg19[%c1_86, %c0_87, %c0_88] : memref<2x4x32xf32, #tpu.memory_space<vmem>>, vector<1x4x32xf32>
      %143 = vector.shape_cast %142 : vector<1x4x32xf32> to vector<4x32xf32>
      %144 = vector.shape_cast %141 : vector<4x32xf32> to vector<1x4x32xf32>
      tpu.vector_store %arg19[%c1_86, %c0_87, %c0_88], %144 {strides = array<i32>} : memref<2x4x32xf32, #tpu.memory_space<vmem>>, vector<1x4x32xf32>,
      %c1_89 = arith.constant 1 : index
      %c0_90 = arith.constant 0 : index
      %c0_91 = arith.constant 0 : index
      %145 = vector.load %arg20[%c1_89, %c0_90, %c0_91] : memref<2x4x32xf32, #tpu.memory_space<vmem>>, vector<1x4x32xf32>
      %146 = vector.shape_cast %145 : vector<1x4x32xf32> to vector<4x32xf32>
      %147 = vector.shape_cast %139 : vector<4x32xf32> to vector<1x4x32xf32>
      tpu.vector_store %arg20[%c1_89, %c0_90, %c0_91], %147 {strides = array<i32>} : memref<2x4x32xf32, #tpu.memory_space<vmem>>, vector<1x4x32xf32>,
      %c0_92 = arith.constant 0 : index
      %c1_93 = arith.constant 1 : index
      %c0_94 = arith.constant 0 : index
      %148 = vector.load %arg22[%c0_92, %c1_93, %c0_94] : memref<4x8x32xf32, #tpu.memory_space<vmem>>, vector<4x1x32xf32>
      %149 = vector.shape_cast %148 : vector<4x1x32xf32> to vector<4x32xf32>
      %150 = vector.shape_cast %141 : vector<4x32xf32> to vector<4x1x32xf32>
      tpu.vector_store %arg22[%c0_92, %c1_93, %c0_94], %150 {strides = array<i32>} : memref<4x8x32xf32, #tpu.memory_space<vmem>>, vector<4x1x32xf32>,
    } else {
    }
    %c2_i32 = arith.constant 2 : i32
    %24 = arith.addi %0, %c2_i32 : i32
    %c12_i32_20 = arith.constant 12 : i32
    %25 = arith.cmpi slt, %24, %c12_i32_20 : i32
    %26 = arith.extui %25 : i1 to i32
    %c0_i32_21 = arith.constant 0 : i32
    %27 = arith.cmpi ne, %26, %c0_i32_21 : i32
    scf.if %27 {
      %c0_62 = arith.constant 0 : index
      %c0_63 = arith.constant 0 : index
      %c0_64 = arith.constant 0 : index
      %88 = vector.load %arg19[%c0_62, %c0_63, %c0_64] : memref<2x4x32xf32, #tpu.memory_space<vmem>>, vector<1x4x32xf32>
      %89 = vector.shape_cast %88 : vector<1x4x32xf32> to vector<4x32xf32>
      %c0_65 = arith.constant 0 : index
      %c0_66 = arith.constant 0 : index
      %c0_67 = arith.constant 0 : index
      %90 = vector.load %arg20[%c0_65, %c0_66, %c0_67] : memref<2x4x32xf32, #tpu.memory_space<vmem>>, vector<1x4x32xf32>
      %91 = vector.shape_cast %90 : vector<1x4x32xf32> to vector<4x32xf32>
      %c0_68 = arith.constant 0 : index
      %c2 = arith.constant 2 : index
      %c0_69 = arith.constant 0 : index
      %92 = vector.load %arg21[%c0_68, %c2, %c0_69] : memref<4x8x128xf32, #tpu.memory_space<vmem>>, vector<4x1x128xf32>
      %93 = vector.shape_cast %92 : vector<4x1x128xf32> to vector<4x128xf32>
      %cst_70 = arith.constant dense<0.000000e+00> : vector<4x128xf32>
      %94 = tpu.matmul %89, %13, %cst_70 {dimension_numbers = #tpu.dot_dimension_numbers<[1], [0], [0], [1], [0, 0, 1, 1], [], []>} : vector<4x32xf32>, vector<32x128xf32>, vector<4x128xf32> -> vector<4x128xf32>
      %95 = arith.addf %93, %94 : vector<4x128xf32>
      %96 = vector.extract_strided_slice %95 {offsets = [0, 0], sizes = [4, 96], strides = [1, 1]} : vector<4x128xf32> to vector<4x96xf32>
      %97 = arith.negf %96 : vector<4x96xf32>
      %98 = math.exp %97 : vector<4x96xf32>
      %cst_71 = arith.constant 1.000000e+00 : f32
      %99 = vector.broadcast %cst_71 : f32 to vector<4x96xf32>
      %100 = arith.addf %99, %98 : vector<4x96xf32>
      %101 = arith.divf %99, %100 : vector<4x96xf32>
      %102 = vector.extract_strided_slice %101 {offsets = [0, 0], sizes = [4, 32], strides = [1, 1]} : vector<4x96xf32> to vector<4x32xf32>
      %103 = vector.extract_strided_slice %101 {offsets = [0, 32], sizes = [4, 32], strides = [1, 1]} : vector<4x96xf32> to vector<4x32xf32>
      %104 = vector.extract_strided_slice %101 {offsets = [0, 64], sizes = [4, 32], strides = [1, 1]} : vector<4x96xf32> to vector<4x32xf32>
      %105 = vector.extract_strided_slice %95 {offsets = [0, 96], sizes = [4, 32], strides = [1, 1]} : vector<4x128xf32> to vector<4x32xf32>
      %106 = math.tanh %105 : vector<4x32xf32>
      %107 = arith.mulf %103, %91 : vector<4x32xf32>
      %108 = arith.mulf %102, %106 : vector<4x32xf32>
      %109 = arith.addf %107, %108 : vector<4x32xf32>
      %110 = math.tanh %109 : vector<4x32xf32>
      %111 = arith.mulf %104, %110 : vector<4x32xf32>
      %c0_72 = arith.constant 0 : index
      %c0_73 = arith.constant 0 : index
      %c0_74 = arith.constant 0 : index
      %112 = vector.load %arg19[%c0_72, %c0_73, %c0_74] : memref<2x4x32xf32, #tpu.memory_space<vmem>>, vector<1x4x32xf32>
      %113 = vector.shape_cast %112 : vector<1x4x32xf32> to vector<4x32xf32>
      %114 = vector.shape_cast %111 : vector<4x32xf32> to vector<1x4x32xf32>
      tpu.vector_store %arg19[%c0_72, %c0_73, %c0_74], %114 {strides = array<i32>} : memref<2x4x32xf32, #tpu.memory_space<vmem>>, vector<1x4x32xf32>,
      %c0_75 = arith.constant 0 : index
      %c0_76 = arith.constant 0 : index
      %c0_77 = arith.constant 0 : index
      %115 = vector.load %arg20[%c0_75, %c0_76, %c0_77] : memref<2x4x32xf32, #tpu.memory_space<vmem>>, vector<1x4x32xf32>
      %116 = vector.shape_cast %115 : vector<1x4x32xf32> to vector<4x32xf32>
      %117 = vector.shape_cast %109 : vector<4x32xf32> to vector<1x4x32xf32>
      tpu.vector_store %arg20[%c0_75, %c0_76, %c0_77], %117 {strides = array<i32>} : memref<2x4x32xf32, #tpu.memory_space<vmem>>, vector<1x4x32xf32>,
      %c1 = arith.constant 1 : index
      %c0_78 = arith.constant 0 : index
      %c0_79 = arith.constant 0 : index
      %118 = vector.load %arg19[%c1, %c0_78, %c0_79] : memref<2x4x32xf32, #tpu.memory_space<vmem>>, vector<1x4x32xf32>
      %119 = vector.shape_cast %118 : vector<1x4x32xf32> to vector<4x32xf32>
      %c1_80 = arith.constant 1 : index
      %c0_81 = arith.constant 0 : index
      %c0_82 = arith.constant 0 : index
      %120 = vector.load %arg20[%c1_80, %c0_81, %c0_82] : memref<2x4x32xf32, #tpu.memory_space<vmem>>, vector<1x4x32xf32>
      %121 = vector.shape_cast %120 : vector<1x4x32xf32> to vector<4x32xf32>
      %122 = tpu.concatenate %111, %119 in 1 : vector<4x32xf32>, vector<4x32xf32> -> vector<4x64xf32>
      %cst_83 = arith.constant dense<0.000000e+00> : vector<4x128xf32>
      %123 = tpu.matmul %122, %14, %cst_83 {dimension_numbers = #tpu.dot_dimension_numbers<[1], [0], [0], [1], [0, 0, 1, 1], [], []>} : vector<4x64xf32>, vector<64x128xf32>, vector<4x128xf32> -> vector<4x128xf32>
      %124 = vector.broadcast %15 : vector<1x128xf32> to vector<4x128xf32>
      %125 = arith.addf %123, %124 : vector<4x128xf32>
      %126 = vector.extract_strided_slice %125 {offsets = [0, 0], sizes = [4, 96], strides = [1, 1]} : vector<4x128xf32> to vector<4x96xf32>
      %127 = arith.negf %126 : vector<4x96xf32>
      %128 = math.exp %127 : vector<4x96xf32>
      %cst_84 = arith.constant 1.000000e+00 : f32
      %129 = vector.broadcast %cst_84 : f32 to vector<4x96xf32>
      %130 = arith.addf %129, %128 : vector<4x96xf32>
      %131 = arith.divf %129, %130 : vector<4x96xf32>
      %132 = vector.extract_strided_slice %131 {offsets = [0, 0], sizes = [4, 32], strides = [1, 1]} : vector<4x96xf32> to vector<4x32xf32>
      %133 = vector.extract_strided_slice %131 {offsets = [0, 32], sizes = [4, 32], strides = [1, 1]} : vector<4x96xf32> to vector<4x32xf32>
      %134 = vector.extract_strided_slice %131 {offsets = [0, 64], sizes = [4, 32], strides = [1, 1]} : vector<4x96xf32> to vector<4x32xf32>
      %135 = vector.extract_strided_slice %125 {offsets = [0, 96], sizes = [4, 32], strides = [1, 1]} : vector<4x128xf32> to vector<4x32xf32>
      %136 = math.tanh %135 : vector<4x32xf32>
      %137 = arith.mulf %133, %121 : vector<4x32xf32>
      %138 = arith.mulf %132, %136 : vector<4x32xf32>
      %139 = arith.addf %137, %138 : vector<4x32xf32>
      %140 = math.tanh %139 : vector<4x32xf32>
      %141 = arith.mulf %134, %140 : vector<4x32xf32>
      %c1_85 = arith.constant 1 : index
      %c0_86 = arith.constant 0 : index
      %c0_87 = arith.constant 0 : index
      %142 = vector.load %arg19[%c1_85, %c0_86, %c0_87] : memref<2x4x32xf32, #tpu.memory_space<vmem>>, vector<1x4x32xf32>
      %143 = vector.shape_cast %142 : vector<1x4x32xf32> to vector<4x32xf32>
      %144 = vector.shape_cast %141 : vector<4x32xf32> to vector<1x4x32xf32>
      tpu.vector_store %arg19[%c1_85, %c0_86, %c0_87], %144 {strides = array<i32>} : memref<2x4x32xf32, #tpu.memory_space<vmem>>, vector<1x4x32xf32>,
      %c1_88 = arith.constant 1 : index
      %c0_89 = arith.constant 0 : index
      %c0_90 = arith.constant 0 : index
      %145 = vector.load %arg20[%c1_88, %c0_89, %c0_90] : memref<2x4x32xf32, #tpu.memory_space<vmem>>, vector<1x4x32xf32>
      %146 = vector.shape_cast %145 : vector<1x4x32xf32> to vector<4x32xf32>
      %147 = vector.shape_cast %139 : vector<4x32xf32> to vector<1x4x32xf32>
      tpu.vector_store %arg20[%c1_88, %c0_89, %c0_90], %147 {strides = array<i32>} : memref<2x4x32xf32, #tpu.memory_space<vmem>>, vector<1x4x32xf32>,
      %c0_91 = arith.constant 0 : index
      %c2_92 = arith.constant 2 : index
      %c0_93 = arith.constant 0 : index
      %148 = vector.load %arg22[%c0_91, %c2_92, %c0_93] : memref<4x8x32xf32, #tpu.memory_space<vmem>>, vector<4x1x32xf32>
      %149 = vector.shape_cast %148 : vector<4x1x32xf32> to vector<4x32xf32>
      %150 = vector.shape_cast %141 : vector<4x32xf32> to vector<4x1x32xf32>
      tpu.vector_store %arg22[%c0_91, %c2_92, %c0_93], %150 {strides = array<i32>} : memref<4x8x32xf32, #tpu.memory_space<vmem>>, vector<4x1x32xf32>,
    } else {
    }
    %c3_i32 = arith.constant 3 : i32
    %28 = arith.addi %0, %c3_i32 : i32
    %c12_i32_22 = arith.constant 12 : i32
    %29 = arith.cmpi slt, %28, %c12_i32_22 : i32
    %30 = arith.extui %29 : i1 to i32
    %c0_i32_23 = arith.constant 0 : i32
    %31 = arith.cmpi ne, %30, %c0_i32_23 : i32
    scf.if %31 {
      %c0_62 = arith.constant 0 : index
      %c0_63 = arith.constant 0 : index
      %c0_64 = arith.constant 0 : index
      %88 = vector.load %arg19[%c0_62, %c0_63, %c0_64] : memref<2x4x32xf32, #tpu.memory_space<vmem>>, vector<1x4x32xf32>
      %89 = vector.shape_cast %88 : vector<1x4x32xf32> to vector<4x32xf32>
      %c0_65 = arith.constant 0 : index
      %c0_66 = arith.constant 0 : index
      %c0_67 = arith.constant 0 : index
      %90 = vector.load %arg20[%c0_65, %c0_66, %c0_67] : memref<2x4x32xf32, #tpu.memory_space<vmem>>, vector<1x4x32xf32>
      %91 = vector.shape_cast %90 : vector<1x4x32xf32> to vector<4x32xf32>
      %c0_68 = arith.constant 0 : index
      %c3 = arith.constant 3 : index
      %c0_69 = arith.constant 0 : index
      %92 = vector.load %arg21[%c0_68, %c3, %c0_69] : memref<4x8x128xf32, #tpu.memory_space<vmem>>, vector<4x1x128xf32>
      %93 = vector.shape_cast %92 : vector<4x1x128xf32> to vector<4x128xf32>
      %cst_70 = arith.constant dense<0.000000e+00> : vector<4x128xf32>
      %94 = tpu.matmul %89, %13, %cst_70 {dimension_numbers = #tpu.dot_dimension_numbers<[1], [0], [0], [1], [0, 0, 1, 1], [], []>} : vector<4x32xf32>, vector<32x128xf32>, vector<4x128xf32> -> vector<4x128xf32>
      %95 = arith.addf %93, %94 : vector<4x128xf32>
      %96 = vector.extract_strided_slice %95 {offsets = [0, 0], sizes = [4, 96], strides = [1, 1]} : vector<4x128xf32> to vector<4x96xf32>
      %97 = arith.negf %96 : vector<4x96xf32>
      %98 = math.exp %97 : vector<4x96xf32>
      %cst_71 = arith.constant 1.000000e+00 : f32
      %99 = vector.broadcast %cst_71 : f32 to vector<4x96xf32>
      %100 = arith.addf %99, %98 : vector<4x96xf32>
      %101 = arith.divf %99, %100 : vector<4x96xf32>
      %102 = vector.extract_strided_slice %101 {offsets = [0, 0], sizes = [4, 32], strides = [1, 1]} : vector<4x96xf32> to vector<4x32xf32>
      %103 = vector.extract_strided_slice %101 {offsets = [0, 32], sizes = [4, 32], strides = [1, 1]} : vector<4x96xf32> to vector<4x32xf32>
      %104 = vector.extract_strided_slice %101 {offsets = [0, 64], sizes = [4, 32], strides = [1, 1]} : vector<4x96xf32> to vector<4x32xf32>
      %105 = vector.extract_strided_slice %95 {offsets = [0, 96], sizes = [4, 32], strides = [1, 1]} : vector<4x128xf32> to vector<4x32xf32>
      %106 = math.tanh %105 : vector<4x32xf32>
      %107 = arith.mulf %103, %91 : vector<4x32xf32>
      %108 = arith.mulf %102, %106 : vector<4x32xf32>
      %109 = arith.addf %107, %108 : vector<4x32xf32>
      %110 = math.tanh %109 : vector<4x32xf32>
      %111 = arith.mulf %104, %110 : vector<4x32xf32>
      %c0_72 = arith.constant 0 : index
      %c0_73 = arith.constant 0 : index
      %c0_74 = arith.constant 0 : index
      %112 = vector.load %arg19[%c0_72, %c0_73, %c0_74] : memref<2x4x32xf32, #tpu.memory_space<vmem>>, vector<1x4x32xf32>
      %113 = vector.shape_cast %112 : vector<1x4x32xf32> to vector<4x32xf32>
      %114 = vector.shape_cast %111 : vector<4x32xf32> to vector<1x4x32xf32>
      tpu.vector_store %arg19[%c0_72, %c0_73, %c0_74], %114 {strides = array<i32>} : memref<2x4x32xf32, #tpu.memory_space<vmem>>, vector<1x4x32xf32>,
      %c0_75 = arith.constant 0 : index
      %c0_76 = arith.constant 0 : index
      %c0_77 = arith.constant 0 : index
      %115 = vector.load %arg20[%c0_75, %c0_76, %c0_77] : memref<2x4x32xf32, #tpu.memory_space<vmem>>, vector<1x4x32xf32>
      %116 = vector.shape_cast %115 : vector<1x4x32xf32> to vector<4x32xf32>
      %117 = vector.shape_cast %109 : vector<4x32xf32> to vector<1x4x32xf32>
      tpu.vector_store %arg20[%c0_75, %c0_76, %c0_77], %117 {strides = array<i32>} : memref<2x4x32xf32, #tpu.memory_space<vmem>>, vector<1x4x32xf32>,
      %c1 = arith.constant 1 : index
      %c0_78 = arith.constant 0 : index
      %c0_79 = arith.constant 0 : index
      %118 = vector.load %arg19[%c1, %c0_78, %c0_79] : memref<2x4x32xf32, #tpu.memory_space<vmem>>, vector<1x4x32xf32>
      %119 = vector.shape_cast %118 : vector<1x4x32xf32> to vector<4x32xf32>
      %c1_80 = arith.constant 1 : index
      %c0_81 = arith.constant 0 : index
      %c0_82 = arith.constant 0 : index
      %120 = vector.load %arg20[%c1_80, %c0_81, %c0_82] : memref<2x4x32xf32, #tpu.memory_space<vmem>>, vector<1x4x32xf32>
      %121 = vector.shape_cast %120 : vector<1x4x32xf32> to vector<4x32xf32>
      %122 = tpu.concatenate %111, %119 in 1 : vector<4x32xf32>, vector<4x32xf32> -> vector<4x64xf32>
      %cst_83 = arith.constant dense<0.000000e+00> : vector<4x128xf32>
      %123 = tpu.matmul %122, %14, %cst_83 {dimension_numbers = #tpu.dot_dimension_numbers<[1], [0], [0], [1], [0, 0, 1, 1], [], []>} : vector<4x64xf32>, vector<64x128xf32>, vector<4x128xf32> -> vector<4x128xf32>
      %124 = vector.broadcast %15 : vector<1x128xf32> to vector<4x128xf32>
      %125 = arith.addf %123, %124 : vector<4x128xf32>
      %126 = vector.extract_strided_slice %125 {offsets = [0, 0], sizes = [4, 96], strides = [1, 1]} : vector<4x128xf32> to vector<4x96xf32>
      %127 = arith.negf %126 : vector<4x96xf32>
      %128 = math.exp %127 : vector<4x96xf32>
      %cst_84 = arith.constant 1.000000e+00 : f32
      %129 = vector.broadcast %cst_84 : f32 to vector<4x96xf32>
      %130 = arith.addf %129, %128 : vector<4x96xf32>
      %131 = arith.divf %129, %130 : vector<4x96xf32>
      %132 = vector.extract_strided_slice %131 {offsets = [0, 0], sizes = [4, 32], strides = [1, 1]} : vector<4x96xf32> to vector<4x32xf32>
      %133 = vector.extract_strided_slice %131 {offsets = [0, 32], sizes = [4, 32], strides = [1, 1]} : vector<4x96xf32> to vector<4x32xf32>
      %134 = vector.extract_strided_slice %131 {offsets = [0, 64], sizes = [4, 32], strides = [1, 1]} : vector<4x96xf32> to vector<4x32xf32>
      %135 = vector.extract_strided_slice %125 {offsets = [0, 96], sizes = [4, 32], strides = [1, 1]} : vector<4x128xf32> to vector<4x32xf32>
      %136 = math.tanh %135 : vector<4x32xf32>
      %137 = arith.mulf %133, %121 : vector<4x32xf32>
      %138 = arith.mulf %132, %136 : vector<4x32xf32>
      %139 = arith.addf %137, %138 : vector<4x32xf32>
      %140 = math.tanh %139 : vector<4x32xf32>
      %141 = arith.mulf %134, %140 : vector<4x32xf32>
      %c1_85 = arith.constant 1 : index
      %c0_86 = arith.constant 0 : index
      %c0_87 = arith.constant 0 : index
      %142 = vector.load %arg19[%c1_85, %c0_86, %c0_87] : memref<2x4x32xf32, #tpu.memory_space<vmem>>, vector<1x4x32xf32>
      %143 = vector.shape_cast %142 : vector<1x4x32xf32> to vector<4x32xf32>
      %144 = vector.shape_cast %141 : vector<4x32xf32> to vector<1x4x32xf32>
      tpu.vector_store %arg19[%c1_85, %c0_86, %c0_87], %144 {strides = array<i32>} : memref<2x4x32xf32, #tpu.memory_space<vmem>>, vector<1x4x32xf32>,
      %c1_88 = arith.constant 1 : index
      %c0_89 = arith.constant 0 : index
      %c0_90 = arith.constant 0 : index
      %145 = vector.load %arg20[%c1_88, %c0_89, %c0_90] : memref<2x4x32xf32, #tpu.memory_space<vmem>>, vector<1x4x32xf32>
      %146 = vector.shape_cast %145 : vector<1x4x32xf32> to vector<4x32xf32>
      %147 = vector.shape_cast %139 : vector<4x32xf32> to vector<1x4x32xf32>
      tpu.vector_store %arg20[%c1_88, %c0_89, %c0_90], %147 {strides = array<i32>} : memref<2x4x32xf32, #tpu.memory_space<vmem>>, vector<1x4x32xf32>,
      %c0_91 = arith.constant 0 : index
      %c3_92 = arith.constant 3 : index
      %c0_93 = arith.constant 0 : index
      %148 = vector.load %arg22[%c0_91, %c3_92, %c0_93] : memref<4x8x32xf32, #tpu.memory_space<vmem>>, vector<4x1x32xf32>
      %149 = vector.shape_cast %148 : vector<4x1x32xf32> to vector<4x32xf32>
      %150 = vector.shape_cast %141 : vector<4x32xf32> to vector<4x1x32xf32>
      tpu.vector_store %arg22[%c0_91, %c3_92, %c0_93], %150 {strides = array<i32>} : memref<4x8x32xf32, #tpu.memory_space<vmem>>, vector<4x1x32xf32>,
    } else {
    }
    %c4_i32 = arith.constant 4 : i32
    %32 = arith.addi %0, %c4_i32 : i32
    %c12_i32_24 = arith.constant 12 : i32
    %33 = arith.cmpi slt, %32, %c12_i32_24 : i32
    %34 = arith.extui %33 : i1 to i32
    %c0_i32_25 = arith.constant 0 : i32
    %35 = arith.cmpi ne, %34, %c0_i32_25 : i32
    scf.if %35 {
      %c0_62 = arith.constant 0 : index
      %c0_63 = arith.constant 0 : index
      %c0_64 = arith.constant 0 : index
      %88 = vector.load %arg19[%c0_62, %c0_63, %c0_64] : memref<2x4x32xf32, #tpu.memory_space<vmem>>, vector<1x4x32xf32>
      %89 = vector.shape_cast %88 : vector<1x4x32xf32> to vector<4x32xf32>
      %c0_65 = arith.constant 0 : index
      %c0_66 = arith.constant 0 : index
      %c0_67 = arith.constant 0 : index
      %90 = vector.load %arg20[%c0_65, %c0_66, %c0_67] : memref<2x4x32xf32, #tpu.memory_space<vmem>>, vector<1x4x32xf32>
      %91 = vector.shape_cast %90 : vector<1x4x32xf32> to vector<4x32xf32>
      %c0_68 = arith.constant 0 : index
      %c4 = arith.constant 4 : index
      %c0_69 = arith.constant 0 : index
      %92 = vector.load %arg21[%c0_68, %c4, %c0_69] : memref<4x8x128xf32, #tpu.memory_space<vmem>>, vector<4x1x128xf32>
      %93 = vector.shape_cast %92 : vector<4x1x128xf32> to vector<4x128xf32>
      %cst_70 = arith.constant dense<0.000000e+00> : vector<4x128xf32>
      %94 = tpu.matmul %89, %13, %cst_70 {dimension_numbers = #tpu.dot_dimension_numbers<[1], [0], [0], [1], [0, 0, 1, 1], [], []>} : vector<4x32xf32>, vector<32x128xf32>, vector<4x128xf32> -> vector<4x128xf32>
      %95 = arith.addf %93, %94 : vector<4x128xf32>
      %96 = vector.extract_strided_slice %95 {offsets = [0, 0], sizes = [4, 96], strides = [1, 1]} : vector<4x128xf32> to vector<4x96xf32>
      %97 = arith.negf %96 : vector<4x96xf32>
      %98 = math.exp %97 : vector<4x96xf32>
      %cst_71 = arith.constant 1.000000e+00 : f32
      %99 = vector.broadcast %cst_71 : f32 to vector<4x96xf32>
      %100 = arith.addf %99, %98 : vector<4x96xf32>
      %101 = arith.divf %99, %100 : vector<4x96xf32>
      %102 = vector.extract_strided_slice %101 {offsets = [0, 0], sizes = [4, 32], strides = [1, 1]} : vector<4x96xf32> to vector<4x32xf32>
      %103 = vector.extract_strided_slice %101 {offsets = [0, 32], sizes = [4, 32], strides = [1, 1]} : vector<4x96xf32> to vector<4x32xf32>
      %104 = vector.extract_strided_slice %101 {offsets = [0, 64], sizes = [4, 32], strides = [1, 1]} : vector<4x96xf32> to vector<4x32xf32>
      %105 = vector.extract_strided_slice %95 {offsets = [0, 96], sizes = [4, 32], strides = [1, 1]} : vector<4x128xf32> to vector<4x32xf32>
      %106 = math.tanh %105 : vector<4x32xf32>
      %107 = arith.mulf %103, %91 : vector<4x32xf32>
      %108 = arith.mulf %102, %106 : vector<4x32xf32>
      %109 = arith.addf %107, %108 : vector<4x32xf32>
      %110 = math.tanh %109 : vector<4x32xf32>
      %111 = arith.mulf %104, %110 : vector<4x32xf32>
      %c0_72 = arith.constant 0 : index
      %c0_73 = arith.constant 0 : index
      %c0_74 = arith.constant 0 : index
      %112 = vector.load %arg19[%c0_72, %c0_73, %c0_74] : memref<2x4x32xf32, #tpu.memory_space<vmem>>, vector<1x4x32xf32>
      %113 = vector.shape_cast %112 : vector<1x4x32xf32> to vector<4x32xf32>
      %114 = vector.shape_cast %111 : vector<4x32xf32> to vector<1x4x32xf32>
      tpu.vector_store %arg19[%c0_72, %c0_73, %c0_74], %114 {strides = array<i32>} : memref<2x4x32xf32, #tpu.memory_space<vmem>>, vector<1x4x32xf32>,
      %c0_75 = arith.constant 0 : index
      %c0_76 = arith.constant 0 : index
      %c0_77 = arith.constant 0 : index
      %115 = vector.load %arg20[%c0_75, %c0_76, %c0_77] : memref<2x4x32xf32, #tpu.memory_space<vmem>>, vector<1x4x32xf32>
      %116 = vector.shape_cast %115 : vector<1x4x32xf32> to vector<4x32xf32>
      %117 = vector.shape_cast %109 : vector<4x32xf32> to vector<1x4x32xf32>
      tpu.vector_store %arg20[%c0_75, %c0_76, %c0_77], %117 {strides = array<i32>} : memref<2x4x32xf32, #tpu.memory_space<vmem>>, vector<1x4x32xf32>,
      %c1 = arith.constant 1 : index
      %c0_78 = arith.constant 0 : index
      %c0_79 = arith.constant 0 : index
      %118 = vector.load %arg19[%c1, %c0_78, %c0_79] : memref<2x4x32xf32, #tpu.memory_space<vmem>>, vector<1x4x32xf32>
      %119 = vector.shape_cast %118 : vector<1x4x32xf32> to vector<4x32xf32>
      %c1_80 = arith.constant 1 : index
      %c0_81 = arith.constant 0 : index
      %c0_82 = arith.constant 0 : index
      %120 = vector.load %arg20[%c1_80, %c0_81, %c0_82] : memref<2x4x32xf32, #tpu.memory_space<vmem>>, vector<1x4x32xf32>
      %121 = vector.shape_cast %120 : vector<1x4x32xf32> to vector<4x32xf32>
      %122 = tpu.concatenate %111, %119 in 1 : vector<4x32xf32>, vector<4x32xf32> -> vector<4x64xf32>
      %cst_83 = arith.constant dense<0.000000e+00> : vector<4x128xf32>
      %123 = tpu.matmul %122, %14, %cst_83 {dimension_numbers = #tpu.dot_dimension_numbers<[1], [0], [0], [1], [0, 0, 1, 1], [], []>} : vector<4x64xf32>, vector<64x128xf32>, vector<4x128xf32> -> vector<4x128xf32>
      %124 = vector.broadcast %15 : vector<1x128xf32> to vector<4x128xf32>
      %125 = arith.addf %123, %124 : vector<4x128xf32>
      %126 = vector.extract_strided_slice %125 {offsets = [0, 0], sizes = [4, 96], strides = [1, 1]} : vector<4x128xf32> to vector<4x96xf32>
      %127 = arith.negf %126 : vector<4x96xf32>
      %128 = math.exp %127 : vector<4x96xf32>
      %cst_84 = arith.constant 1.000000e+00 : f32
      %129 = vector.broadcast %cst_84 : f32 to vector<4x96xf32>
      %130 = arith.addf %129, %128 : vector<4x96xf32>
      %131 = arith.divf %129, %130 : vector<4x96xf32>
      %132 = vector.extract_strided_slice %131 {offsets = [0, 0], sizes = [4, 32], strides = [1, 1]} : vector<4x96xf32> to vector<4x32xf32>
      %133 = vector.extract_strided_slice %131 {offsets = [0, 32], sizes = [4, 32], strides = [1, 1]} : vector<4x96xf32> to vector<4x32xf32>
      %134 = vector.extract_strided_slice %131 {offsets = [0, 64], sizes = [4, 32], strides = [1, 1]} : vector<4x96xf32> to vector<4x32xf32>
      %135 = vector.extract_strided_slice %125 {offsets = [0, 96], sizes = [4, 32], strides = [1, 1]} : vector<4x128xf32> to vector<4x32xf32>
      %136 = math.tanh %135 : vector<4x32xf32>
      %137 = arith.mulf %133, %121 : vector<4x32xf32>
      %138 = arith.mulf %132, %136 : vector<4x32xf32>
      %139 = arith.addf %137, %138 : vector<4x32xf32>
      %140 = math.tanh %139 : vector<4x32xf32>
      %141 = arith.mulf %134, %140 : vector<4x32xf32>
      %c1_85 = arith.constant 1 : index
      %c0_86 = arith.constant 0 : index
      %c0_87 = arith.constant 0 : index
      %142 = vector.load %arg19[%c1_85, %c0_86, %c0_87] : memref<2x4x32xf32, #tpu.memory_space<vmem>>, vector<1x4x32xf32>
      %143 = vector.shape_cast %142 : vector<1x4x32xf32> to vector<4x32xf32>
      %144 = vector.shape_cast %141 : vector<4x32xf32> to vector<1x4x32xf32>
      tpu.vector_store %arg19[%c1_85, %c0_86, %c0_87], %144 {strides = array<i32>} : memref<2x4x32xf32, #tpu.memory_space<vmem>>, vector<1x4x32xf32>,
      %c1_88 = arith.constant 1 : index
      %c0_89 = arith.constant 0 : index
      %c0_90 = arith.constant 0 : index
      %145 = vector.load %arg20[%c1_88, %c0_89, %c0_90] : memref<2x4x32xf32, #tpu.memory_space<vmem>>, vector<1x4x32xf32>
      %146 = vector.shape_cast %145 : vector<1x4x32xf32> to vector<4x32xf32>
      %147 = vector.shape_cast %139 : vector<4x32xf32> to vector<1x4x32xf32>
      tpu.vector_store %arg20[%c1_88, %c0_89, %c0_90], %147 {strides = array<i32>} : memref<2x4x32xf32, #tpu.memory_space<vmem>>, vector<1x4x32xf32>,
      %c0_91 = arith.constant 0 : index
      %c4_92 = arith.constant 4 : index
      %c0_93 = arith.constant 0 : index
      %148 = vector.load %arg22[%c0_91, %c4_92, %c0_93] : memref<4x8x32xf32, #tpu.memory_space<vmem>>, vector<4x1x32xf32>
      %149 = vector.shape_cast %148 : vector<4x1x32xf32> to vector<4x32xf32>
      %150 = vector.shape_cast %141 : vector<4x32xf32> to vector<4x1x32xf32>
      tpu.vector_store %arg22[%c0_91, %c4_92, %c0_93], %150 {strides = array<i32>} : memref<4x8x32xf32, #tpu.memory_space<vmem>>, vector<4x1x32xf32>,
    } else {
    }
    %c5_i32 = arith.constant 5 : i32
    %36 = arith.addi %0, %c5_i32 : i32
    %c12_i32_26 = arith.constant 12 : i32
    %37 = arith.cmpi slt, %36, %c12_i32_26 : i32
    %38 = arith.extui %37 : i1 to i32
    %c0_i32_27 = arith.constant 0 : i32
    %39 = arith.cmpi ne, %38, %c0_i32_27 : i32
    scf.if %39 {
      %c0_62 = arith.constant 0 : index
      %c0_63 = arith.constant 0 : index
      %c0_64 = arith.constant 0 : index
      %88 = vector.load %arg19[%c0_62, %c0_63, %c0_64] : memref<2x4x32xf32, #tpu.memory_space<vmem>>, vector<1x4x32xf32>
      %89 = vector.shape_cast %88 : vector<1x4x32xf32> to vector<4x32xf32>
      %c0_65 = arith.constant 0 : index
      %c0_66 = arith.constant 0 : index
      %c0_67 = arith.constant 0 : index
      %90 = vector.load %arg20[%c0_65, %c0_66, %c0_67] : memref<2x4x32xf32, #tpu.memory_space<vmem>>, vector<1x4x32xf32>
      %91 = vector.shape_cast %90 : vector<1x4x32xf32> to vector<4x32xf32>
      %c0_68 = arith.constant 0 : index
      %c5 = arith.constant 5 : index
      %c0_69 = arith.constant 0 : index
      %92 = vector.load %arg21[%c0_68, %c5, %c0_69] : memref<4x8x128xf32, #tpu.memory_space<vmem>>, vector<4x1x128xf32>
      %93 = vector.shape_cast %92 : vector<4x1x128xf32> to vector<4x128xf32>
      %cst_70 = arith.constant dense<0.000000e+00> : vector<4x128xf32>
      %94 = tpu.matmul %89, %13, %cst_70 {dimension_numbers = #tpu.dot_dimension_numbers<[1], [0], [0], [1], [0, 0, 1, 1], [], []>} : vector<4x32xf32>, vector<32x128xf32>, vector<4x128xf32> -> vector<4x128xf32>
      %95 = arith.addf %93, %94 : vector<4x128xf32>
      %96 = vector.extract_strided_slice %95 {offsets = [0, 0], sizes = [4, 96], strides = [1, 1]} : vector<4x128xf32> to vector<4x96xf32>
      %97 = arith.negf %96 : vector<4x96xf32>
      %98 = math.exp %97 : vector<4x96xf32>
      %cst_71 = arith.constant 1.000000e+00 : f32
      %99 = vector.broadcast %cst_71 : f32 to vector<4x96xf32>
      %100 = arith.addf %99, %98 : vector<4x96xf32>
      %101 = arith.divf %99, %100 : vector<4x96xf32>
      %102 = vector.extract_strided_slice %101 {offsets = [0, 0], sizes = [4, 32], strides = [1, 1]} : vector<4x96xf32> to vector<4x32xf32>
      %103 = vector.extract_strided_slice %101 {offsets = [0, 32], sizes = [4, 32], strides = [1, 1]} : vector<4x96xf32> to vector<4x32xf32>
      %104 = vector.extract_strided_slice %101 {offsets = [0, 64], sizes = [4, 32], strides = [1, 1]} : vector<4x96xf32> to vector<4x32xf32>
      %105 = vector.extract_strided_slice %95 {offsets = [0, 96], sizes = [4, 32], strides = [1, 1]} : vector<4x128xf32> to vector<4x32xf32>
      %106 = math.tanh %105 : vector<4x32xf32>
      %107 = arith.mulf %103, %91 : vector<4x32xf32>
      %108 = arith.mulf %102, %106 : vector<4x32xf32>
      %109 = arith.addf %107, %108 : vector<4x32xf32>
      %110 = math.tanh %109 : vector<4x32xf32>
      %111 = arith.mulf %104, %110 : vector<4x32xf32>
      %c0_72 = arith.constant 0 : index
      %c0_73 = arith.constant 0 : index
      %c0_74 = arith.constant 0 : index
      %112 = vector.load %arg19[%c0_72, %c0_73, %c0_74] : memref<2x4x32xf32, #tpu.memory_space<vmem>>, vector<1x4x32xf32>
      %113 = vector.shape_cast %112 : vector<1x4x32xf32> to vector<4x32xf32>
      %114 = vector.shape_cast %111 : vector<4x32xf32> to vector<1x4x32xf32>
      tpu.vector_store %arg19[%c0_72, %c0_73, %c0_74], %114 {strides = array<i32>} : memref<2x4x32xf32, #tpu.memory_space<vmem>>, vector<1x4x32xf32>,
      %c0_75 = arith.constant 0 : index
      %c0_76 = arith.constant 0 : index
      %c0_77 = arith.constant 0 : index
      %115 = vector.load %arg20[%c0_75, %c0_76, %c0_77] : memref<2x4x32xf32, #tpu.memory_space<vmem>>, vector<1x4x32xf32>
      %116 = vector.shape_cast %115 : vector<1x4x32xf32> to vector<4x32xf32>
      %117 = vector.shape_cast %109 : vector<4x32xf32> to vector<1x4x32xf32>
      tpu.vector_store %arg20[%c0_75, %c0_76, %c0_77], %117 {strides = array<i32>} : memref<2x4x32xf32, #tpu.memory_space<vmem>>, vector<1x4x32xf32>,
      %c1 = arith.constant 1 : index
      %c0_78 = arith.constant 0 : index
      %c0_79 = arith.constant 0 : index
      %118 = vector.load %arg19[%c1, %c0_78, %c0_79] : memref<2x4x32xf32, #tpu.memory_space<vmem>>, vector<1x4x32xf32>
      %119 = vector.shape_cast %118 : vector<1x4x32xf32> to vector<4x32xf32>
      %c1_80 = arith.constant 1 : index
      %c0_81 = arith.constant 0 : index
      %c0_82 = arith.constant 0 : index
      %120 = vector.load %arg20[%c1_80, %c0_81, %c0_82] : memref<2x4x32xf32, #tpu.memory_space<vmem>>, vector<1x4x32xf32>
      %121 = vector.shape_cast %120 : vector<1x4x32xf32> to vector<4x32xf32>
      %122 = tpu.concatenate %111, %119 in 1 : vector<4x32xf32>, vector<4x32xf32> -> vector<4x64xf32>
      %cst_83 = arith.constant dense<0.000000e+00> : vector<4x128xf32>
      %123 = tpu.matmul %122, %14, %cst_83 {dimension_numbers = #tpu.dot_dimension_numbers<[1], [0], [0], [1], [0, 0, 1, 1], [], []>} : vector<4x64xf32>, vector<64x128xf32>, vector<4x128xf32> -> vector<4x128xf32>
      %124 = vector.broadcast %15 : vector<1x128xf32> to vector<4x128xf32>
      %125 = arith.addf %123, %124 : vector<4x128xf32>
      %126 = vector.extract_strided_slice %125 {offsets = [0, 0], sizes = [4, 96], strides = [1, 1]} : vector<4x128xf32> to vector<4x96xf32>
      %127 = arith.negf %126 : vector<4x96xf32>
      %128 = math.exp %127 : vector<4x96xf32>
      %cst_84 = arith.constant 1.000000e+00 : f32
      %129 = vector.broadcast %cst_84 : f32 to vector<4x96xf32>
      %130 = arith.addf %129, %128 : vector<4x96xf32>
      %131 = arith.divf %129, %130 : vector<4x96xf32>
      %132 = vector.extract_strided_slice %131 {offsets = [0, 0], sizes = [4, 32], strides = [1, 1]} : vector<4x96xf32> to vector<4x32xf32>
      %133 = vector.extract_strided_slice %131 {offsets = [0, 32], sizes = [4, 32], strides = [1, 1]} : vector<4x96xf32> to vector<4x32xf32>
      %134 = vector.extract_strided_slice %131 {offsets = [0, 64], sizes = [4, 32], strides = [1, 1]} : vector<4x96xf32> to vector<4x32xf32>
      %135 = vector.extract_strided_slice %125 {offsets = [0, 96], sizes = [4, 32], strides = [1, 1]} : vector<4x128xf32> to vector<4x32xf32>
      %136 = math.tanh %135 : vector<4x32xf32>
      %137 = arith.mulf %133, %121 : vector<4x32xf32>
      %138 = arith.mulf %132, %136 : vector<4x32xf32>
      %139 = arith.addf %137, %138 : vector<4x32xf32>
      %140 = math.tanh %139 : vector<4x32xf32>
      %141 = arith.mulf %134, %140 : vector<4x32xf32>
      %c1_85 = arith.constant 1 : index
      %c0_86 = arith.constant 0 : index
      %c0_87 = arith.constant 0 : index
      %142 = vector.load %arg19[%c1_85, %c0_86, %c0_87] : memref<2x4x32xf32, #tpu.memory_space<vmem>>, vector<1x4x32xf32>
      %143 = vector.shape_cast %142 : vector<1x4x32xf32> to vector<4x32xf32>
      %144 = vector.shape_cast %141 : vector<4x32xf32> to vector<1x4x32xf32>
      tpu.vector_store %arg19[%c1_85, %c0_86, %c0_87], %144 {strides = array<i32>} : memref<2x4x32xf32, #tpu.memory_space<vmem>>, vector<1x4x32xf32>,
      %c1_88 = arith.constant 1 : index
      %c0_89 = arith.constant 0 : index
      %c0_90 = arith.constant 0 : index
      %145 = vector.load %arg20[%c1_88, %c0_89, %c0_90] : memref<2x4x32xf32, #tpu.memory_space<vmem>>, vector<1x4x32xf32>
      %146 = vector.shape_cast %145 : vector<1x4x32xf32> to vector<4x32xf32>
      %147 = vector.shape_cast %139 : vector<4x32xf32> to vector<1x4x32xf32>
      tpu.vector_store %arg20[%c1_88, %c0_89, %c0_90], %147 {strides = array<i32>} : memref<2x4x32xf32, #tpu.memory_space<vmem>>, vector<1x4x32xf32>,
      %c0_91 = arith.constant 0 : index
      %c5_92 = arith.constant 5 : index
      %c0_93 = arith.constant 0 : index
      %148 = vector.load %arg22[%c0_91, %c5_92, %c0_93] : memref<4x8x32xf32, #tpu.memory_space<vmem>>, vector<4x1x32xf32>
      %149 = vector.shape_cast %148 : vector<4x1x32xf32> to vector<4x32xf32>
      %150 = vector.shape_cast %141 : vector<4x32xf32> to vector<4x1x32xf32>
      tpu.vector_store %arg22[%c0_91, %c5_92, %c0_93], %150 {strides = array<i32>} : memref<4x8x32xf32, #tpu.memory_space<vmem>>, vector<4x1x32xf32>,
    } else {
    }
    %c6_i32 = arith.constant 6 : i32
    %40 = arith.addi %0, %c6_i32 : i32
    %c12_i32_28 = arith.constant 12 : i32
    %41 = arith.cmpi slt, %40, %c12_i32_28 : i32
    %42 = arith.extui %41 : i1 to i32
    %c0_i32_29 = arith.constant 0 : i32
    %43 = arith.cmpi ne, %42, %c0_i32_29 : i32
    scf.if %43 {
      %c0_62 = arith.constant 0 : index
      %c0_63 = arith.constant 0 : index
      %c0_64 = arith.constant 0 : index
      %88 = vector.load %arg19[%c0_62, %c0_63, %c0_64] : memref<2x4x32xf32, #tpu.memory_space<vmem>>, vector<1x4x32xf32>
      %89 = vector.shape_cast %88 : vector<1x4x32xf32> to vector<4x32xf32>
      %c0_65 = arith.constant 0 : index
      %c0_66 = arith.constant 0 : index
      %c0_67 = arith.constant 0 : index
      %90 = vector.load %arg20[%c0_65, %c0_66, %c0_67] : memref<2x4x32xf32, #tpu.memory_space<vmem>>, vector<1x4x32xf32>
      %91 = vector.shape_cast %90 : vector<1x4x32xf32> to vector<4x32xf32>
      %c0_68 = arith.constant 0 : index
      %c6 = arith.constant 6 : index
      %c0_69 = arith.constant 0 : index
      %92 = vector.load %arg21[%c0_68, %c6, %c0_69] : memref<4x8x128xf32, #tpu.memory_space<vmem>>, vector<4x1x128xf32>
      %93 = vector.shape_cast %92 : vector<4x1x128xf32> to vector<4x128xf32>
      %cst_70 = arith.constant dense<0.000000e+00> : vector<4x128xf32>
      %94 = tpu.matmul %89, %13, %cst_70 {dimension_numbers = #tpu.dot_dimension_numbers<[1], [0], [0], [1], [0, 0, 1, 1], [], []>} : vector<4x32xf32>, vector<32x128xf32>, vector<4x128xf32> -> vector<4x128xf32>
      %95 = arith.addf %93, %94 : vector<4x128xf32>
      %96 = vector.extract_strided_slice %95 {offsets = [0, 0], sizes = [4, 96], strides = [1, 1]} : vector<4x128xf32> to vector<4x96xf32>
      %97 = arith.negf %96 : vector<4x96xf32>
      %98 = math.exp %97 : vector<4x96xf32>
      %cst_71 = arith.constant 1.000000e+00 : f32
      %99 = vector.broadcast %cst_71 : f32 to vector<4x96xf32>
      %100 = arith.addf %99, %98 : vector<4x96xf32>
      %101 = arith.divf %99, %100 : vector<4x96xf32>
      %102 = vector.extract_strided_slice %101 {offsets = [0, 0], sizes = [4, 32], strides = [1, 1]} : vector<4x96xf32> to vector<4x32xf32>
      %103 = vector.extract_strided_slice %101 {offsets = [0, 32], sizes = [4, 32], strides = [1, 1]} : vector<4x96xf32> to vector<4x32xf32>
      %104 = vector.extract_strided_slice %101 {offsets = [0, 64], sizes = [4, 32], strides = [1, 1]} : vector<4x96xf32> to vector<4x32xf32>
      %105 = vector.extract_strided_slice %95 {offsets = [0, 96], sizes = [4, 32], strides = [1, 1]} : vector<4x128xf32> to vector<4x32xf32>
      %106 = math.tanh %105 : vector<4x32xf32>
      %107 = arith.mulf %103, %91 : vector<4x32xf32>
      %108 = arith.mulf %102, %106 : vector<4x32xf32>
      %109 = arith.addf %107, %108 : vector<4x32xf32>
      %110 = math.tanh %109 : vector<4x32xf32>
      %111 = arith.mulf %104, %110 : vector<4x32xf32>
      %c0_72 = arith.constant 0 : index
      %c0_73 = arith.constant 0 : index
      %c0_74 = arith.constant 0 : index
      %112 = vector.load %arg19[%c0_72, %c0_73, %c0_74] : memref<2x4x32xf32, #tpu.memory_space<vmem>>, vector<1x4x32xf32>
      %113 = vector.shape_cast %112 : vector<1x4x32xf32> to vector<4x32xf32>
      %114 = vector.shape_cast %111 : vector<4x32xf32> to vector<1x4x32xf32>
      tpu.vector_store %arg19[%c0_72, %c0_73, %c0_74], %114 {strides = array<i32>} : memref<2x4x32xf32, #tpu.memory_space<vmem>>, vector<1x4x32xf32>,
      %c0_75 = arith.constant 0 : index
      %c0_76 = arith.constant 0 : index
      %c0_77 = arith.constant 0 : index
      %115 = vector.load %arg20[%c0_75, %c0_76, %c0_77] : memref<2x4x32xf32, #tpu.memory_space<vmem>>, vector<1x4x32xf32>
      %116 = vector.shape_cast %115 : vector<1x4x32xf32> to vector<4x32xf32>
      %117 = vector.shape_cast %109 : vector<4x32xf32> to vector<1x4x32xf32>
      tpu.vector_store %arg20[%c0_75, %c0_76, %c0_77], %117 {strides = array<i32>} : memref<2x4x32xf32, #tpu.memory_space<vmem>>, vector<1x4x32xf32>,
      %c1 = arith.constant 1 : index
      %c0_78 = arith.constant 0 : index
      %c0_79 = arith.constant 0 : index
      %118 = vector.load %arg19[%c1, %c0_78, %c0_79] : memref<2x4x32xf32, #tpu.memory_space<vmem>>, vector<1x4x32xf32>
      %119 = vector.shape_cast %118 : vector<1x4x32xf32> to vector<4x32xf32>
      %c1_80 = arith.constant 1 : index
      %c0_81 = arith.constant 0 : index
      %c0_82 = arith.constant 0 : index
      %120 = vector.load %arg20[%c1_80, %c0_81, %c0_82] : memref<2x4x32xf32, #tpu.memory_space<vmem>>, vector<1x4x32xf32>
      %121 = vector.shape_cast %120 : vector<1x4x32xf32> to vector<4x32xf32>
      %122 = tpu.concatenate %111, %119 in 1 : vector<4x32xf32>, vector<4x32xf32> -> vector<4x64xf32>
      %cst_83 = arith.constant dense<0.000000e+00> : vector<4x128xf32>
      %123 = tpu.matmul %122, %14, %cst_83 {dimension_numbers = #tpu.dot_dimension_numbers<[1], [0], [0], [1], [0, 0, 1, 1], [], []>} : vector<4x64xf32>, vector<64x128xf32>, vector<4x128xf32> -> vector<4x128xf32>
      %124 = vector.broadcast %15 : vector<1x128xf32> to vector<4x128xf32>
      %125 = arith.addf %123, %124 : vector<4x128xf32>
      %126 = vector.extract_strided_slice %125 {offsets = [0, 0], sizes = [4, 96], strides = [1, 1]} : vector<4x128xf32> to vector<4x96xf32>
      %127 = arith.negf %126 : vector<4x96xf32>
      %128 = math.exp %127 : vector<4x96xf32>
      %cst_84 = arith.constant 1.000000e+00 : f32
      %129 = vector.broadcast %cst_84 : f32 to vector<4x96xf32>
      %130 = arith.addf %129, %128 : vector<4x96xf32>
      %131 = arith.divf %129, %130 : vector<4x96xf32>
      %132 = vector.extract_strided_slice %131 {offsets = [0, 0], sizes = [4, 32], strides = [1, 1]} : vector<4x96xf32> to vector<4x32xf32>
      %133 = vector.extract_strided_slice %131 {offsets = [0, 32], sizes = [4, 32], strides = [1, 1]} : vector<4x96xf32> to vector<4x32xf32>
      %134 = vector.extract_strided_slice %131 {offsets = [0, 64], sizes = [4, 32], strides = [1, 1]} : vector<4x96xf32> to vector<4x32xf32>
      %135 = vector.extract_strided_slice %125 {offsets = [0, 96], sizes = [4, 32], strides = [1, 1]} : vector<4x128xf32> to vector<4x32xf32>
      %136 = math.tanh %135 : vector<4x32xf32>
      %137 = arith.mulf %133, %121 : vector<4x32xf32>
      %138 = arith.mulf %132, %136 : vector<4x32xf32>
      %139 = arith.addf %137, %138 : vector<4x32xf32>
      %140 = math.tanh %139 : vector<4x32xf32>
      %141 = arith.mulf %134, %140 : vector<4x32xf32>
      %c1_85 = arith.constant 1 : index
      %c0_86 = arith.constant 0 : index
      %c0_87 = arith.constant 0 : index
      %142 = vector.load %arg19[%c1_85, %c0_86, %c0_87] : memref<2x4x32xf32, #tpu.memory_space<vmem>>, vector<1x4x32xf32>
      %143 = vector.shape_cast %142 : vector<1x4x32xf32> to vector<4x32xf32>
      %144 = vector.shape_cast %141 : vector<4x32xf32> to vector<1x4x32xf32>
      tpu.vector_store %arg19[%c1_85, %c0_86, %c0_87], %144 {strides = array<i32>} : memref<2x4x32xf32, #tpu.memory_space<vmem>>, vector<1x4x32xf32>,
      %c1_88 = arith.constant 1 : index
      %c0_89 = arith.constant 0 : index
      %c0_90 = arith.constant 0 : index
      %145 = vector.load %arg20[%c1_88, %c0_89, %c0_90] : memref<2x4x32xf32, #tpu.memory_space<vmem>>, vector<1x4x32xf32>
      %146 = vector.shape_cast %145 : vector<1x4x32xf32> to vector<4x32xf32>
      %147 = vector.shape_cast %139 : vector<4x32xf32> to vector<1x4x32xf32>
      tpu.vector_store %arg20[%c1_88, %c0_89, %c0_90], %147 {strides = array<i32>} : memref<2x4x32xf32, #tpu.memory_space<vmem>>, vector<1x4x32xf32>,
      %c0_91 = arith.constant 0 : index
      %c6_92 = arith.constant 6 : index
      %c0_93 = arith.constant 0 : index
      %148 = vector.load %arg22[%c0_91, %c6_92, %c0_93] : memref<4x8x32xf32, #tpu.memory_space<vmem>>, vector<4x1x32xf32>
      %149 = vector.shape_cast %148 : vector<4x1x32xf32> to vector<4x32xf32>
      %150 = vector.shape_cast %141 : vector<4x32xf32> to vector<4x1x32xf32>
      tpu.vector_store %arg22[%c0_91, %c6_92, %c0_93], %150 {strides = array<i32>} : memref<4x8x32xf32, #tpu.memory_space<vmem>>, vector<4x1x32xf32>,
    } else {
    }
    %c7_i32 = arith.constant 7 : i32
    %44 = arith.addi %0, %c7_i32 : i32
    %c12_i32_30 = arith.constant 12 : i32
    %45 = arith.cmpi slt, %44, %c12_i32_30 : i32
    %46 = arith.extui %45 : i1 to i32
    %c0_i32_31 = arith.constant 0 : i32
    %47 = arith.cmpi ne, %46, %c0_i32_31 : i32
    scf.if %47 {
      %c0_62 = arith.constant 0 : index
      %c0_63 = arith.constant 0 : index
      %c0_64 = arith.constant 0 : index
      %88 = vector.load %arg19[%c0_62, %c0_63, %c0_64] : memref<2x4x32xf32, #tpu.memory_space<vmem>>, vector<1x4x32xf32>
      %89 = vector.shape_cast %88 : vector<1x4x32xf32> to vector<4x32xf32>
      %c0_65 = arith.constant 0 : index
      %c0_66 = arith.constant 0 : index
      %c0_67 = arith.constant 0 : index
      %90 = vector.load %arg20[%c0_65, %c0_66, %c0_67] : memref<2x4x32xf32, #tpu.memory_space<vmem>>, vector<1x4x32xf32>
      %91 = vector.shape_cast %90 : vector<1x4x32xf32> to vector<4x32xf32>
      %c0_68 = arith.constant 0 : index
      %c7 = arith.constant 7 : index
      %c0_69 = arith.constant 0 : index
      %92 = vector.load %arg21[%c0_68, %c7, %c0_69] : memref<4x8x128xf32, #tpu.memory_space<vmem>>, vector<4x1x128xf32>
      %93 = vector.shape_cast %92 : vector<4x1x128xf32> to vector<4x128xf32>
      %cst_70 = arith.constant dense<0.000000e+00> : vector<4x128xf32>
      %94 = tpu.matmul %89, %13, %cst_70 {dimension_numbers = #tpu.dot_dimension_numbers<[1], [0], [0], [1], [0, 0, 1, 1], [], []>} : vector<4x32xf32>, vector<32x128xf32>, vector<4x128xf32> -> vector<4x128xf32>
      %95 = arith.addf %93, %94 : vector<4x128xf32>
      %96 = vector.extract_strided_slice %95 {offsets = [0, 0], sizes = [4, 96], strides = [1, 1]} : vector<4x128xf32> to vector<4x96xf32>
      %97 = arith.negf %96 : vector<4x96xf32>
      %98 = math.exp %97 : vector<4x96xf32>
      %cst_71 = arith.constant 1.000000e+00 : f32
      %99 = vector.broadcast %cst_71 : f32 to vector<4x96xf32>
      %100 = arith.addf %99, %98 : vector<4x96xf32>
      %101 = arith.divf %99, %100 : vector<4x96xf32>
      %102 = vector.extract_strided_slice %101 {offsets = [0, 0], sizes = [4, 32], strides = [1, 1]} : vector<4x96xf32> to vector<4x32xf32>
      %103 = vector.extract_strided_slice %101 {offsets = [0, 32], sizes = [4, 32], strides = [1, 1]} : vector<4x96xf32> to vector<4x32xf32>
      %104 = vector.extract_strided_slice %101 {offsets = [0, 64], sizes = [4, 32], strides = [1, 1]} : vector<4x96xf32> to vector<4x32xf32>
      %105 = vector.extract_strided_slice %95 {offsets = [0, 96], sizes = [4, 32], strides = [1, 1]} : vector<4x128xf32> to vector<4x32xf32>
      %106 = math.tanh %105 : vector<4x32xf32>
      %107 = arith.mulf %103, %91 : vector<4x32xf32>
      %108 = arith.mulf %102, %106 : vector<4x32xf32>
      %109 = arith.addf %107, %108 : vector<4x32xf32>
      %110 = math.tanh %109 : vector<4x32xf32>
      %111 = arith.mulf %104, %110 : vector<4x32xf32>
      %c0_72 = arith.constant 0 : index
      %c0_73 = arith.constant 0 : index
      %c0_74 = arith.constant 0 : index
      %112 = vector.load %arg19[%c0_72, %c0_73, %c0_74] : memref<2x4x32xf32, #tpu.memory_space<vmem>>, vector<1x4x32xf32>
      %113 = vector.shape_cast %112 : vector<1x4x32xf32> to vector<4x32xf32>
      %114 = vector.shape_cast %111 : vector<4x32xf32> to vector<1x4x32xf32>
      tpu.vector_store %arg19[%c0_72, %c0_73, %c0_74], %114 {strides = array<i32>} : memref<2x4x32xf32, #tpu.memory_space<vmem>>, vector<1x4x32xf32>,
      %c0_75 = arith.constant 0 : index
      %c0_76 = arith.constant 0 : index
      %c0_77 = arith.constant 0 : index
      %115 = vector.load %arg20[%c0_75, %c0_76, %c0_77] : memref<2x4x32xf32, #tpu.memory_space<vmem>>, vector<1x4x32xf32>
      %116 = vector.shape_cast %115 : vector<1x4x32xf32> to vector<4x32xf32>
      %117 = vector.shape_cast %109 : vector<4x32xf32> to vector<1x4x32xf32>
      tpu.vector_store %arg20[%c0_75, %c0_76, %c0_77], %117 {strides = array<i32>} : memref<2x4x32xf32, #tpu.memory_space<vmem>>, vector<1x4x32xf32>,
      %c1 = arith.constant 1 : index
      %c0_78 = arith.constant 0 : index
      %c0_79 = arith.constant 0 : index
      %118 = vector.load %arg19[%c1, %c0_78, %c0_79] : memref<2x4x32xf32, #tpu.memory_space<vmem>>, vector<1x4x32xf32>
      %119 = vector.shape_cast %118 : vector<1x4x32xf32> to vector<4x32xf32>
      %c1_80 = arith.constant 1 : index
      %c0_81 = arith.constant 0 : index
      %c0_82 = arith.constant 0 : index
      %120 = vector.load %arg20[%c1_80, %c0_81, %c0_82] : memref<2x4x32xf32, #tpu.memory_space<vmem>>, vector<1x4x32xf32>
      %121 = vector.shape_cast %120 : vector<1x4x32xf32> to vector<4x32xf32>
      %122 = tpu.concatenate %111, %119 in 1 : vector<4x32xf32>, vector<4x32xf32> -> vector<4x64xf32>
      %cst_83 = arith.constant dense<0.000000e+00> : vector<4x128xf32>
      %123 = tpu.matmul %122, %14, %cst_83 {dimension_numbers = #tpu.dot_dimension_numbers<[1], [0], [0], [1], [0, 0, 1, 1], [], []>} : vector<4x64xf32>, vector<64x128xf32>, vector<4x128xf32> -> vector<4x128xf32>
      %124 = vector.broadcast %15 : vector<1x128xf32> to vector<4x128xf32>
      %125 = arith.addf %123, %124 : vector<4x128xf32>
      %126 = vector.extract_strided_slice %125 {offsets = [0, 0], sizes = [4, 96], strides = [1, 1]} : vector<4x128xf32> to vector<4x96xf32>
      %127 = arith.negf %126 : vector<4x96xf32>
      %128 = math.exp %127 : vector<4x96xf32>
      %cst_84 = arith.constant 1.000000e+00 : f32
      %129 = vector.broadcast %cst_84 : f32 to vector<4x96xf32>
      %130 = arith.addf %129, %128 : vector<4x96xf32>
      %131 = arith.divf %129, %130 : vector<4x96xf32>
      %132 = vector.extract_strided_slice %131 {offsets = [0, 0], sizes = [4, 32], strides = [1, 1]} : vector<4x96xf32> to vector<4x32xf32>
      %133 = vector.extract_strided_slice %131 {offsets = [0, 32], sizes = [4, 32], strides = [1, 1]} : vector<4x96xf32> to vector<4x32xf32>
      %134 = vector.extract_strided_slice %131 {offsets = [0, 64], sizes = [4, 32], strides = [1, 1]} : vector<4x96xf32> to vector<4x32xf32>
      %135 = vector.extract_strided_slice %125 {offsets = [0, 96], sizes = [4, 32], strides = [1, 1]} : vector<4x128xf32> to vector<4x32xf32>
      %136 = math.tanh %135 : vector<4x32xf32>
      %137 = arith.mulf %133, %121 : vector<4x32xf32>
      %138 = arith.mulf %132, %136 : vector<4x32xf32>
      %139 = arith.addf %137, %138 : vector<4x32xf32>
      %140 = math.tanh %139 : vector<4x32xf32>
      %141 = arith.mulf %134, %140 : vector<4x32xf32>
      %c1_85 = arith.constant 1 : index
      %c0_86 = arith.constant 0 : index
      %c0_87 = arith.constant 0 : index
      %142 = vector.load %arg19[%c1_85, %c0_86, %c0_87] : memref<2x4x32xf32, #tpu.memory_space<vmem>>, vector<1x4x32xf32>
      %143 = vector.shape_cast %142 : vector<1x4x32xf32> to vector<4x32xf32>
      %144 = vector.shape_cast %141 : vector<4x32xf32> to vector<1x4x32xf32>
      tpu.vector_store %arg19[%c1_85, %c0_86, %c0_87], %144 {strides = array<i32>} : memref<2x4x32xf32, #tpu.memory_space<vmem>>, vector<1x4x32xf32>,
      %c1_88 = arith.constant 1 : index
      %c0_89 = arith.constant 0 : index
      %c0_90 = arith.constant 0 : index
      %145 = vector.load %arg20[%c1_88, %c0_89, %c0_90] : memref<2x4x32xf32, #tpu.memory_space<vmem>>, vector<1x4x32xf32>
      %146 = vector.shape_cast %145 : vector<1x4x32xf32> to vector<4x32xf32>
      %147 = vector.shape_cast %139 : vector<4x32xf32> to vector<1x4x32xf32>
      tpu.vector_store %arg20[%c1_88, %c0_89, %c0_90], %147 {strides = array<i32>} : memref<2x4x32xf32, #tpu.memory_space<vmem>>, vector<1x4x32xf32>,
      %c0_91 = arith.constant 0 : index
      %c7_92 = arith.constant 7 : index
      %c0_93 = arith.constant 0 : index
      %148 = vector.load %arg22[%c0_91, %c7_92, %c0_93] : memref<4x8x32xf32, #tpu.memory_space<vmem>>, vector<4x1x32xf32>
      %149 = vector.shape_cast %148 : vector<4x1x32xf32> to vector<4x32xf32>
      %150 = vector.shape_cast %141 : vector<4x32xf32> to vector<4x1x32xf32>
      tpu.vector_store %arg22[%c0_91, %c7_92, %c0_93], %150 {strides = array<i32>} : memref<4x8x32xf32, #tpu.memory_space<vmem>>, vector<4x1x32xf32>,
    } else {
    }
    %c0_32 = arith.constant 0 : index
    %c0_33 = arith.constant 0 : index
    %c0_34 = arith.constant 0 : index
    %48 = vector.load %arg22[%c0_32, %c0_33, %c0_34] : memref<4x8x32xf32, #tpu.memory_space<vmem>>, vector<4x8x32xf32>
    %49 = vector.shape_cast %48 : vector<4x8x32xf32> to vector<32x32xf32>
    %c0_35 = arith.constant 0 : index
    %c0_36 = arith.constant 0 : index
    %50 = vector.load %arg11[%c0_35, %c0_36] : memref<32x32xf32, #tpu.memory_space<vmem>>, vector<32x32xf32>
    %cst_37 = arith.constant dense<0.000000e+00> : vector<32x32xf32>
    %51 = tpu.matmul %49, %50, %cst_37 {dimension_numbers = #tpu.dot_dimension_numbers<[1], [0], [0], [1], [0, 0, 1, 1], [], []>} : vector<32x32xf32>, vector<32x32xf32>, vector<32x32xf32> -> vector<32x32xf32>
    %c0_38 = arith.constant 0 : index
    %c0_39 = arith.constant 0 : index
    %52 = vector.load %arg12[%c0_38, %c0_39] : memref<1x32xf32, #tpu.memory_space<vmem>>, vector<1x32xf32>
    %53 = vector.broadcast %52 : vector<1x32xf32> to vector<32x32xf32>
    %54 = arith.addf %51, %53 : vector<32x32xf32>
    %55 = vector.shape_cast %54 : vector<32x32xf32> to vector<4x8x32xf32>
    %c0_40 = arith.constant 0 : index
    %c0_41 = arith.constant 0 : index
    %c0_42 = arith.constant 0 : index
    %56 = vector.load %arg3[%c0_40, %c0_41, %c0_42] : memref<4x128x32xf32, #tpu.memory_space<vmem>>, vector<4x128x32xf32>
    "tpu.trace_start"() <{level = 10 : i32, message = "bth,bsh->bts"}> : () -> ()
    %cst_43 = arith.constant dense<0.000000e+00> : vector<4x8x128xf32>
    %57 = tpu.matmul %55, %56, %cst_43 {dimension_numbers = #tpu.dot_dimension_numbers<[2], [2], [1], [1], [0, 0, 0, 1, 1, 1], [0], [0]>} : vector<4x8x32xf32>, vector<4x128x32xf32>, vector<4x8x128xf32> -> vector<4x8x128xf32>
    "tpu.trace_stop"() : () -> ()
    %58 = tpu.iota {dimensions = array<i32: 2>} : vector<4x8x128xi32>
    %c8_i32_44 = arith.constant 8 : i32
    %59 = vector.broadcast %c8_i32_44 : i32 to vector<4x8x128xi32>
    %60 = arith.cmpi slt, %58, %59 : vector<4x8x128xi32>
    %cst_45 = arith.constant -1.000000e+30 : f32
    %61 = vector.broadcast %cst_45 : f32 to vector<4x8x128xf32>
    %62 = arith.select %60, %57, %61 : vector<4x8x128xi1>, vector<4x8x128xf32>
    %cst_46 = arith.constant dense<0xFF800000> : vector<4x8xf32>
    %63 = vector.multi_reduction <maximumf>, %62, %cst_46 [2] : vector<4x8x128xf32> to vector<4x8xf32>
    %64 = vector.shape_cast %63 : vector<4x8xf32> to vector<4x8x1xf32>
    %65 = vector.broadcast %64 : vector<4x8x1xf32> to vector<4x8x128xf32>
    %66 = arith.subf %62, %65 : vector<4x8x128xf32>
    %67 = math.exp %66 : vector<4x8x128xf32>
    %cst_47 = arith.constant dense<0.000000e+00> : vector<4x8xf32>
    %68 = vector.multi_reduction <add>, %67, %cst_47 [2] : vector<4x8x128xf32> to vector<4x8xf32>
    %69 = vector.shape_cast %68 : vector<4x8xf32> to vector<4x8x1xf32>
    %70 = tpu.reciprocal %69 : vector<4x8x1xf32> -> vector<4x8x1xf32>
    %71 = vector.broadcast %70 : vector<4x8x1xf32> to vector<4x8x128xf32>
    %72 = arith.mulf %67, %71 : vector<4x8x128xf32>
    "tpu.trace_start"() <{level = 10 : i32, message = "bts,bsh->bth"}> : () -> ()
    %cst_48 = arith.constant dense<0.000000e+00> : vector<4x8x32xf32>
    %73 = tpu.matmul %72, %56, %cst_48 {dimension_numbers = #tpu.dot_dimension_numbers<[2], [1], [1], [2], [0, 0, 0, 1, 1, 2], [0], [0]>} : vector<4x8x128xf32>, vector<4x128x32xf32>, vector<4x8x32xf32> -> vector<4x8x32xf32>
    "tpu.trace_stop"() : () -> ()
    %74 = vector.shape_cast %73 : vector<4x8x32xf32> to vector<32x32xf32>
    %75 = tpu.concatenate %74, %49 in 1 : vector<32x32xf32>, vector<32x32xf32> -> vector<32x64xf32>
    %c0_49 = arith.constant 0 : index
    %c0_50 = arith.constant 0 : index
    %76 = vector.load %arg13[%c0_49, %c0_50] : memref<64x128xf32, #tpu.memory_space<vmem>>, vector<64x128xf32>
    %cst_51 = arith.constant dense<0.000000e+00> : vector<32x128xf32>
    %77 = tpu.matmul %75, %76, %cst_51 {dimension_numbers = #tpu.dot_dimension_numbers<[1], [0], [0], [1], [0, 0, 1, 1], [], []>} : vector<32x64xf32>, vector<64x128xf32>, vector<32x128xf32> -> vector<32x128xf32>
    %c0_52 = arith.constant 0 : index
    %c0_53 = arith.constant 0 : index
    %78 = vector.load %arg14[%c0_52, %c0_53] : memref<1x128xf32, #tpu.memory_space<vmem>>, vector<1x128xf32>
    %79 = vector.broadcast %78 : vector<1x128xf32> to vector<32x128xf32>
    %80 = arith.addf %77, %79 : vector<32x128xf32>
    %81 = math.tanh %80 : vector<32x128xf32>
    %82 = vector.shape_cast %81 : vector<32x128xf32> to vector<4x8x128xf32>
    %c0_54 = arith.constant 0 : index
    %c0_55 = arith.constant 0 : index
    %c0_56 = arith.constant 0 : index
    %83 = vector.load %arg15[%c0_54, %c0_55, %c0_56] : memref<4x8x128xf32, #tpu.memory_space<vmem>>, vector<4x8x128xf32>
    tpu.vector_store %arg15[%c0_54, %c0_55, %c0_56], %82 {strides = array<i32>} : memref<4x8x128xf32, #tpu.memory_space<vmem>>, vector<4x8x128xf32>,
    %c0_57 = arith.constant 0 : index
    %c0_58 = arith.constant 0 : index
    %c0_59 = arith.constant 0 : index
    %84 = vector.load %arg16[%c0_57, %c0_58, %c0_59] : memref<4x8x128xf32, #tpu.memory_space<vmem>>, vector<4x8x128xf32>
    tpu.vector_store %arg16[%c0_57, %c0_58, %c0_59], %72 {strides = array<i32>} : memref<4x8x128xf32, #tpu.memory_space<vmem>>, vector<4x8x128xf32>,
    %c1_i32_60 = arith.constant 1 : i32
    %85 = arith.cmpi eq, %arg1, %c1_i32_60 : i32
    %86 = arith.extui %85 : i1 to i32
    %c0_i32_61 = arith.constant 0 : i32
    %87 = arith.cmpi ne, %86, %c0_i32_61 : i32
    scf.if %87 {
      %c0_62 = arith.constant 0 : index
      %c0_63 = arith.constant 0 : index
      %c0_64 = arith.constant 0 : index
      %88 = vector.load %arg19[%c0_62, %c0_63, %c0_64] : memref<2x4x32xf32, #tpu.memory_space<vmem>>, vector<2x4x32xf32>
      %c0_65 = arith.constant 0 : index
      %c0_66 = arith.constant 0 : index
      %c0_67 = arith.constant 0 : index
      %89 = vector.load %arg17[%c0_65, %c0_66, %c0_67] : memref<2x4x32xf32, #tpu.memory_space<vmem>>, vector<2x4x32xf32>
      tpu.vector_store %arg17[%c0_65, %c0_66, %c0_67], %88 {strides = array<i32>} : memref<2x4x32xf32, #tpu.memory_space<vmem>>, vector<2x4x32xf32>,
      %c0_68 = arith.constant 0 : index
      %c0_69 = arith.constant 0 : index
      %c0_70 = arith.constant 0 : index
      %90 = vector.load %arg20[%c0_68, %c0_69, %c0_70] : memref<2x4x32xf32, #tpu.memory_space<vmem>>, vector<2x4x32xf32>
      %c0_71 = arith.constant 0 : index
      %c0_72 = arith.constant 0 : index
      %c0_73 = arith.constant 0 : index
      %91 = vector.load %arg18[%c0_71, %c0_72, %c0_73] : memref<2x4x32xf32, #tpu.memory_space<vmem>>, vector<2x4x32xf32>
      tpu.vector_store %arg18[%c0_71, %c0_72, %c0_73], %90 {strides = array<i32>} : memref<2x4x32xf32, #tpu.memory_space<vmem>>, vector<2x4x32xf32>,
    } else {
    }
    return
  }
  func.func @transform_0(%arg0: i32, %arg1: i32) -> (i32, i32, i32) {
    %c0_i32 = arith.constant 0 : i32
    %c0_i32_0 = arith.constant 0 : i32
    return %arg0, %arg1, %c0_i32 : i32, i32, i32
  }
  func.func @transform_1(%arg0: i32, %arg1: i32) -> (i32, i32, i32) {
    %c0_i32 = arith.constant 0 : i32
    %c0_i32_0 = arith.constant 0 : i32
    %c0_i32_1 = arith.constant 0 : i32
    return %arg0, %c0_i32, %c0_i32_0 : i32, i32, i32
  }
  func.func @transform_2(%arg0: i32, %arg1: i32) -> (i32, i32, i32) {
    %c0_i32 = arith.constant 0 : i32
    %c0_i32_0 = arith.constant 0 : i32
    %c0_i32_1 = arith.constant 0 : i32
    return %c0_i32, %arg0, %c0_i32_0 : i32, i32, i32
  }
  func.func @transform_3(%arg0: i32, %arg1: i32) -> (i32, i32, i32) {
    %c0_i32 = arith.constant 0 : i32
    %c0_i32_0 = arith.constant 0 : i32
    %c0_i32_1 = arith.constant 0 : i32
    return %c0_i32, %arg0, %c0_i32_0 : i32, i32, i32
  }
  func.func @transform_4(%arg0: i32, %arg1: i32) -> (i32, i32) {
    %c0_i32 = arith.constant 0 : i32
    %c0_i32_0 = arith.constant 0 : i32
    %c0_i32_1 = arith.constant 0 : i32
    return %c0_i32, %c0_i32_0 : i32, i32
  }
  func.func @transform_5(%arg0: i32, %arg1: i32) -> (i32, i32) {
    %c0_i32 = arith.constant 0 : i32
    %c0_i32_0 = arith.constant 0 : i32
    %c0_i32_1 = arith.constant 0 : i32
    return %c0_i32, %c0_i32_0 : i32, i32
  }
  func.func @transform_6(%arg0: i32, %arg1: i32) -> (i32, i32) {
    %c0_i32 = arith.constant 0 : i32
    %c0_i32_0 = arith.constant 0 : i32
    %c0_i32_1 = arith.constant 0 : i32
    return %c0_i32, %c0_i32_0 : i32, i32
  }
  func.func @transform_7(%arg0: i32, %arg1: i32) -> (i32, i32) {
    %c0_i32 = arith.constant 0 : i32
    %c0_i32_0 = arith.constant 0 : i32
    %c0_i32_1 = arith.constant 0 : i32
    return %c0_i32, %c0_i32_0 : i32, i32
  }
  func.func @transform_8(%arg0: i32, %arg1: i32) -> (i32, i32) {
    %c0_i32 = arith.constant 0 : i32
    %c0_i32_0 = arith.constant 0 : i32
    %c0_i32_1 = arith.constant 0 : i32
    return %c0_i32, %c0_i32_0 : i32, i32
  }
  func.func @transform_9(%arg0: i32, %arg1: i32) -> (i32, i32) {
    %c0_i32 = arith.constant 0 : i32
    %c0_i32_0 = arith.constant 0 : i32
    %c0_i32_1 = arith.constant 0 : i32
    return %c0_i32, %c0_i32_0 : i32, i32
  }
  func.func @transform_10(%arg0: i32, %arg1: i32) -> (i32, i32) {
    %c0_i32 = arith.constant 0 : i32
    %c0_i32_0 = arith.constant 0 : i32
    %c0_i32_1 = arith.constant 0 : i32
    return %c0_i32, %c0_i32_0 : i32, i32
  }
  func.func @transform_11(%arg0: i32, %arg1: i32) -> (i32, i32) {
    %c0_i32 = arith.constant 0 : i32
    %c0_i32_0 = arith.constant 0 : i32
    %c0_i32_1 = arith.constant 0 : i32
    return %c0_i32, %c0_i32_0 : i32, i32
  }
  func.func @transform_12(%arg0: i32, %arg1: i32) -> (i32, i32) {
    %c0_i32 = arith.constant 0 : i32
    %c0_i32_0 = arith.constant 0 : i32
    %c0_i32_1 = arith.constant 0 : i32
    return %c0_i32, %c0_i32_0 : i32, i32
  }
  func.func @transform_13(%arg0: i32, %arg1: i32) -> (i32, i32, i32) {
    %c0_i32 = arith.constant 0 : i32
    %c0_i32_0 = arith.constant 0 : i32
    return %arg0, %arg1, %c0_i32 : i32, i32, i32
  }
  func.func @transform_14(%arg0: i32, %arg1: i32) -> (i32, i32, i32) {
    %c0_i32 = arith.constant 0 : i32
    %c0_i32_0 = arith.constant 0 : i32
    return %arg0, %arg1, %c0_i32 : i32, i32, i32
  }
  func.func @transform_15(%arg0: i32, %arg1: i32) -> (i32, i32, i32) {
    %c0_i32 = arith.constant 0 : i32
    %c0_i32_0 = arith.constant 0 : i32
    %c0_i32_1 = arith.constant 0 : i32
    return %c0_i32, %arg0, %c0_i32_0 : i32, i32, i32
  }
  func.func @transform_16(%arg0: i32, %arg1: i32) -> (i32, i32, i32) {
    %c0_i32 = arith.constant 0 : i32
    %c0_i32_0 = arith.constant 0 : i32
    %c0_i32_1 = arith.constant 0 : i32
    return %c0_i32, %arg0, %c0_i32_0 : i32, i32, i32
  }
}

</mosaic_0001>

<bundles_post_ra>
// kernel: tpu_custom_call.1
= control target key start
LH: loop header
LB: loop body
LE: loop exit
PB: predicated region body
PF: predicated region fallthrough
CT: control target
= control target key end

     0   :  { %s9361_s0 = inlined_call_operand.vmem [shape: f32[4,16,16], index: 0, kind: input, shape index: {}]   ;;  %s9362_s1 = inlined_call_operand.vmem [shape: f32[4,128,32], index: 1, kind: input, shape index: {}]   ;;  %s9363_s2 = inlined_call_operand.vmem [shape: f32[2,4,32], index: 2, kind: input, shape index: {}]   ;;  %s9364_s3 = inlined_call_operand.vmem [shape: f32[2,4,32], index: 3, kind: input, shape index: {}]   ;;  %s9365_s4 = inlined_call_operand.vmem [shape: f32[16,128], index: 4, kind: input, shape index: {}]   ;;  %s9366_s5 = inlined_call_operand.vmem [shape: f32[1,128], index: 5, kind: input, shape index: {}]   ;;  %s9367_s6 = inlined_call_operand.vmem [shape: f32[32,128], index: 6, kind: input, shape index: {}]   ;;  %s9368_s7 = inlined_call_operand.vmem [shape: f32[64,128], index: 7, kind: input, shape index: {}]   ;;  %s9369_s8 = inlined_call_operand.vmem [shape: f32[1,128], index: 8, kind: input, shape index: {}]   ;;  %s9370_s9 = inlined_call_operand.vmem [shape: f32[32,32], index: 9, kind: input, shape index: {}]   ;;  %s9371_s10 = inlined_call_operand.vmem [shape: f32[1,32], index: 10, kind: input, shape index: {}]   ;;  %s9372_s11 = inlined_call_operand.vmem [shape: f32[64,128], index: 11, kind: input, shape index: {}]   ;;  %s9373_s12 = inlined_call_operand.vmem [shape: f32[1,128], index: 12, kind: input, shape index: {}]   ;;  %s9374_s13 = inlined_call_operand.hbm [shape: f32[4,16,128], index: 13, kind: output, shape index: {0}]   ;;  %s9375_s14 = inlined_call_operand.hbm [shape: f32[4,16,128], index: 14, kind: output, shape index: {1}]   ;;  %s9376_s15 = inlined_call_operand.hbm [shape: f32[2,4,32], index: 15, kind: output, shape index: {2}]   ;;  %s9377_s16 = inlined_call_operand.hbm [shape: f32[2,4,32], index: 16, kind: output, shape index: {3}]  }
   0x1   :  { %9391 = sst [smem:[#allocation25_spill]] %s9361_s0 }
   0x2   :  { %9392 = sst [smem:[#allocation26_spill]] %s9362_s1 }
   0x3   :  { %9393 = sst [smem:[#allocation27_spill]] %s9363_s2 }
   0x4   :  { %9394 = sst [smem:[#allocation28_spill]] %s9364_s3 }
   0x5   :  { %9395 = sst [smem:[#allocation29_spill]] %s9376_s15 }
   0x6   :  { %9396 = sst [smem:[#allocation30_spill]] %s9377_s16 }
   0x7   :  { %22 = vsyncpa [#allocation8], 0 }
   0x8   :  { %24 = vsyncpa [#allocation8 + $0x1], 0 }
   0x9   :  { %25 = vsyncpa [#allocation10], 0 }
   0xa   :  { %27 = vsyncpa [#allocation10 + $0x1], 0 }
   0xb   :  { %28 = vsyncpa [#allocation13], 0  ;;  %s7817_s21 = smov 0   ;;  %s7819_s22 = smov 0  }
   0xc   :  { %s7821_s23 = smov 0   ;;  %s7823_s24 = smov 0  }
   0xd   :  { %s7825_s25 = smov 0   ;;  %s7827_s26 = smov 0  }
   0xe LB: > { %9397 = sst [smem:[#allocation18_spill]] %s7641_s21  ;;  %s9378_s27 = sadd.s32 4294967295, %s7661_s26   ;;  %s7661_s26 = sphi %s7827_s26, %s34_s26   ;;  %s7657_s25 = sphi %s7825_s25, %s9425_s25   ;;  %s7653_s24 = sphi %s7823_s24, %s9424_s24   ;;  %s7649_s23 = sphi %s7821_s23, %s9423_s23   ;;  %s7645_s22 = sphi %s7819_s22, %s9427_s22   ;;  %s7641_s21 = sphi %s7817_s21, %s9426_s21  }
   0xf   : > { %9398 = sst [smem:[#allocation19_spill]] %s7649_s23  ;;  %s9382_s28 = sadd.s32 4294967294, %s7661_s26  }
  0x10   : > { %9399 = sst [smem:[#allocation20_spill]] %s7657_s25  ;;  %s43_s29 = sadd.s32 1, %s7657_s25 }
  0x11   : > { %s55_s30 = sadd.s32 1, %s7649_s23  ;;  %p44_p0 = scmp.ge.s32.totalorder %s43_s29, 2 }
  0x12   : > { %p62_p1 = scmp.ne.s32.totalorder %s7649_s23, %s7645_s22  ;;  %p63_p2 = scmp.eq.s32.totalorder %s7661_s26, 0 }
  0x13   : > { %p7856_p3 = scmp.eq.s32.totalorder %s9378_s27, 1  ;;  %s9429_s29 = smov (%p44_p0, %s43_s29), 0 }
  0x14   : > { %9402 = sst [smem:[#allocation22_spill]] %s9429_s29  ;;  %p64_p4 = por %p63_p2, %p62_p1 }
  0x15   : > { %s9400_s0 = scalar_select %p7856_p3, 1, 0 }
  0x16   : > { %p7864_p5 = por %p7856_p3, %p62_p1  ;;  %s51_s18 = ssub.s32 %s7657_s25, %s9429_s29 }
  0x17   : > { %9401 = sst [smem:[#allocation21_spill]] %s9400_s0  ;;  %p366_p6 = scmp.ne.s32.totalorder %s7645_s22, %s7641_s21 }
  0x18   : > { %p53_p7 = scmp.eq.s32.totalorder %s51_s18, 0  ;;  %p367_p8 = scmp.eq.s32.totalorder %s9382_s28, 1 }
  0x19   : > { %p5603_p10 = scmp.ge.s32.totalorder %s7661_s26, 2 }
  0x1a   : > { %s7875_s19 = scalar_select %p53_p7, %s7649_s23, %s55_s30  }
  0x1b   : > { %p7877_p9 = por %p367_p8, %p366_p6  ;;  %514 = sbr.rel (%p5603_p10) target bundleno = 46 (0x2e), region = 64 }
  0x1c   : > { %9404 = sst [smem:[#allocation23_spill]] %s7875_s19 }
  0x1d   : > { %s9405_s20 = scalar_select %p7877_p9, 1, 0 }
  0x1f   : > { %9406 = sst [smem:[#allocation24_spill]] %s9405_s20 }
  0x22   : > { %517 = sbr.rel (!%p64_p4) target bundleno = 46 (0x2e), region = 68  ;;  %s519_s27 = sand.u32 (%p64_p4), 1, %s7649_s23  }
  0x23   : > { %s5605_s29 = sshll.u32 (%p64_p4), %s7657_s25, 3  ;;  %s5604_s21 = sshll.u32 (%p64_p4), %s519_s27, 5 }
  0x24   : > { %s9407_s28 = sld [smem:[#allocation25_spill]] (%p64_p4)  ;;  %s521_s19 = scalar_lea.vmem (%p64_p4), [#allocation6], %s5604_s21 }
  0x2a   : > { %s526_s30 = scalar_lea.vmem %s9407_s28, %s5605_s29 }
  0x2b   : > { %v560_v0 = vld [vmem:[%s526_s30] sm:$0xff]  ;;  %v562_v1 = vld [vmem:[%s526_s30 + $0x10] sm:$0xff] }
  0x2c   : > { %v564_v2 = vld [vmem:[%s526_s30 + $0x20] sm:$0xff]  ;;  %561 = vst [vmem:[%s521_s19] sm:$0xff] %v560_v0  ;;  %563 = vst [vmem:[%s521_s19 + $0x8] sm:$0xff] %v562_v1  ;;  %v566_v3 = vld [vmem:[%s526_s30 + $0x30] sm:$0xff] }
  0x2d   : > { %565 = vst [vmem:[%s521_s19 + $0x10] sm:$0xff] %v564_v2  ;;  %567 = vst [vmem:[%s521_s19 + $0x18] sm:$0xff] %v566_v3 }
  0x2e PF: > { %p5606_p11 = scmp.ge.s32.totalorder %s7661_s26, 1  ;;  %p572_p12 = scmp.lt.s32.totalorder %s7661_s26, 3 }
  0x30   : > { %p573_p13 = pnand %p5606_p11, %p572_p12 }
  0x31   : > { %s9385_s16 = sand.u32 (!%p573_p13), 1, %s7645_s22   ;;  %s7893_s27 = sshll.u32 (!%p573_p13), %s7653_s24, 3 }
  0x32   : > { %576 = sbr.rel (%p573_p13) target bundleno = 13185 (0x3381), region = 106  ;;  %s5607_s21 = sshll.u32 (!%p573_p13), %s9385_s16, 5 }
  0x33   : > { %s581_s28 = scalar_lea.vmem (!%p573_p13), [#allocation6], %s5607_s21  ;;  %s7897_s29 = scalar_lea.vmem (!%p573_p13), [#allocation7], %s5607_s21 }
  0x34   : > { %s7899_s19 = scalar_lea.vmem (!%p573_p13), [#allocation9], %s5607_s21  ;;  %p5611_p0 = scmp.ne.s32.totalorder (!%p573_p13), %s7653_s24, 0 }
  0x39   : > { %669 = sbr.rel (%p5611_p0) target bundleno = 67 (0x43), region = 114  ;;  %s9408_s2 = sld [smem:[#allocation27_spill]] (!%p5611_p0)  ;;  %vm672_vm0 = vcmask (!%p5611_p0), 257024  }
  0x3a   : > { %s9409_s3 = sld [smem:[#allocation28_spill]] (!%p5611_p0) }
  0x3f   : > { %v670_v4 = vld [vmem:[%s9408_s2] sm:$0xf] (!%p5611_p0)  ;;  %v671_v5 = vld [vmem:[%s9408_s2 + $0x4] sm:$0xf] (!%p5611_p0) }
  0x40   : > { %673 = vst.msk [vmem:[#allocation2] sm:$0xf] %vm672_vm0, %v670_v4  ;;  %674 = vst.msk [vmem:[#allocation2 + $0x4] sm:$0xf] %vm672_vm0, %v671_v5  ;;  %v675_v6 = vld [vmem:[%s9409_s3] sm:$0xf] }
  0x41   : > { %v676_v7 = vld [vmem:[%s9409_s3 + $0x4] sm:$0xf]  ;;  %677 = vst.msk [vmem:[#allocation3] sm:$0xf] %vm672_vm0, %v675_v6 }
  0x42   : > { %678 = vst.msk [vmem:[#allocation3 + $0x4] sm:$0xf] %vm672_vm0, %v676_v7 }
  0x43 PF: > { %v683_v8 = vld [vmem:[%s9365_s4] sm:$0xff]  ;;  %v684_v9 = vld [vmem:[%s9365_s4 + $0x8] sm:$0xff]  ;;  %v679_v10 = vld [vmem:[%s581_s28] sm:$0xff]  ;;  %vm692_vm1 = vcmask 130048   ;;  %p5617_p1 = scmp.ge.s32.totalorder %s7893_s27, 12 }
  0x44   : > { %v6610_v11 = vpack.c.bf16 %v684_v9, %v683_v8  ;;  %6048 = vmatprep.mubr.msk.f32.mxu0 %vm692_vm1, %v679_v10  ;;  %v681_v12 = vld [vmem:[%s581_s28 + $0x10] sm:$0xff]  ;;  %v680_v13 = vld [vmem:[%s581_s28 + $0x8] sm:$0xff]  ;;  %v682_v14 = vld [vmem:[%s581_s28 + $0x18] sm:$0xff]  ;;  %v7663_v38 = vmov (!%p5617_p1), 0.0|0.0   ;;  %vm7664_vm2 = vmmov (!%p5617_p1), 0   ;;  %v7665_v40 = vmov (!%p5617_p1), 0.0  }
  0x45   : > { %6051 = vmatprep.mubr.msk.f32.mxu1 %vm692_vm1, %v681_v12  ;;  %v7923_v15 = vld [vmem:[%s9367_s6] sm:$0xff]  ;;  %v7928_v16 = vld [vmem:[%s9367_s6 + $0x8] sm:$0xff]  ;;  %v7933_v17 = vld [vmem:[%s9367_s6 + $0x10] sm:$0xff]  ;;  %vm817_vm3 = vcmask (!%p5617_p1), 261120   ;;  %s7666_s28 = smov (!%p5617_p1), 32   ;;  %vm1020_vm4 = vcmask (!%p5617_p1), 1041409  }
  0x46   : > { %6611 = vmatprep.subr.bf16.mxu0 %v6610_v11  ;;  %7006 = vmatprep.subr.bf16.mxu1 %v6610_v11  ;;  %v7938_v18 = vld [vmem:[%s9367_s6 + $0x18] sm:$0xff]  ;;  %v7943_v19 = vld [vmem:[%s9368_s7] sm:$0xff]  ;;  %v7948_v20 = vld [vmem:[%s9368_s7 + $0x8] sm:$0xff]  ;;  %v6615_v37 = vpack.c.bf16 (!%p5617_p1), %v7928_v16, %v7923_v15  ;;  %vm1023_vm5 = vcmask (!%p5617_p1), 1042434   ;;  %vm1026_vm6 = vcmask (!%p5617_p1), 1043459   ;;  %s7667_s23 = smov (!%p5617_p1), 64  }
  0x47   : > { %6613 = vmatpush3.bf16.msra.mxu0 %v6610_v11  ;;  %7007 = vmatpush3.bf16.msra.mxu1 %v6610_v11  ;;  %v7953_v21 = vld [vmem:[%s9368_s7 + $0x10] sm:$0xff]  ;;  %v7958_v22 = vld [vmem:[%s9368_s7 + $0x18] sm:$0xff]  ;;  %v7963_v23 = vld [vmem:[%s9368_s7 + $0x20] sm:$0xff]  ;;  %v6618_v39 = vpack.c.bf16 (!%p5617_p1), %v7938_v18, %v7933_v17  ;;  %vm1031_vm7 = vcmask (!%p5617_p1), 257024   ;;  %vm1062_vm8 = vcmask (!%p5617_p1), 523264   ;;  %s7668_s15 = smov (!%p5617_p1), 96  }
  0x48   : > { %v7968_v24 = vld [vmem:[%s9368_s7 + $0x28] sm:$0xff]  ;;  %v7973_v25 = vld [vmem:[%s9368_s7 + $0x30] sm:$0xff]  ;;  %v7978_v26 = vld [vmem:[%s9368_s7 + $0x38] sm:$0xff]  ;;  %6614 = vmatprep.subr.bf16.mxu0 (!%p5617_p1), %v7663_v38  ;;  %6620 = vmatprep.subr.bf16.mxu1 (!%p5617_p1), %v7663_v38  ;;  %vm1226_vm9 = vcmask (!%p5617_p1), 253952  }
  0x49   : > { %v7983_v27 = vld [vmem:[%s9369_s8] sm:$0x1]  ;;  %v812_v57 = vld [vmem:[#allocation3] sm:$0xf] (!%p5617_p1) }
  0x4a   : > { %6049 = vmatmul.mubr.msk.f32.vlgmr.msra.gmra.mrb[0].mxu0 %vm692_vm1, %v680_v13  ;;  %6052 = vmatmul.mubr.msk.f32.vlgmr.msra.gmra.mrb[0].mxu1 %vm692_vm1, %v682_v14  ;;  %v5612_v28 = vld [vmem:[%s9366_s5] ss:$0 sm:$0xff]  ;;  %v932_v60 = vrot.slane (!%p5617_p1), %v812_v57, 1  ;;  %v933_v61 = vrot.slane (!%p5617_p1), %v812_v57, 2  ;;  %v934_v62 = vrot.slane (!%p5617_p1), %v812_v57, 3 }
  0x4b   : > { %6616 = vmatpush3.bf16.msra.mxu0 (!%p5617_p1), %v6615_v37  ;;  %6062 = vmatprep.mubr.msk.f32.mxu0 (!%p5617_p1), %vm7664_vm2, %v7665_v40  ;;  %v811_v41 = vld [vmem:[#allocation2] sm:$0xf] (!%p5617_p1) }
  0x4c   : > { %6617 = vmatprep.subr.bf16.mxu0 (!%p5617_p1), %v7663_v38  ;;  %6081 = vmatprep.mubr.msk.f32.mxu1 (!%p5617_p1), %vm7664_vm2, %v7665_v40 }
  0x4f   : > { %6619 = vmatpush3.bf16.msra.mxu0 (!%p5617_p1), %v6618_v39 }
 0x11b   : > { %810 = sbr.rel (%p5617_p1) target bundleno = 1717 (0x6b5), region = 118 }
 0x11d   : > { %v6050_v29 = vpop.f32.mrb[0].mxu0  ;;  %v6053_v30 = vpop.f32.mrb[0].mxu1 }
 0x11e   : > { %v777_v31 = vadd.f32 %v6050_v29, %v5612_v28  ;;  %v787_v32 = vadd.f32 %v6053_v30, %v5612_v28  ;;  %v771_v33 = vpop.f32.mrb[1].mxu0  ;;  %v781_v34 = vpop.f32.mrb[1].mxu1  ;;  %6063 = vmatmul.mubr.msk.f32.vlgmr.msra.gmra.mrb[0].mxu0 (!%p5617_p1), %vm817_vm3, %v811_v41 }
 0x11f   : > { %v772_v35 = vadd.f32 %v5612_v28, %v771_v33  ;;  %v782_v36 = vadd.f32 %v5612_v28, %v781_v34 }
 0x120   : > { %791 = vst [vmem:[#allocation4 + $0x8] sm:$0xff] %v777_v31  ;;  %793 = vst [vmem:[#allocation4 + $0x18] sm:$0xff] %v787_v32 }
 0x121   : > { %790 = vst [vmem:[#allocation4] sm:$0xff] %v772_v35  ;;  %792 = vst [vmem:[#allocation4 + $0x10] sm:$0xff] %v782_v36 }
 0x127   : > { %v814_v43 = vld [vmem:[#allocation4 + $0x8] sm:$0x1]  ;;  %v816_v52 = vld [vmem:[#allocation4 + $0x18] sm:$0x1] }
 0x128   : > { %v813_v42 = vld [vmem:[#allocation4] sm:$0x1]  ;;  %v815_v49 = vld [vmem:[#allocation4 + $0x10] sm:$0x1] }
 0x1f1   : > { %v887_v44 = vpop.f32.mrb[0].mxu0 }
 0x1f2   : > { %v892_v45 = vrot.slane %v887_v44, 1  ;;  %v899_v46 = vadd.f32 %v887_v44, %v813_v42  ;;  %v6064_v47 = vpop.f32.mrb[1].mxu0  ;;  %v893_v48 = vrot.slane %v887_v44, 2  ;;  %v894_v50 = vrot.slane %v887_v44, 3 }
 0x1f4   : > { %v900_v51 = vadd.f32 %v892_v45, %v814_v43  ;;  %7147 = vtanh.f32 %v899_v46  ;;  %v901_v53 = vadd.f32 %v893_v48, %v815_v49  ;;  %v902_v54 = vadd.f32 %v894_v50, %v816_v52 }
 0x1f5   : > { %v5619_v0 = vmul.f32 -1.442695, %v899_v46 }
 0x1f6   : > { %7149 = vtanh.f32 %v900_v51  ;;  %v5620_v63 = vmul.f32 -1.442695, %v900_v51  ;;  %v5621_v1 = vmul.f32 -1.442695, %v901_v53  ;;  %v5622_v2 = vmul.f32 -1.442695, %v902_v54 }
 0x1f7   : > { %7151 = vtanh.f32 %v901_v53 }
 0x1f8   : > { %7153 = vtanh.f32 %v902_v54 }
 0x1f9   : > { %7155 = vpow2.f32 %v5620_v63 }
 0x1fa   : > { %7157 = vpow2.f32 %v5619_v0  ;;  %v6627_v0 = vpack.c.bf16 %v7968_v24, %v7963_v23 }
 0x1fb   : > { %7159 = vpow2.f32 %v5621_v1 }
 0x1fc   : > { %7161 = vpow2.f32 %v5622_v2  ;;  %v1048_v2 = vld [vmem:[#allocation2 + $0x4] sm:$0xf] }
 0x1fe   : > { %v7148_v55 = vpop.eup %7147 }
 0x1ff   : > { %955 = vrot.lane.b32.xlu1 %v7148_v55, %s7666_s28 }
 0x200   : > { %v7150_v56 = vpop.eup %7149 }
 0x201   : > { %957 = vrot.lane.b32.xlu0 %v7150_v56, %s7666_s28  ;;  %v7152_v58 = vpop.eup %7151 }
 0x202   : > { %v7154_v59 = vpop.eup %7153 }
 0x203   : > { %961 = vrot.lane.b32.xlu1 %v7154_v59, %s7666_s28  ;;  %v7156_v3 = vpop.eup %7155 }
 0x204   : > { %v7158_v4 = vpop.eup %7157  ;;  %v916_v5 = vadd.f32 1.0, %v7156_v3  ;;  %v6630_v3 = vpack.c.bf16 %v7978_v26, %v7973_v25 }
 0x205   : > { %959 = vrot.lane.b32.xlu0 %v7152_v58, %s7666_s28  ;;  %v7160_v6 = vpop.eup %7159  ;;  %v915_v7 = vadd.f32 1.0, %v7158_v4 }
 0x206   : > { %v917_v8 = vadd.f32 1.0, %v7160_v6  ;;  %7163 = vrcp.f32 %v916_v5  ;;  %v7162_v9 = vpop.eup %7161  ;;  %v1050_v5 = vld [vmem:[#allocation3 + $0x4] sm:$0xf] }
 0x207   : > { %939 = vrot.lane.b32.xlu1 %v933_v61, %s7666_s28  ;;  %7165 = vrcp.f32 %v915_v7  ;;  %v918_v10 = vadd.f32 1.0, %v7162_v9  ;;  %v6624_v61 = vpack.c.bf16 %v7958_v22, %v7953_v21 }
 0x208   : > { %7167 = vrcp.f32 %v917_v8 }
 0x209   : > { %937 = vrot.lane.b32.xlu0 %v932_v60, %s7666_s28  ;;  %7169 = vrcp.f32 %v918_v10  ;;  %v6621_v60 = vpack.c.bf16 %v7948_v20, %v7943_v19 }
 0x20b   : > { %941 = vrot.lane.b32.xlu1 %v934_v62, %s7666_s28  ;;  %6622 = vmatpush3.bf16.msra.mxu1 %v6621_v60 }
 0x20c   : > { %6623 = vmatprep.subr.bf16.mxu1 %v7663_v38 }
 0x20d   : > { %935 = vrot.lane.b32.xlu0 %v812_v57, %s7666_s28 }
 0x20f   : > { %6625 = vmatpush3.bf16.msra.mxu1 %v6624_v61 }
 0x210   : > { %v8005_v11 = vpop.eup %7163  ;;  %6626 = vmatprep.subr.bf16.mxu1 %v7663_v38 }
 0x211   : > { %v8008_v28 = vpop.eup %7165 }
 0x212   : > { %v8011_v29 = vpop.eup %7167 }
 0x213   : > { %v8017_v34 = vpop.eup %7169  ;;  %6628 = vmatpush3.bf16.msra.mxu1 %v6627_v0 }
 0x214   : > { %6629 = vmatprep.subr.bf16.mxu1 %v7663_v38 }
 0x217   : > { %6631 = vmatpush3.bf16.msra.mxu1 %v6630_v3 }
 0x271   : > { %v956_v12 = vpop.permute.xlu1 %955 }
 0x272   : > { %v967_v31 = vmul.f32 %v8008_v28, %v956_v12 }
 0x273   : > { %v958_v13 = vpop.permute.xlu0 %957 }
 0x274   : > { %v968_v14 = vmul.f32 %v8005_v11, %v958_v13 }
 0x275   : > { %v962_v33 = vpop.permute.xlu1 %961 }
 0x276   : > { %977 = vrot.lane.b32.xlu0 %v968_v14, %s7666_s28  ;;  %v970_v35 = vmul.f32 %v8017_v34, %v962_v33 }
 0x277   : > { %v960_v30 = vpop.permute.xlu0 %959 }
 0x278   : > { %v969_v32 = vmul.f32 %v8011_v29, %v960_v30 }
 0x279   : > { %v940_v37 = vpop.permute.xlu1 %939 }
 0x27a   : > { %979 = vrot.lane.b32.xlu1 %v969_v32, %s7666_s28  ;;  %975 = vrot.lane.b32.xlu0 %v967_v31, %s7666_s28  ;;  %v949_v44 = vmul.f32 %v8011_v29, %v940_v37 }
 0x27b   : > { %v938_v36 = vpop.permute.xlu0 %937 }
 0x27c   : > { %v948_v40 = vmul.f32 %v8005_v11, %v938_v36 }
 0x27d   : > { %v942_v41 = vpop.permute.xlu1 %941 }
 0x27e   : > { %981 = vrot.lane.b32.xlu1 %v970_v35, %s7666_s28  ;;  %v950_v51 = vmul.f32 %v8017_v34, %v942_v41  ;;  %v1057_v35 = vlaneseq }
 0x27f   : > { %v936_v39 = vpop.permute.xlu0 %935 }
 0x280   : > { %v947_v45 = vmul.f32 %v8008_v28, %v936_v39  ;;  %v1058_v36 = vshrl.u32 %v1057_v35, 7 }
 0x2e8   : > { %v978_v42 = vpop.permute.xlu0 %977 }
 0x2e9   : > { %v988_v43 = vadd.f32 %v978_v42, %v948_v40 }
 0x2eb   : > { %7171 = vtanh.f32 %v988_v43  ;;  %v1037_v48 = vrot.slane %v988_v43, 7 }
 0x2ec   : > { %v980_v46 = vpop.permute.xlu1 %979  ;;  %v976_v47 = vpop.permute.xlu0 %975 }
 0x2ed   : > { %v989_v49 = vadd.f32 %v980_v46, %v949_v44  ;;  %v987_v50 = vadd.f32 %v976_v47, %v947_v45 }
 0x2ef   : > { %7173 = vtanh.f32 %v989_v49  ;;  %v1039_v52 = vrot.slane %v989_v49, 6  ;;  %v1038_v53 = vsel %vm1020_vm4, %v1037_v48, %v987_v50 }
 0x2f0   : > { %7175 = vtanh.f32 %v987_v50  ;;  %v982_v54 = vpop.permute.xlu1 %981 }
 0x2f1   : > { %v990_v55 = vadd.f32 %v982_v54, %v950_v51  ;;  %v1040_v56 = vsel %vm1023_vm5, %v1039_v52, %v1038_v53 }
 0x2f3   : > { %7177 = vtanh.f32 %v990_v55  ;;  %v1041_v57 = vrot.slane %v990_v55, 5 }
 0x2f5   : > { %v7172_v58 = vpop.eup %7171  ;;  %v8028_v59 = vsel %vm1026_vm6, %v1041_v57, %v1040_v56  ;;  %v7669_v56 = vmov 1966171168  }
 0x2f6   : > { %1001 = vrot.lane.b32.xlu0 %v7172_v58, %s7666_s28  ;;  %v1175_v57 = vunpack.c.l.s4 %v7669_v56 }
 0x2f8   : > { %v1176_v58 = vunpack.c.0.s8 %v1175_v57 }
 0x2f9   : > { %v7174_v62 = vpop.eup %7173 }
 0x2fa   : > { %v7176_v63 = vpop.eup %7175  ;;  %1003 = vrot.lane.b32.xlu1 %v7174_v62, %s7666_s28  ;;  %v1179_v60 = vsub.s32 %v1176_v58, %v1058_v36 }
 0x2fb   : > { %999 = vrot.lane.b32.xlu0 %v7176_v63, %s7666_s28 }
 0x2fd   : > { %v7178_v1 = vpop.eup %7177 }
 0x2fe   : > { %1005 = vrot.lane.b32.xlu1 %v7178_v1, %s7666_s28 }
 0x302   : > { %1052 = vrot.lane.b32.xlu1 %v1048_v2, %s7666_s28 }
 0x306   : > { %1144 = vrot.lane.b32.xlu1 %v1050_v5, %s7666_s28 }
 0x368   : > { %v1002_v4 = vpop.permute.xlu0 %1001 }
 0x369   : > { %v1012_v6 = vmul.f32 %v8005_v11, %v1002_v4 }
 0x36b   : > { %v1019_v12 = vrot.slane %v1012_v6, 7 }
 0x36c   : > { %v1004_v7 = vpop.permute.xlu1 %1003 }
 0x36d   : > { %v1013_v8 = vmul.f32 %v8011_v29, %v1004_v7  ;;  %v1000_v9 = vpop.permute.xlu0 %999 }
 0x36e   : > { %v1011_v10 = vmul.f32 %v8008_v28, %v1000_v9 }
 0x36f   : > { %v1022_v13 = vrot.slane %v1013_v8, 6 }
 0x370   : > { %v1006_v14 = vpop.permute.xlu1 %1005  ;;  %v1021_v38 = vsel %vm1020_vm4, %v1019_v12, %v1011_v10 }
 0x371   : > { %v1014_v30 = vmul.f32 %v8017_v34, %v1006_v14  ;;  %v1024_v32 = vsel %vm1023_vm5, %v1022_v13, %v1021_v38  ;;  %v1059_v34 = vsub.s32 0, %v1058_v36 }
 0x373   : > { %v1025_v31 = vrot.slane %v1014_v30, 5  ;;  %v1060_v37 = vrot.slane %v7983_v27, %v1059_v34 }
 0x374   : > { %v1053_v33 = vpop.permute.xlu1 %1052 }
 0x375   : > { %v1027_v11 = vsel %vm1026_vm6, %v1025_v31, %v1024_v32 }
 0x376   : > { %1028 = vrot.lane.b32.xlu0 %v1027_v11, %s7667_s23 }
 0x378   : > { %v1145_v49 = vpop.permute.xlu1 %1144 }
 0x3e8   : > { %v1029_v29 = vpop.permute.xlu0 %1028 }
 0x3e9   : > { %1032 = vst.msk [vmem:[#allocation2] sm:$0xf] %vm1031_vm7, %v1029_v29  ;;  %v1055_v28 = vsel %vm817_vm3, %v1029_v29, %v1053_v33 }
 0x3ea   : > { %6082 = vmatmul.mubr.msk.f32.vlgmr.msra.gmra.mrb[0].mxu1 %vm1062_vm8, %v1055_v28 }
 0x4bd   : > { %v1132_v39 = vpop.f32.mrb[0].mxu1 }
 0x4be   : > { %v1133_v40 = vadd.f32 %v1132_v39, %v1060_v37  ;;  %v6083_v41 = vpop.f32.mrb[1].mxu1 }
 0x4c0   : > { %7179 = vtanh.f32 %v1133_v40  ;;  %v5624_v43 = vmul.f32 -1.442695, %v1133_v40 }
 0x4c2   : > { %7181 = vpow2.f32 %v5624_v43 }
 0x4ca   : > { %v7180_v42 = vpop.eup %7179 }
 0x4cb   : > { %1149 = vrot.lane.b32.xlu0 %v7180_v42, %s7666_s28 }
 0x4cc   : > { %v7182_v44 = vpop.eup %7181 }
 0x4cd   : > { %v1139_v45 = vadd.f32 1.0, %v7182_v44 }
 0x4cf   : > { %7183 = vrcp.f32 %v1139_v45 }
 0x4d9   : > { %v7184_v46 = vpop.eup %7183 }
 0x4da   : > { %v1147_v50 = vmul.f32 %v7184_v46, %v1145_v49 }
 0x53d   : > { %v1150_v47 = vpop.permute.xlu0 %1149 }
 0x53e   : > { %v1152_v48 = vmul.f32 %v7184_v46, %v1150_v47 }
 0x540   : > { %1154 = vrot.lane.b32.xlu0 %v1152_v48, %s7666_s28 }
 0x544   : > { %1043 = vrot.lane.b32.xlu0 %v8028_v59, %s7668_s15 }
 0x5b2   : > { %v1155_v51 = vpop.permute.xlu0 %1154 }
 0x5b3   : > { %v1157_v52 = vadd.f32 %v1155_v51, %v1147_v50 }
 0x5b5   : > { %7185 = vtanh.f32 %v1157_v52  ;;  %1170 = vrot.lane.b32.xlu0 %v1157_v52, %s7668_s15 }
 0x5b6   : > { %v1044_v53 = vpop.permute.xlu0 %1043 }
 0x5b7   : > { %1046 = vst.msk [vmem:[#allocation3] sm:$0xf] %vm1031_vm7, %v1044_v53 }
 0x5bf   : > { %v7186_v54 = vpop.eup %7185 }
 0x5c0   : > { %1160 = vrot.lane.b32.xlu1 %v7186_v54, %s7666_s28 }
 0x627   : > { %v1171_v55 = vpop.permute.xlu0 %1170 }
 0x628   : > { %1173 = vst.msk [vmem:[#allocation3 + $0x4] sm:$0xf] %vm1031_vm7, %v1171_v55 }
 0x632   : > { %v1161_v59 = vpop.permute.xlu1 %1160 }
 0x633   : > { %v1163_v61 = vmul.f32 %v7184_v46, %v1161_v59 }
 0x635   : > { %v1180_v62 = vrot.slane %v1163_v61, %v1179_v60  ;;  %1165 = vrot.lane.b32.xlu1 %v1163_v61, %s7667_s23 }
 0x637   : > { %v1181_v63 = vcombine.high %v1180_v62, %v1180_v62  ;;  %v1188_v0 = vrot.slane %v1180_v62, %v1179_v60 }
 0x639   : > { %v1201_v1 = vrot.slane %v1188_v0, %v1059_v34  ;;  %v1195_v2 = vrot.slane %v1181_v63, %v1179_v60  ;;  %v1196_v3 = vcombine.high %v1188_v0, %v1188_v0 }
 0x63b   : > { %1214 = vrot.lane.b32.xlu1 %v1201_v1, %s7667_s23  ;;  %v1205_v4 = vrot.slane %v1195_v2, %v1059_v34  ;;  %v1197_v5 = vcombine.high %v1195_v2, %v1195_v2  ;;  %v1209_v6 = vrot.slane %v1196_v3, %v1059_v34 }
 0x63d   : > { %1216 = vrot.lane.b32.xlu0 %v1205_v4, %s7667_s23  ;;  %v1213_v7 = vrot.slane %v1197_v5, %v1059_v34 }
 0x63f   : > { %1218 = vrot.lane.b32.xlu1 %v1209_v6, %s7667_s23 }
 0x641   : > { %1220 = vrot.lane.b32.xlu0 %v1213_v7, %s7667_s23 }
 0x6a7   : > { %v1166_v8 = vpop.permute.xlu1 %1165 }
 0x6a8   : > { %1168 = vst.msk [vmem:[#allocation2 + $0x4] sm:$0xf] %vm1031_vm7, %v1166_v8 }
 0x6ad   : > { %v1215_v9 = vpop.permute.xlu1 %1214 }
 0x6ae   : > { %1227 = vst.msk [vmem:[#allocation5] sm:$0x1] %vm1226_vm9, %v1215_v9 }
 0x6af   : > { %v1217_v10 = vpop.permute.xlu0 %1216 }
 0x6b0   : > { %1228 = vst.msk [vmem:[#allocation5 + $0x8] sm:$0x1] %vm1226_vm9, %v1217_v10 }
 0x6b1   : > { %v1219_v12 = vpop.permute.xlu1 %1218 }
 0x6b2   : > { %1229 = vst.msk [vmem:[#allocation5 + $0x10] sm:$0x1] %vm1226_vm9, %v1219_v12 }
 0x6b3   : > { %v1221_v13 = vpop.permute.xlu0 %1220 }
 0x6b4   : > { %1230 = vst.msk [vmem:[#allocation5 + $0x18] sm:$0x1] %vm1226_vm9, %v1221_v13 }
 0x6b5 PF: > { %s1231_s25 = sadd.s32 1, %s7893_s27 }
 0x6b6   : > { %p5625_p2 = scmp.ge.s32.totalorder %s1231_s25, 12 }
 0x6b7   : > { %v6633_v14 = vpack.c.bf16 (!%p5625_p2), %v7928_v16, %v7923_v15  ;;  %v7670_v38 = vmov (!%p5625_p2), 0.0|0.0   ;;  %v6636_v30 = vpack.c.bf16 (!%p5625_p2), %v7938_v18, %v7933_v17  ;;  %vm7671_vm10 = vmmov (!%p5625_p2), 0   ;;  %v1236_v32 = vld [vmem:[#allocation2] sm:$0xf] (!%p5625_p2)  ;;  %s7673_s0 = smov (!%p5625_p2), 32   ;;  %s7674_s20 = smov (!%p5625_p2), 64  }
 0x6b8   : > { %1235 = sbr.rel (%p5625_p2) target bundleno = 3159 (0xc57), region = 122  ;;  %6632 = vmatprep.subr.bf16.mxu0 (!%p5625_p2), %v7670_v38  ;;  %6638 = vmatprep.subr.bf16.mxu1 (!%p5625_p2), %v7670_v38  ;;  %v7672_v31 = vmov (!%p5625_p2), 0.0   ;;  %vm1242_vm11 = vcmask (!%p5625_p2), 261120   ;;  %v1237_v46 = vld [vmem:[#allocation3] sm:$0xf] (!%p5625_p2)  ;;  %vm1445_vm12 = vcmask (!%p5625_p2), 1041409  }
 0x6b9   : > { %6634 = vmatpush3.bf16.msra.mxu0 (!%p5625_p2), %v6633_v14  ;;  %6092 = vmatprep.mubr.msk.f32.mxu0 (!%p5625_p2), %vm7671_vm10, %v7672_v31  ;;  %v1357_v49 = vrot.slane (!%p5625_p2), %v1237_v46, 1  ;;  %v1358_v50 = vrot.slane (!%p5625_p2), %v1237_v46, 2  ;;  %v1359_v51 = vrot.slane (!%p5625_p2), %v1237_v46, 3  ;;  %vm1448_vm13 = vcmask (!%p5625_p2), 1042434   ;;  %s7675_s16 = smov (!%p5625_p2), 96  }
 0x6ba   : > { %6635 = vmatprep.subr.bf16.mxu0 (!%p5625_p2), %v7670_v38  ;;  %6111 = vmatprep.mubr.msk.f32.mxu1 (!%p5625_p2), %vm7671_vm10, %v7672_v31  ;;  %v1239_v33 = vld [vmem:[#allocation4 + $0x9] sm:$0x1] (!%p5625_p2)  ;;  %v1241_v41 = vld [vmem:[#allocation4 + $0x19] sm:$0x1] (!%p5625_p2)  ;;  %vm1451_vm14 = vcmask (!%p5625_p2), 1043459   ;;  %vm1456_vm15 = vcmask (!%p5625_p2), 257024  }
 0x6bb   : > { %v1238_v11 = vld [vmem:[#allocation4 + $0x1] sm:$0x1] (!%p5625_p2)  ;;  %v1240_v37 = vld [vmem:[#allocation4 + $0x11] sm:$0x1] (!%p5625_p2)  ;;  %vm1487_vm0 = vcmask (!%p5625_p2), 523264   ;;  %vm1651_vm1 = vcmask (!%p5625_p2), 253952  }
 0x6bd   : > { %6637 = vmatpush3.bf16.msra.mxu0 (!%p5625_p2), %v6636_v30 }
 0x6c0   : > { %6093 = vmatmul.mubr.msk.f32.vlgmr.msra.gmra.mrb[0].mxu0 %vm1242_vm11, %v1236_v32 }
 0x793   : > { %v1312_v29 = vpop.f32.mrb[0].mxu0 }
 0x794   : > { %v1317_v28 = vrot.slane %v1312_v29, 1  ;;  %v1324_v35 = vadd.f32 %v1312_v29, %v1238_v11  ;;  %v6094_v36 = vpop.f32.mrb[1].mxu0  ;;  %v1318_v34 = vrot.slane %v1312_v29, 2  ;;  %v1319_v39 = vrot.slane %v1312_v29, 3 }
 0x796   : > { %v1325_v40 = vadd.f32 %v1317_v28, %v1239_v33  ;;  %7187 = vtanh.f32 %v1324_v35  ;;  %v1326_v42 = vadd.f32 %v1318_v34, %v1240_v37  ;;  %v1327_v43 = vadd.f32 %v1319_v39, %v1241_v41 }
 0x797   : > { %v5627_v53 = vmul.f32 -1.442695, %v1324_v35 }
 0x798   : > { %7189 = vtanh.f32 %v1325_v40  ;;  %v5628_v52 = vmul.f32 -1.442695, %v1325_v40  ;;  %v5629_v54 = vmul.f32 -1.442695, %v1326_v42  ;;  %v5630_v55 = vmul.f32 -1.442695, %v1327_v43 }
 0x799   : > { %7191 = vtanh.f32 %v1326_v42 }
 0x79a   : > { %7193 = vtanh.f32 %v1327_v43 }
 0x79b   : > { %7195 = vpow2.f32 %v5628_v52 }
 0x79c   : > { %7197 = vpow2.f32 %v5627_v53  ;;  %v6645_v53 = vpack.c.bf16 %v7968_v24, %v7963_v23 }
 0x79d   : > { %7199 = vpow2.f32 %v5629_v54 }
 0x79e   : > { %7201 = vpow2.f32 %v5630_v55  ;;  %v1473_v55 = vld [vmem:[#allocation2 + $0x4] sm:$0xf] }
 0x7a0   : > { %v7188_v44 = vpop.eup %7187 }
 0x7a1   : > { %1380 = vrot.lane.b32.xlu1 %v7188_v44, %s7673_s0 }
 0x7a2   : > { %v7190_v45 = vpop.eup %7189 }
 0x7a3   : > { %1382 = vrot.lane.b32.xlu0 %v7190_v45, %s7673_s0  ;;  %v7192_v47 = vpop.eup %7191 }
 0x7a4   : > { %v7194_v48 = vpop.eup %7193 }
 0x7a5   : > { %1386 = vrot.lane.b32.xlu1 %v7194_v48, %s7673_s0  ;;  %v7196_v56 = vpop.eup %7195 }
 0x7a6   : > { %v7198_v57 = vpop.eup %7197  ;;  %v1341_v58 = vadd.f32 1.0, %v7196_v56  ;;  %v6648_v56 = vpack.c.bf16 %v7978_v26, %v7973_v25 }
 0x7a7   : > { %1384 = vrot.lane.b32.xlu0 %v7192_v47, %s7673_s0  ;;  %v7200_v60 = vpop.eup %7199  ;;  %v1340_v59 = vadd.f32 1.0, %v7198_v57 }
 0x7a8   : > { %v1342_v61 = vadd.f32 1.0, %v7200_v60  ;;  %7203 = vrcp.f32 %v1341_v58  ;;  %v7202_v62 = vpop.eup %7201  ;;  %v1475_v58 = vld [vmem:[#allocation3 + $0x4] sm:$0xf] }
 0x7a9   : > { %1364 = vrot.lane.b32.xlu1 %v1358_v50, %s7673_s0  ;;  %7205 = vrcp.f32 %v1340_v59  ;;  %v1343_v63 = vadd.f32 1.0, %v7202_v62  ;;  %v6642_v50 = vpack.c.bf16 %v7958_v22, %v7953_v21 }
 0x7aa   : > { %7207 = vrcp.f32 %v1342_v61 }
 0x7ab   : > { %1362 = vrot.lane.b32.xlu0 %v1357_v49, %s7673_s0  ;;  %7209 = vrcp.f32 %v1343_v63  ;;  %v6639_v49 = vpack.c.bf16 %v7948_v20, %v7943_v19 }
 0x7ad   : > { %1366 = vrot.lane.b32.xlu1 %v1359_v51, %s7673_s0  ;;  %6640 = vmatpush3.bf16.msra.mxu1 %v6639_v49 }
 0x7ae   : > { %6641 = vmatprep.subr.bf16.mxu1 %v7670_v38 }
 0x7af   : > { %1360 = vrot.lane.b32.xlu0 %v1237_v46, %s7673_s0 }
 0x7b1   : > { %6643 = vmatpush3.bf16.msra.mxu1 %v6642_v50 }
 0x7b2   : > { %v8087_v0 = vpop.eup %7203  ;;  %6644 = vmatprep.subr.bf16.mxu1 %v7670_v38 }
 0x7b3   : > { %v8090_v4 = vpop.eup %7205 }
 0x7b4   : > { %v8093_v5 = vpop.eup %7207 }
 0x7b5   : > { %v8099_v10 = vpop.eup %7209  ;;  %6646 = vmatpush3.bf16.msra.mxu1 %v6645_v53 }
 0x7b6   : > { %6647 = vmatprep.subr.bf16.mxu1 %v7670_v38 }
 0x7b9   : > { %6649 = vmatpush3.bf16.msra.mxu1 %v6648_v56 }
 0x813   : > { %v1381_v1 = vpop.permute.xlu1 %1380 }
 0x814   : > { %v1392_v7 = vmul.f32 %v8090_v4, %v1381_v1 }
 0x815   : > { %v1383_v2 = vpop.permute.xlu0 %1382 }
 0x816   : > { %v1393_v3 = vmul.f32 %v8087_v0, %v1383_v2 }
 0x817   : > { %v1387_v9 = vpop.permute.xlu1 %1386 }
 0x818   : > { %1402 = vrot.lane.b32.xlu0 %v1393_v3, %s7673_s0  ;;  %v1395_v12 = vmul.f32 %v8099_v10, %v1387_v9 }
 0x819   : > { %v1385_v6 = vpop.permute.xlu0 %1384 }
 0x81a   : > { %v1394_v8 = vmul.f32 %v8093_v5, %v1385_v6 }
 0x81b   : > { %v1365_v14 = vpop.permute.xlu1 %1364 }
 0x81c   : > { %1404 = vrot.lane.b32.xlu1 %v1394_v8, %s7673_s0  ;;  %1400 = vrot.lane.b32.xlu0 %v1392_v7, %s7673_s0  ;;  %v1374_v29 = vmul.f32 %v8093_v5, %v1365_v14 }
 0x81d   : > { %v1363_v13 = vpop.permute.xlu0 %1362 }
 0x81e   : > { %v1373_v31 = vmul.f32 %v8087_v0, %v1363_v13 }
 0x81f   : > { %v1367_v32 = vpop.permute.xlu1 %1366 }
 0x820   : > { %1406 = vrot.lane.b32.xlu1 %v1395_v12, %s7673_s0  ;;  %v1375_v40 = vmul.f32 %v8099_v10, %v1367_v32  ;;  %v1482_v12 = vlaneseq }
 0x821   : > { %v1361_v30 = vpop.permute.xlu0 %1360 }
 0x822   : > { %v1372_v28 = vmul.f32 %v8090_v4, %v1361_v30  ;;  %v1483_v13 = vshrl.u32 %v1482_v12, 7 }
 0x88a   : > { %v1403_v11 = vpop.permute.xlu0 %1402 }
 0x88b   : > { %v1413_v33 = vadd.f32 %v1403_v11, %v1373_v31 }
 0x88d   : > { %7211 = vtanh.f32 %v1413_v33  ;;  %v1462_v34 = vrot.slane %v1413_v33, 7 }
 0x88e   : > { %v1405_v35 = vpop.permute.xlu1 %1404  ;;  %v1401_v36 = vpop.permute.xlu0 %1400 }
 0x88f   : > { %v1414_v37 = vadd.f32 %v1405_v35, %v1374_v29  ;;  %v1412_v39 = vadd.f32 %v1401_v36, %v1372_v28 }
 0x891   : > { %7213 = vtanh.f32 %v1414_v37  ;;  %v1464_v41 = vrot.slane %v1414_v37, 6  ;;  %v1463_v42 = vsel %vm1445_vm12, %v1462_v34, %v1412_v39 }
 0x892   : > { %7215 = vtanh.f32 %v1412_v39  ;;  %v1407_v43 = vpop.permute.xlu1 %1406 }
 0x893   : > { %v1415_v44 = vadd.f32 %v1407_v43, %v1375_v40  ;;  %v1465_v45 = vsel %vm1448_vm13, %v1464_v41, %v1463_v42 }
 0x895   : > { %7217 = vtanh.f32 %v1415_v44  ;;  %v1466_v46 = vrot.slane %v1415_v44, 5 }
 0x897   : > { %v7212_v47 = vpop.eup %7211  ;;  %v8110_v48 = vsel %vm1451_vm14, %v1466_v46, %v1465_v45  ;;  %v7676_v45 = vmov 1966171168  }
 0x898   : > { %1426 = vrot.lane.b32.xlu0 %v7212_v47, %s7673_s0  ;;  %v1600_v46 = vunpack.c.l.s4 %v7676_v45 }
 0x89a   : > { %v1601_v47 = vunpack.c.0.s8 %v1600_v46 }
 0x89b   : > { %v7214_v51 = vpop.eup %7213 }
 0x89c   : > { %v7216_v52 = vpop.eup %7215  ;;  %1428 = vrot.lane.b32.xlu1 %v7214_v51, %s7673_s0  ;;  %v1604_v49 = vsub.s32 %v1601_v47, %v1483_v13 }
 0x89d   : > { %1424 = vrot.lane.b32.xlu0 %v7216_v52, %s7673_s0 }
 0x89f   : > { %v7218_v54 = vpop.eup %7217 }
 0x8a0   : > { %1430 = vrot.lane.b32.xlu1 %v7218_v54, %s7673_s0 }
 0x8a4   : > { %1477 = vrot.lane.b32.xlu1 %v1473_v55, %s7673_s0 }
 0x8a8   : > { %1569 = vrot.lane.b32.xlu1 %v1475_v58, %s7673_s0 }
 0x90a   : > { %v1427_v57 = vpop.permute.xlu0 %1426 }
 0x90b   : > { %v1437_v60 = vmul.f32 %v8087_v0, %v1427_v57 }
 0x90d   : > { %v1444_v1 = vrot.slane %v1437_v60, 7 }
 0x90e   : > { %v1429_v59 = vpop.permute.xlu1 %1428 }
 0x90f   : > { %v1438_v61 = vmul.f32 %v8093_v5, %v1429_v59  ;;  %v1425_v62 = vpop.permute.xlu0 %1424 }
 0x910   : > { %v1436_v63 = vmul.f32 %v8090_v4, %v1425_v62 }
 0x911   : > { %v1447_v2 = vrot.slane %v1438_v61, 6 }
 0x912   : > { %v1431_v3 = vpop.permute.xlu1 %1430  ;;  %v1446_v38 = vsel %vm1445_vm12, %v1444_v1, %v1436_v63 }
 0x913   : > { %v1439_v6 = vmul.f32 %v8099_v10, %v1431_v3  ;;  %v1449_v8 = vsel %vm1448_vm13, %v1447_v2, %v1446_v38  ;;  %v1484_v10 = vsub.s32 0, %v1483_v13 }
 0x915   : > { %v1450_v7 = vrot.slane %v1439_v6, 5  ;;  %v1485_v14 = vrot.slane %v7983_v27, %v1484_v10 }
 0x916   : > { %v1478_v9 = vpop.permute.xlu1 %1477 }
 0x917   : > { %v1452_v0 = vsel %vm1451_vm14, %v1450_v7, %v1449_v8 }
 0x918   : > { %1453 = vrot.lane.b32.xlu0 %v1452_v0, %s7674_s20 }
 0x91a   : > { %v1570_v37 = vpop.permute.xlu1 %1569 }
 0x98a   : > { %v1454_v5 = vpop.permute.xlu0 %1453 }
 0x98b   : > { %1457 = vst.msk [vmem:[#allocation2] sm:$0xf] %vm1456_vm15, %v1454_v5  ;;  %v1480_v4 = vsel %vm1242_vm11, %v1454_v5, %v1478_v9 }
 0x98c   : > { %6112 = vmatmul.mubr.msk.f32.vlgmr.msra.gmra.mrb[0].mxu1 %vm1487_vm0, %v1480_v4 }
 0xa5f   : > { %v1557_v30 = vpop.f32.mrb[0].mxu1 }
 0xa60   : > { %v1558_v31 = vadd.f32 %v1557_v30, %v1485_v14  ;;  %v6113_v32 = vpop.f32.mrb[1].mxu1 }
 0xa62   : > { %7219 = vtanh.f32 %v1558_v31  ;;  %v5632_v33 = vmul.f32 -1.442695, %v1558_v31 }
 0xa64   : > { %7221 = vpow2.f32 %v5632_v33 }
 0xa6c   : > { %v7220_v11 = vpop.eup %7219 }
 0xa6d   : > { %1574 = vrot.lane.b32.xlu0 %v7220_v11, %s7673_s0 }
 0xa6e   : > { %v7222_v29 = vpop.eup %7221 }
 0xa6f   : > { %v1564_v28 = vadd.f32 1.0, %v7222_v29 }
 0xa71   : > { %7223 = vrcp.f32 %v1564_v28 }
 0xa7b   : > { %v7224_v35 = vpop.eup %7223 }
 0xa7c   : > { %v1572_v39 = vmul.f32 %v7224_v35, %v1570_v37 }
 0xadf   : > { %v1575_v36 = vpop.permute.xlu0 %1574 }
 0xae0   : > { %v1577_v34 = vmul.f32 %v7224_v35, %v1575_v36 }
 0xae2   : > { %1579 = vrot.lane.b32.xlu0 %v1577_v34, %s7673_s0 }
 0xae6   : > { %1468 = vrot.lane.b32.xlu0 %v8110_v48, %s7675_s16 }
 0xb54   : > { %v1580_v40 = vpop.permute.xlu0 %1579 }
 0xb55   : > { %v1582_v41 = vadd.f32 %v1580_v40, %v1572_v39 }
 0xb57   : > { %7225 = vtanh.f32 %v1582_v41  ;;  %1595 = vrot.lane.b32.xlu0 %v1582_v41, %s7675_s16 }
 0xb58   : > { %v1469_v42 = vpop.permute.xlu0 %1468 }
 0xb59   : > { %1471 = vst.msk [vmem:[#allocation3] sm:$0xf] %vm1456_vm15, %v1469_v42 }
 0xb61   : > { %v7226_v43 = vpop.eup %7225 }
 0xb62   : > { %1585 = vrot.lane.b32.xlu1 %v7226_v43, %s7673_s0 }
 0xbc9   : > { %v1596_v44 = vpop.permute.xlu0 %1595 }
 0xbca   : > { %1598 = vst.msk [vmem:[#allocation3 + $0x4] sm:$0xf] %vm1456_vm15, %v1596_v44 }
 0xbd4   : > { %v1586_v48 = vpop.permute.xlu1 %1585 }
 0xbd5   : > { %v1588_v50 = vmul.f32 %v7224_v35, %v1586_v48 }
 0xbd7   : > { %v1605_v51 = vrot.slane %v1588_v50, %v1604_v49  ;;  %1590 = vrot.lane.b32.xlu1 %v1588_v50, %s7674_s20 }
 0xbd9   : > { %v1606_v52 = vcombine.high %v1605_v51, %v1605_v51  ;;  %v1613_v53 = vrot.slane %v1605_v51, %v1604_v49 }
 0xbdb   : > { %v1626_v54 = vrot.slane %v1613_v53, %v1484_v10  ;;  %v1620_v55 = vrot.slane %v1606_v52, %v1604_v49  ;;  %v1621_v56 = vcombine.high %v1613_v53, %v1613_v53 }
 0xbdd   : > { %1639 = vrot.lane.b32.xlu1 %v1626_v54, %s7674_s20  ;;  %v1630_v57 = vrot.slane %v1620_v55, %v1484_v10  ;;  %v1622_v58 = vcombine.high %v1620_v55, %v1620_v55  ;;  %v1634_v60 = vrot.slane %v1621_v56, %v1484_v10 }
 0xbdf   : > { %1641 = vrot.lane.b32.xlu0 %v1630_v57, %s7674_s20  ;;  %v1638_v59 = vrot.slane %v1622_v58, %v1484_v10 }
 0xbe1   : > { %1643 = vrot.lane.b32.xlu1 %v1634_v60, %s7674_s20 }
 0xbe3   : > { %1645 = vrot.lane.b32.xlu0 %v1638_v59, %s7674_s20 }
 0xc49   : > { %v1591_v61 = vpop.permute.xlu1 %1590 }
 0xc4a   : > { %1593 = vst.msk [vmem:[#allocation2 + $0x4] sm:$0xf] %vm1456_vm15, %v1591_v61 }
 0xc4f   : > { %v1640_v62 = vpop.permute.xlu1 %1639 }
 0xc50   : > { %1652 = vst.msk [vmem:[#allocation5 + $0x1] sm:$0x1] %vm1651_vm1, %v1640_v62 }
 0xc51   : > { %v1642_v63 = vpop.permute.xlu0 %1641 }
 0xc52   : > { %1653 = vst.msk [vmem:[#allocation5 + $0x9] sm:$0x1] %vm1651_vm1, %v1642_v63 }
 0xc53   : > { %v1644_v1 = vpop.permute.xlu1 %1643 }
 0xc54   : > { %1654 = vst.msk [vmem:[#allocation5 + $0x11] sm:$0x1] %vm1651_vm1, %v1644_v1 }
 0xc55   : > { %v1646_v2 = vpop.permute.xlu0 %1645 }
 0xc56   : > { %1655 = vst.msk [vmem:[#allocation5 + $0x19] sm:$0x1] %vm1651_vm1, %v1646_v2 }
 0xc57 PF: > { %s1656_s21 = sadd.s32 2, %s7893_s27 }
 0xc58   : > { %p5633_p4 = scmp.ge.s32.totalorder %s1656_s21, 12 }
 0xc59   : > { %v6651_v3 = vpack.c.bf16 (!%p5633_p4), %v7928_v16, %v7923_v15  ;;  %v7677_v38 = vmov (!%p5633_p4), 0.0|0.0   ;;  %v6654_v6 = vpack.c.bf16 (!%p5633_p4), %v7938_v18, %v7933_v17  ;;  %vm7678_vm2 = vmmov (!%p5633_p4), 0   ;;  %v1661_v8 = vld [vmem:[#allocation2] sm:$0xf] (!%p5633_p4)  ;;  %v1663_v0 = vld [vmem:[#allocation4 + $0x2] sm:$0x1] (!%p5633_p4) }
 0xc5a   : > { %1660 = sbr.rel (%p5633_p4) target bundleno = 4601 (0x11f9), region = 126  ;;  %6650 = vmatprep.subr.bf16.mxu0 (!%p5633_p4), %v7677_v38  ;;  %6656 = vmatprep.subr.bf16.mxu1 (!%p5633_p4), %v7677_v38  ;;  %v7679_v7 = vmov (!%p5633_p4), 0.0   ;;  %vm1667_vm3 = vcmask (!%p5633_p4), 261120   ;;  %v1664_v9 = vld [vmem:[#allocation4 + $0xa] sm:$0x1] (!%p5633_p4)  ;;  %s7680_s18 = smov (!%p5633_p4), 32  }
 0xc5b   : > { %6652 = vmatpush3.bf16.msra.mxu0 (!%p5633_p4), %v6651_v3  ;;  %6122 = vmatprep.mubr.msk.f32.mxu0 (!%p5633_p4), %vm7678_vm2, %v7679_v7  ;;  %v1665_v14 = vld [vmem:[#allocation4 + $0x12] sm:$0x1] (!%p5633_p4)  ;;  %v1666_v32 = vld [vmem:[#allocation4 + $0x1a] sm:$0x1] (!%p5633_p4)  ;;  %vm1870_vm4 = vcmask (!%p5633_p4), 1041409   ;;  %vm1873_vm5 = vcmask (!%p5633_p4), 1042434  }
 0xc5c   : > { %6653 = vmatprep.subr.bf16.mxu0 (!%p5633_p4), %v7677_v38  ;;  %6141 = vmatprep.mubr.msk.f32.mxu1 (!%p5633_p4), %vm7678_vm2, %v7679_v7  ;;  %v1662_v35 = vld [vmem:[#allocation3] sm:$0xf] (!%p5633_p4)  ;;  %vm1876_vm6 = vcmask (!%p5633_p4), 1043459   ;;  %s7681_s30 = smov (!%p5633_p4), 64   ;;  %vm1881_vm7 = vcmask (!%p5633_p4), 257024   ;;  %vm1912_vm8 = vcmask (!%p5633_p4), 523264  }
 0xc5d   : > { %v1782_v37 = vrot.slane (!%p5633_p4), %v1662_v35, 1  ;;  %v1783_v39 = vrot.slane (!%p5633_p4), %v1662_v35, 2  ;;  %v1784_v40 = vrot.slane (!%p5633_p4), %v1662_v35, 3  ;;  %s7682_s28 = smov (!%p5633_p4), 96   ;;  %vm2076_vm9 = vcmask (!%p5633_p4), 253952  }
 0xc5f   : > { %6655 = vmatpush3.bf16.msra.mxu0 (!%p5633_p4), %v6654_v6 }
 0xc62   : > { %6123 = vmatmul.mubr.msk.f32.vlgmr.msra.gmra.mrb[0].mxu0 %vm1667_vm3, %v1661_v8 }
 0xd35   : > { %v1737_v5 = vpop.f32.mrb[0].mxu0 }
 0xd36   : > { %v1742_v4 = vrot.slane %v1737_v5, 1  ;;  %v1749_v12 = vadd.f32 %v1737_v5, %v1663_v0  ;;  %v6124_v13 = vpop.f32.mrb[1].mxu0  ;;  %v1743_v10 = vrot.slane %v1737_v5, 2  ;;  %v1744_v30 = vrot.slane %v1737_v5, 3 }
 0xd38   : > { %v1750_v31 = vadd.f32 %v1742_v4, %v1664_v9  ;;  %7227 = vtanh.f32 %v1749_v12  ;;  %v1751_v11 = vadd.f32 %v1743_v10, %v1665_v14  ;;  %v1752_v33 = vadd.f32 %v1744_v30, %v1666_v32 }
 0xd39   : > { %v5635_v42 = vmul.f32 -1.442695, %v1749_v12 }
 0xd3a   : > { %7229 = vtanh.f32 %v1750_v31  ;;  %v5636_v41 = vmul.f32 -1.442695, %v1750_v31  ;;  %v5637_v43 = vmul.f32 -1.442695, %v1751_v11  ;;  %v5638_v44 = vmul.f32 -1.442695, %v1752_v33 }
 0xd3b   : > { %7231 = vtanh.f32 %v1751_v11 }
 0xd3c   : > { %7233 = vtanh.f32 %v1752_v33 }
 0xd3d   : > { %7235 = vpow2.f32 %v5636_v41 }
 0xd3e   : > { %7237 = vpow2.f32 %v5635_v42  ;;  %v6663_v42 = vpack.c.bf16 %v7968_v24, %v7963_v23 }
 0xd3f   : > { %7239 = vpow2.f32 %v5637_v43 }
 0xd40   : > { %7241 = vpow2.f32 %v5638_v44  ;;  %v1898_v44 = vld [vmem:[#allocation2 + $0x4] sm:$0xf] }
 0xd42   : > { %v7228_v29 = vpop.eup %7227 }
 0xd43   : > { %1805 = vrot.lane.b32.xlu1 %v7228_v29, %s7680_s18 }
 0xd44   : > { %v7230_v28 = vpop.eup %7229 }
 0xd45   : > { %1807 = vrot.lane.b32.xlu0 %v7230_v28, %s7680_s18  ;;  %v7232_v36 = vpop.eup %7231 }
 0xd46   : > { %v7234_v34 = vpop.eup %7233 }
 0xd47   : > { %1811 = vrot.lane.b32.xlu1 %v7234_v34, %s7680_s18  ;;  %v7236_v45 = vpop.eup %7235 }
 0xd48   : > { %v7238_v46 = vpop.eup %7237  ;;  %v1766_v47 = vadd.f32 1.0, %v7236_v45  ;;  %v6666_v45 = vpack.c.bf16 %v7978_v26, %v7973_v25 }
 0xd49   : > { %1809 = vrot.lane.b32.xlu0 %v7232_v36, %s7680_s18  ;;  %v7240_v49 = vpop.eup %7239  ;;  %v1765_v48 = vadd.f32 1.0, %v7238_v46 }
 0xd4a   : > { %v1767_v50 = vadd.f32 1.0, %v7240_v49  ;;  %7243 = vrcp.f32 %v1766_v47  ;;  %v7242_v51 = vpop.eup %7241  ;;  %v1900_v47 = vld [vmem:[#allocation3 + $0x4] sm:$0xf] }
 0xd4b   : > { %1789 = vrot.lane.b32.xlu1 %v1783_v39, %s7680_s18  ;;  %7245 = vrcp.f32 %v1765_v48  ;;  %v1768_v52 = vadd.f32 1.0, %v7242_v51  ;;  %v6660_v39 = vpack.c.bf16 %v7958_v22, %v7953_v21 }
 0xd4c   : > { %7247 = vrcp.f32 %v1767_v50 }
 0xd4d   : > { %1787 = vrot.lane.b32.xlu0 %v1782_v37, %s7680_s18  ;;  %7249 = vrcp.f32 %v1768_v52  ;;  %v6657_v37 = vpack.c.bf16 %v7948_v20, %v7943_v19 }
 0xd4f   : > { %1791 = vrot.lane.b32.xlu1 %v1784_v40, %s7680_s18  ;;  %6658 = vmatpush3.bf16.msra.mxu1 %v6657_v37 }
 0xd50   : > { %6659 = vmatprep.subr.bf16.mxu1 %v7677_v38 }
 0xd51   : > { %1785 = vrot.lane.b32.xlu0 %v1662_v35, %s7680_s18 }
 0xd53   : > { %6661 = vmatpush3.bf16.msra.mxu1 %v6660_v39 }
 0xd54   : > { %v8169_v53 = vpop.eup %7243  ;;  %6662 = vmatprep.subr.bf16.mxu1 %v7677_v38 }
 0xd55   : > { %v8172_v57 = vpop.eup %7245 }
 0xd56   : > { %v8175_v58 = vpop.eup %7247 }
 0xd57   : > { %v8181_v63 = vpop.eup %7249  ;;  %6664 = vmatpush3.bf16.msra.mxu1 %v6663_v42 }
 0xd58   : > { %6665 = vmatprep.subr.bf16.mxu1 %v7677_v38 }
 0xd5b   : > { %6667 = vmatpush3.bf16.msra.mxu1 %v6666_v45 }
 0xdb5   : > { %v1806_v54 = vpop.permute.xlu1 %1805 }
 0xdb6   : > { %v1817_v59 = vmul.f32 %v8172_v57, %v1806_v54 }
 0xdb7   : > { %v1808_v55 = vpop.permute.xlu0 %1807 }
 0xdb8   : > { %v1818_v56 = vmul.f32 %v8169_v53, %v1808_v55 }
 0xdb9   : > { %v1812_v62 = vpop.permute.xlu1 %1811 }
 0xdba   : > { %1827 = vrot.lane.b32.xlu0 %v1818_v56, %s7680_s18  ;;  %v1820_v1 = vmul.f32 %v8181_v63, %v1812_v62 }
 0xdbb   : > { %v1810_v60 = vpop.permute.xlu0 %1809 }
 0xdbc   : > { %v1819_v61 = vmul.f32 %v8175_v58, %v1810_v60 }
 0xdbd   : > { %v1790_v3 = vpop.permute.xlu1 %1789 }
 0xdbe   : > { %1829 = vrot.lane.b32.xlu1 %v1819_v61, %s7680_s18  ;;  %1825 = vrot.lane.b32.xlu0 %v1817_v59, %s7680_s18  ;;  %v1799_v5 = vmul.f32 %v8175_v58, %v1790_v3 }
 0xdbf   : > { %v1788_v2 = vpop.permute.xlu0 %1787 }
 0xdc0   : > { %v1798_v7 = vmul.f32 %v8169_v53, %v1788_v2 }
 0xdc1   : > { %v1792_v8 = vpop.permute.xlu1 %1791 }
 0xdc2   : > { %1831 = vrot.lane.b32.xlu1 %v1820_v1, %s7680_s18  ;;  %v1800_v31 = vmul.f32 %v8181_v63, %v1792_v8  ;;  %v1907_v1 = vlaneseq }
 0xdc3   : > { %v1786_v6 = vpop.permute.xlu0 %1785 }
 0xdc4   : > { %v1797_v4 = vmul.f32 %v8172_v57, %v1786_v6  ;;  %v1908_v2 = vshrl.u32 %v1907_v1, 7 }
 0xe2c   : > { %v1828_v0 = vpop.permute.xlu0 %1827 }
 0xe2d   : > { %v1838_v9 = vadd.f32 %v1828_v0, %v1798_v7 }
 0xe2f   : > { %7251 = vtanh.f32 %v1838_v9  ;;  %v1887_v10 = vrot.slane %v1838_v9, 7 }
 0xe30   : > { %v1830_v12 = vpop.permute.xlu1 %1829  ;;  %v1826_v13 = vpop.permute.xlu0 %1825 }
 0xe31   : > { %v1839_v14 = vadd.f32 %v1830_v12, %v1799_v5  ;;  %v1837_v30 = vadd.f32 %v1826_v13, %v1797_v4 }
 0xe33   : > { %7253 = vtanh.f32 %v1839_v14  ;;  %v1889_v32 = vrot.slane %v1839_v14, 6  ;;  %v1888_v11 = vsel %vm1870_vm4, %v1887_v10, %v1837_v30 }
 0xe34   : > { %7255 = vtanh.f32 %v1837_v30  ;;  %v1832_v33 = vpop.permute.xlu1 %1831 }
 0xe35   : > { %v1840_v29 = vadd.f32 %v1832_v33, %v1800_v31  ;;  %v1890_v28 = vsel %vm1873_vm5, %v1889_v32, %v1888_v11 }
 0xe37   : > { %7257 = vtanh.f32 %v1840_v29  ;;  %v1891_v35 = vrot.slane %v1840_v29, 5 }
 0xe39   : > { %v7252_v36 = vpop.eup %7251  ;;  %v8192_v34 = vsel %vm1876_vm6, %v1891_v35, %v1890_v28  ;;  %v7683_v28 = vmov 1966171168  }
 0xe3a   : > { %1851 = vrot.lane.b32.xlu0 %v7252_v36, %s7680_s18  ;;  %v2025_v35 = vunpack.c.l.s4 %v7683_v28 }
 0xe3c   : > { %v2026_v36 = vunpack.c.0.s8 %v2025_v35 }
 0xe3d   : > { %v7254_v40 = vpop.eup %7253 }
 0xe3e   : > { %v7256_v41 = vpop.eup %7255  ;;  %1853 = vrot.lane.b32.xlu1 %v7254_v40, %s7680_s18  ;;  %v2029_v37 = vsub.s32 %v2026_v36, %v1908_v2 }
 0xe3f   : > { %1849 = vrot.lane.b32.xlu0 %v7256_v41, %s7680_s18 }
 0xe41   : > { %v7258_v43 = vpop.eup %7257 }
 0xe42   : > { %1855 = vrot.lane.b32.xlu1 %v7258_v43, %s7680_s18 }
 0xe46   : > { %1902 = vrot.lane.b32.xlu1 %v1898_v44, %s7680_s18 }
 0xe4a   : > { %1994 = vrot.lane.b32.xlu1 %v1900_v47, %s7680_s18 }
 0xeac   : > { %v1852_v46 = vpop.permute.xlu0 %1851 }
 0xead   : > { %v1862_v49 = vmul.f32 %v8169_v53, %v1852_v46 }
 0xeaf   : > { %v1869_v54 = vrot.slane %v1862_v49, 7 }
 0xeb0   : > { %v1854_v48 = vpop.permute.xlu1 %1853 }
 0xeb1   : > { %v1863_v50 = vmul.f32 %v8175_v58, %v1854_v48  ;;  %v1850_v51 = vpop.permute.xlu0 %1849 }
 0xeb2   : > { %v1861_v52 = vmul.f32 %v8172_v57, %v1850_v51 }
 0xeb3   : > { %v1872_v55 = vrot.slane %v1863_v50, 6 }
 0xeb4   : > { %v1856_v56 = vpop.permute.xlu1 %1855  ;;  %v1871_v38 = vsel %vm1870_vm4, %v1869_v54, %v1861_v52 }
 0xeb5   : > { %v1864_v60 = vmul.f32 %v8181_v63, %v1856_v56  ;;  %v1874_v61 = vsel %vm1873_vm5, %v1872_v55, %v1871_v38  ;;  %v1909_v63 = vsub.s32 0, %v1908_v2 }
 0xeb7   : > { %v1875_v59 = vrot.slane %v1864_v60, 5  ;;  %v1910_v3 = vrot.slane %v7983_v27, %v1909_v63 }
 0xeb8   : > { %v1903_v62 = vpop.permute.xlu1 %1902 }
 0xeb9   : > { %v1877_v53 = vsel %vm1876_vm6, %v1875_v59, %v1874_v61 }
 0xeba   : > { %1878 = vrot.lane.b32.xlu0 %v1877_v53, %s7681_s30 }
 0xebc   : > { %v1995_v14 = vpop.permute.xlu1 %1994 }
 0xf2c   : > { %v1879_v58 = vpop.permute.xlu0 %1878 }
 0xf2d   : > { %1882 = vst.msk [vmem:[#allocation2] sm:$0xf] %vm1881_vm7, %v1879_v58  ;;  %v1905_v57 = vsel %vm1667_vm3, %v1879_v58, %v1903_v62 }
 0xf2e   : > { %6142 = vmatmul.mubr.msk.f32.vlgmr.msra.gmra.mrb[0].mxu1 %vm1912_vm8, %v1905_v57 }
0x1001   : > { %v1982_v6 = vpop.f32.mrb[0].mxu1 }
0x1002   : > { %v1983_v7 = vadd.f32 %v1982_v6, %v1910_v3  ;;  %v6143_v8 = vpop.f32.mrb[1].mxu1 }
0x1004   : > { %7259 = vtanh.f32 %v1983_v7  ;;  %v5640_v9 = vmul.f32 -1.442695, %v1983_v7 }
0x1006   : > { %7261 = vpow2.f32 %v5640_v9 }
0x100e   : > { %v7260_v0 = vpop.eup %7259 }
0x100f   : > { %1999 = vrot.lane.b32.xlu0 %v7260_v0, %s7680_s18 }
0x1010   : > { %v7262_v5 = vpop.eup %7261 }
0x1011   : > { %v1989_v4 = vadd.f32 1.0, %v7262_v5 }
0x1013   : > { %7263 = vrcp.f32 %v1989_v4 }
0x101d   : > { %v7264_v12 = vpop.eup %7263 }
0x101e   : > { %v1997_v30 = vmul.f32 %v7264_v12, %v1995_v14 }
0x1081   : > { %v2000_v13 = vpop.permute.xlu0 %1999 }
0x1082   : > { %v2002_v10 = vmul.f32 %v7264_v12, %v2000_v13 }
0x1084   : > { %2004 = vrot.lane.b32.xlu0 %v2002_v10, %s7680_s18 }
0x1088   : > { %1893 = vrot.lane.b32.xlu0 %v8192_v34, %s7682_s28 }
0x10f6   : > { %v2005_v31 = vpop.permute.xlu0 %2004 }
0x10f7   : > { %v2007_v32 = vadd.f32 %v2005_v31, %v1997_v30 }
0x10f9   : > { %7265 = vtanh.f32 %v2007_v32  ;;  %2020 = vrot.lane.b32.xlu0 %v2007_v32, %s7682_s28 }
0x10fa   : > { %v1894_v11 = vpop.permute.xlu0 %1893 }
0x10fb   : > { %1896 = vst.msk [vmem:[#allocation3] sm:$0xf] %vm1881_vm7, %v1894_v11 }
0x1103   : > { %v7266_v33 = vpop.eup %7265 }
0x1104   : > { %2010 = vrot.lane.b32.xlu1 %v7266_v33, %s7680_s18 }
0x116b   : > { %v2021_v29 = vpop.permute.xlu0 %2020 }
0x116c   : > { %2023 = vst.msk [vmem:[#allocation3 + $0x4] sm:$0xf] %vm1881_vm7, %v2021_v29 }
0x1176   : > { %v2011_v34 = vpop.permute.xlu1 %2010 }
0x1177   : > { %v2013_v39 = vmul.f32 %v7264_v12, %v2011_v34 }
0x1179   : > { %v2030_v40 = vrot.slane %v2013_v39, %v2029_v37  ;;  %2015 = vrot.lane.b32.xlu1 %v2013_v39, %s7681_s30 }
0x117b   : > { %v2031_v41 = vcombine.high %v2030_v40, %v2030_v40  ;;  %v2038_v42 = vrot.slane %v2030_v40, %v2029_v37 }
0x117d   : > { %v2051_v43 = vrot.slane %v2038_v42, %v1909_v63  ;;  %v2045_v44 = vrot.slane %v2031_v41, %v2029_v37  ;;  %v2046_v45 = vcombine.high %v2038_v42, %v2038_v42 }
0x117f   : > { %2064 = vrot.lane.b32.xlu1 %v2051_v43, %s7681_s30  ;;  %v2055_v46 = vrot.slane %v2045_v44, %v1909_v63  ;;  %v2047_v47 = vcombine.high %v2045_v44, %v2045_v44  ;;  %v2059_v49 = vrot.slane %v2046_v45, %v1909_v63 }
0x1181   : > { %2066 = vrot.lane.b32.xlu0 %v2055_v46, %s7681_s30  ;;  %v2063_v48 = vrot.slane %v2047_v47, %v1909_v63 }
0x1183   : > { %2068 = vrot.lane.b32.xlu1 %v2059_v49, %s7681_s30 }
0x1185   : > { %2070 = vrot.lane.b32.xlu0 %v2063_v48, %s7681_s30 }
0x11eb   : > { %v2016_v50 = vpop.permute.xlu1 %2015 }
0x11ec   : > { %2018 = vst.msk [vmem:[#allocation2 + $0x4] sm:$0xf] %vm1881_vm7, %v2016_v50 }
0x11f1   : > { %v2065_v51 = vpop.permute.xlu1 %2064 }
0x11f2   : > { %2077 = vst.msk [vmem:[#allocation5 + $0x2] sm:$0x1] %vm2076_vm9, %v2065_v51 }
0x11f3   : > { %v2067_v52 = vpop.permute.xlu0 %2066 }
0x11f4   : > { %2078 = vst.msk [vmem:[#allocation5 + $0xa] sm:$0x1] %vm2076_vm9, %v2067_v52 }
0x11f5   : > { %v2069_v54 = vpop.permute.xlu1 %2068 }
0x11f6   : > { %2079 = vst.msk [vmem:[#allocation5 + $0x12] sm:$0x1] %vm2076_vm9, %v2069_v54 }
0x11f7   : > { %v2071_v55 = vpop.permute.xlu0 %2070 }
0x11f8   : > { %2080 = vst.msk [vmem:[#allocation5 + $0x1a] sm:$0x1] %vm2076_vm9, %v2071_v55 }
0x11f9 PF: > { %s2081_s23 = sadd.s32 3, %s7893_s27 }
0x11fa   : > { %p5641_p6 = scmp.ge.s32.totalorder %s2081_s23, 12 }
0x11fb   : > { %v6669_v56 = vpack.c.bf16 (!%p5641_p6), %v7928_v16, %v7923_v15  ;;  %v7684_v38 = vmov (!%p5641_p6), 0.0|0.0   ;;  %v6672_v60 = vpack.c.bf16 (!%p5641_p6), %v7938_v18, %v7933_v17  ;;  %vm7685_vm10 = vmmov (!%p5641_p6), 0   ;;  %v2086_v61 = vld [vmem:[#allocation2] sm:$0xf] (!%p5641_p6)  ;;  %v2088_v53 = vld [vmem:[#allocation4 + $0x3] sm:$0x1] (!%p5641_p6) }
0x11fc   : > { %2085 = sbr.rel (%p5641_p6) target bundleno = 6043 (0x179b), region = 130  ;;  %6668 = vmatprep.subr.bf16.mxu0 (!%p5641_p6), %v7684_v38  ;;  %6674 = vmatprep.subr.bf16.mxu1 (!%p5641_p6), %v7684_v38  ;;  %v7686_v59 = vmov (!%p5641_p6), 0.0   ;;  %vm2092_vm11 = vcmask (!%p5641_p6), 261120   ;;  %v2089_v62 = vld [vmem:[#allocation4 + $0xb] sm:$0x1] (!%p5641_p6)  ;;  %s7687_s15 = smov (!%p5641_p6), 32  }
0x11fd   : > { %6670 = vmatpush3.bf16.msra.mxu0 (!%p5641_p6), %v6669_v56  ;;  %6152 = vmatprep.mubr.msk.f32.mxu0 (!%p5641_p6), %vm7685_vm10, %v7686_v59  ;;  %v2090_v3 = vld [vmem:[#allocation4 + $0x13] sm:$0x1] (!%p5641_p6)  ;;  %v2091_v8 = vld [vmem:[#allocation4 + $0x1b] sm:$0x1] (!%p5641_p6)  ;;  %vm2295_vm12 = vcmask (!%p5641_p6), 1041409   ;;  %vm2298_vm13 = vcmask (!%p5641_p6), 1042434  }
0x11fe   : > { %6671 = vmatprep.subr.bf16.mxu0 (!%p5641_p6), %v7684_v38  ;;  %6171 = vmatprep.mubr.msk.f32.mxu1 (!%p5641_p6), %vm7685_vm10, %v7686_v59  ;;  %v2087_v12 = vld [vmem:[#allocation3] sm:$0xf] (!%p5641_p6)  ;;  %vm2301_vm14 = vcmask (!%p5641_p6), 1043459   ;;  %s7688_s25 = smov (!%p5641_p6), 64   ;;  %vm2306_vm15 = vcmask (!%p5641_p6), 257024   ;;  %vm2337_vm0 = vcmask (!%p5641_p6), 523264  }
0x11ff   : > { %v2207_v14 = vrot.slane (!%p5641_p6), %v2087_v12, 1  ;;  %v2208_v30 = vrot.slane (!%p5641_p6), %v2087_v12, 2  ;;  %v2209_v31 = vrot.slane (!%p5641_p6), %v2087_v12, 3  ;;  %s7689_s0 = smov (!%p5641_p6), 96   ;;  %vm2501_vm1 = vcmask (!%p5641_p6), 253952  }
0x1201   : > { %6673 = vmatpush3.bf16.msra.mxu0 (!%p5641_p6), %v6672_v60 }
0x1204   : > { %6153 = vmatmul.mubr.msk.f32.vlgmr.msra.gmra.mrb[0].mxu0 %vm2092_vm11, %v2086_v61 }
0x12d7   : > { %v2162_v58 = vpop.f32.mrb[0].mxu0 }
0x12d8   : > { %v2167_v57 = vrot.slane %v2162_v58, 1  ;;  %v2174_v1 = vadd.f32 %v2162_v58, %v2088_v53  ;;  %v6154_v2 = vpop.f32.mrb[1].mxu0  ;;  %v2168_v63 = vrot.slane %v2162_v58, 2  ;;  %v2169_v6 = vrot.slane %v2162_v58, 3 }
0x12da   : > { %v2175_v7 = vadd.f32 %v2167_v57, %v2089_v62  ;;  %7267 = vtanh.f32 %v2174_v1  ;;  %v2176_v0 = vadd.f32 %v2168_v63, %v2090_v3  ;;  %v2177_v9 = vadd.f32 %v2169_v6, %v2091_v8 }
0x12db   : > { %v5643_v11 = vmul.f32 -1.442695, %v2174_v1 }
0x12dc   : > { %7269 = vtanh.f32 %v2175_v7  ;;  %v5644_v32 = vmul.f32 -1.442695, %v2175_v7  ;;  %v5645_v33 = vmul.f32 -1.442695, %v2176_v0  ;;  %v5646_v29 = vmul.f32 -1.442695, %v2177_v9 }
0x12dd   : > { %7271 = vtanh.f32 %v2176_v0 }
0x12de   : > { %7273 = vtanh.f32 %v2177_v9 }
0x12df   : > { %7275 = vpow2.f32 %v5644_v32 }
0x12e0   : > { %7277 = vpow2.f32 %v5643_v11  ;;  %v6681_v11 = vpack.c.bf16 %v7968_v24, %v7963_v23 }
0x12e1   : > { %7279 = vpow2.f32 %v5645_v33 }
0x12e2   : > { %7281 = vpow2.f32 %v5646_v29  ;;  %v2323_v29 = vld [vmem:[#allocation2 + $0x4] sm:$0xf] }
0x12e4   : > { %v7268_v5 = vpop.eup %7267 }
0x12e5   : > { %2230 = vrot.lane.b32.xlu1 %v7268_v5, %s7687_s15 }
0x12e6   : > { %v7270_v4 = vpop.eup %7269 }
0x12e7   : > { %2232 = vrot.lane.b32.xlu0 %v7270_v4, %s7687_s15  ;;  %v7272_v13 = vpop.eup %7271 }
0x12e8   : > { %v7274_v10 = vpop.eup %7273 }
0x12e9   : > { %2236 = vrot.lane.b32.xlu1 %v7274_v10, %s7687_s15  ;;  %v7276_v28 = vpop.eup %7275 }
0x12ea   : > { %v7278_v35 = vpop.eup %7277  ;;  %v2191_v36 = vadd.f32 1.0, %v7276_v28  ;;  %v6684_v28 = vpack.c.bf16 %v7978_v26, %v7973_v25 }
0x12eb   : > { %2234 = vrot.lane.b32.xlu0 %v7272_v13, %s7687_s15  ;;  %v7280_v37 = vpop.eup %7279  ;;  %v2190_v34 = vadd.f32 1.0, %v7278_v35 }
0x12ec   : > { %v2192_v39 = vadd.f32 1.0, %v7280_v37  ;;  %7283 = vrcp.f32 %v2191_v36  ;;  %v7282_v40 = vpop.eup %7281  ;;  %v2325_v36 = vld [vmem:[#allocation3 + $0x4] sm:$0xf] }
0x12ed   : > { %2214 = vrot.lane.b32.xlu1 %v2208_v30, %s7687_s15  ;;  %7285 = vrcp.f32 %v2190_v34  ;;  %v2193_v41 = vadd.f32 1.0, %v7282_v40  ;;  %v6678_v30 = vpack.c.bf16 %v7958_v22, %v7953_v21 }
0x12ee   : > { %7287 = vrcp.f32 %v2192_v39 }
0x12ef   : > { %2212 = vrot.lane.b32.xlu0 %v2207_v14, %s7687_s15  ;;  %7289 = vrcp.f32 %v2193_v41  ;;  %v6675_v14 = vpack.c.bf16 %v7948_v20, %v7943_v19 }
0x12f1   : > { %2216 = vrot.lane.b32.xlu1 %v2209_v31, %s7687_s15  ;;  %6676 = vmatpush3.bf16.msra.mxu1 %v6675_v14 }
0x12f2   : > { %6677 = vmatprep.subr.bf16.mxu1 %v7684_v38 }
0x12f3   : > { %2210 = vrot.lane.b32.xlu0 %v2087_v12, %s7687_s15 }
0x12f5   : > { %6679 = vmatpush3.bf16.msra.mxu1 %v6678_v30 }
0x12f6   : > { %v8251_v42 = vpop.eup %7283  ;;  %6680 = vmatprep.subr.bf16.mxu1 %v7684_v38 }
0x12f7   : > { %v8254_v46 = vpop.eup %7285 }
0x12f8   : > { %v8257_v47 = vpop.eup %7287 }
0x12f9   : > { %v8263_v52 = vpop.eup %7289  ;;  %6682 = vmatpush3.bf16.msra.mxu1 %v6681_v11 }
0x12fa   : > { %6683 = vmatprep.subr.bf16.mxu1 %v7684_v38 }
0x12fd   : > { %6685 = vmatpush3.bf16.msra.mxu1 %v6684_v28 }
0x1357   : > { %v2231_v43 = vpop.permute.xlu1 %2230 }
0x1358   : > { %v2242_v48 = vmul.f32 %v8254_v46, %v2231_v43 }
0x1359   : > { %v2233_v44 = vpop.permute.xlu0 %2232 }
0x135a   : > { %v2243_v45 = vmul.f32 %v8251_v42, %v2233_v44 }
0x135b   : > { %v2237_v51 = vpop.permute.xlu1 %2236 }
0x135c   : > { %2252 = vrot.lane.b32.xlu0 %v2243_v45, %s7687_s15  ;;  %v2245_v54 = vmul.f32 %v8263_v52, %v2237_v51 }
0x135d   : > { %v2235_v49 = vpop.permute.xlu0 %2234 }
0x135e   : > { %v2244_v50 = vmul.f32 %v8257_v47, %v2235_v49 }
0x135f   : > { %v2215_v56 = vpop.permute.xlu1 %2214 }
0x1360   : > { %2254 = vrot.lane.b32.xlu1 %v2244_v50, %s7687_s15  ;;  %2250 = vrot.lane.b32.xlu0 %v2242_v48, %s7687_s15  ;;  %v2224_v58 = vmul.f32 %v8257_v47, %v2215_v56 }
0x1361   : > { %v2213_v55 = vpop.permute.xlu0 %2212 }
0x1362   : > { %v2223_v59 = vmul.f32 %v8251_v42, %v2213_v55 }
0x1363   : > { %v2217_v61 = vpop.permute.xlu1 %2216 }
0x1364   : > { %2256 = vrot.lane.b32.xlu1 %v2245_v54, %s7687_s15  ;;  %v2225_v7 = vmul.f32 %v8263_v52, %v2217_v61  ;;  %v2332_v54 = vlaneseq }
0x1365   : > { %v2211_v60 = vpop.permute.xlu0 %2210 }
0x1366   : > { %v2222_v57 = vmul.f32 %v8254_v46, %v2211_v60  ;;  %v2333_v55 = vshrl.u32 %v2332_v54, 7 }
0x13ce   : > { %v2253_v53 = vpop.permute.xlu0 %2252 }
0x13cf   : > { %v2263_v62 = vadd.f32 %v2253_v53, %v2223_v59 }
0x13d1   : > { %7291 = vtanh.f32 %v2263_v62  ;;  %v2312_v63 = vrot.slane %v2263_v62, 7 }
0x13d2   : > { %v2255_v1 = vpop.permute.xlu1 %2254  ;;  %v2251_v2 = vpop.permute.xlu0 %2250 }
0x13d3   : > { %v2264_v3 = vadd.f32 %v2255_v1, %v2224_v58  ;;  %v2262_v6 = vadd.f32 %v2251_v2, %v2222_v57 }
0x13d5   : > { %7293 = vtanh.f32 %v2264_v3  ;;  %v2314_v8 = vrot.slane %v2264_v3, 6  ;;  %v2313_v0 = vsel %vm2295_vm12, %v2312_v63, %v2262_v6 }
0x13d6   : > { %7295 = vtanh.f32 %v2262_v6  ;;  %v2257_v9 = vpop.permute.xlu1 %2256 }
0x13d7   : > { %v2265_v5 = vadd.f32 %v2257_v9, %v2225_v7  ;;  %v2315_v4 = vsel %vm2298_vm13, %v2314_v8, %v2313_v0 }
0x13d9   : > { %7297 = vtanh.f32 %v2265_v5  ;;  %v2316_v12 = vrot.slane %v2265_v5, 5 }
0x13db   : > { %v7292_v13 = vpop.eup %7291  ;;  %v8274_v10 = vsel %vm2301_vm14, %v2316_v12, %v2315_v4  ;;  %v7690_v4 = vmov 1966171168  }
0x13dc   : > { %2276 = vrot.lane.b32.xlu0 %v7292_v13, %s7687_s15  ;;  %v2450_v12 = vunpack.c.l.s4 %v7690_v4 }
0x13de   : > { %v2451_v13 = vunpack.c.0.s8 %v2450_v12 }
0x13df   : > { %v7294_v31 = vpop.eup %7293 }
0x13e0   : > { %v7296_v32 = vpop.eup %7295  ;;  %2278 = vrot.lane.b32.xlu1 %v7294_v31, %s7687_s15  ;;  %v2454_v14 = vsub.s32 %v2451_v13, %v2333_v55 }
0x13e1   : > { %2274 = vrot.lane.b32.xlu0 %v7296_v32, %s7687_s15 }
0x13e3   : > { %v7298_v33 = vpop.eup %7297 }
0x13e4   : > { %2280 = vrot.lane.b32.xlu1 %v7298_v33, %s7687_s15 }
0x13e8   : > { %2327 = vrot.lane.b32.xlu1 %v2323_v29, %s7687_s15 }
0x13ec   : > { %2419 = vrot.lane.b32.xlu1 %v2325_v36, %s7687_s15 }
0x144e   : > { %v2277_v35 = vpop.permute.xlu0 %2276 }
0x144f   : > { %v2287_v37 = vmul.f32 %v8251_v42, %v2277_v35 }
0x1451   : > { %v2294_v43 = vrot.slane %v2287_v37, 7 }
0x1452   : > { %v2279_v34 = vpop.permute.xlu1 %2278 }
0x1453   : > { %v2288_v39 = vmul.f32 %v8257_v47, %v2279_v34  ;;  %v2275_v40 = vpop.permute.xlu0 %2274 }
0x1454   : > { %v2286_v41 = vmul.f32 %v8254_v46, %v2275_v40 }
0x1455   : > { %v2297_v44 = vrot.slane %v2288_v39, 6 }
0x1456   : > { %v2281_v45 = vpop.permute.xlu1 %2280  ;;  %v2296_v38 = vsel %vm2295_vm12, %v2294_v43, %v2286_v41 }
0x1457   : > { %v2289_v49 = vmul.f32 %v8263_v52, %v2281_v45  ;;  %v2299_v50 = vsel %vm2298_vm13, %v2297_v44, %v2296_v38  ;;  %v2334_v52 = vsub.s32 0, %v2333_v55 }
0x1459   : > { %v2300_v48 = vrot.slane %v2289_v49, 5  ;;  %v2335_v56 = vrot.slane %v7983_v27, %v2334_v52 }
0x145a   : > { %v2328_v51 = vpop.permute.xlu1 %2327 }
0x145b   : > { %v2302_v42 = vsel %vm2301_vm14, %v2300_v48, %v2299_v50 }
0x145c   : > { %2303 = vrot.lane.b32.xlu0 %v2302_v42, %s7688_s25 }
0x145e   : > { %v2420_v3 = vpop.permute.xlu1 %2419 }
0x14ce   : > { %v2304_v47 = vpop.permute.xlu0 %2303 }
0x14cf   : > { %2307 = vst.msk [vmem:[#allocation2] sm:$0xf] %vm2306_vm15, %v2304_v47  ;;  %v2330_v46 = vsel %vm2092_vm11, %v2304_v47, %v2328_v51 }
0x14d0   : > { %6172 = vmatmul.mubr.msk.f32.vlgmr.msra.gmra.mrb[0].mxu1 %vm2337_vm0, %v2330_v46 }
0x15a3   : > { %v2407_v60 = vpop.f32.mrb[0].mxu1 }
0x15a4   : > { %v2408_v59 = vadd.f32 %v2407_v60, %v2335_v56  ;;  %v6173_v61 = vpop.f32.mrb[1].mxu1 }
0x15a6   : > { %7299 = vtanh.f32 %v2408_v59  ;;  %v5648_v62 = vmul.f32 -1.442695, %v2408_v59 }
0x15a8   : > { %7301 = vpow2.f32 %v5648_v62 }
0x15b0   : > { %v7300_v53 = vpop.eup %7299 }
0x15b1   : > { %2424 = vrot.lane.b32.xlu0 %v7300_v53, %s7687_s15 }
0x15b2   : > { %v7302_v58 = vpop.eup %7301 }
0x15b3   : > { %v2414_v57 = vadd.f32 1.0, %v7302_v58 }
0x15b5   : > { %7303 = vrcp.f32 %v2414_v57 }
0x15bf   : > { %v7304_v1 = vpop.eup %7303 }
0x15c0   : > { %v2422_v6 = vmul.f32 %v7304_v1, %v2420_v3 }
0x1623   : > { %v2425_v2 = vpop.permute.xlu0 %2424 }
0x1624   : > { %v2427_v63 = vmul.f32 %v7304_v1, %v2425_v2 }
0x1626   : > { %2429 = vrot.lane.b32.xlu0 %v2427_v63, %s7687_s15 }
0x162a   : > { %2318 = vrot.lane.b32.xlu0 %v8274_v10, %s7689_s0 }
0x1698   : > { %v2430_v7 = vpop.permute.xlu0 %2429 }
0x1699   : > { %v2432_v8 = vadd.f32 %v2430_v7, %v2422_v6 }
0x169b   : > { %7305 = vtanh.f32 %v2432_v8  ;;  %2445 = vrot.lane.b32.xlu0 %v2432_v8, %s7689_s0 }
0x169c   : > { %v2319_v0 = vpop.permute.xlu0 %2318 }
0x169d   : > { %2321 = vst.msk [vmem:[#allocation3] sm:$0xf] %vm2306_vm15, %v2319_v0 }
0x16a5   : > { %v7306_v9 = vpop.eup %7305 }
0x16a6   : > { %2435 = vrot.lane.b32.xlu1 %v7306_v9, %s7687_s15 }
0x170d   : > { %v2446_v5 = vpop.permute.xlu0 %2445 }
0x170e   : > { %2448 = vst.msk [vmem:[#allocation3 + $0x4] sm:$0xf] %vm2306_vm15, %v2446_v5 }
0x1718   : > { %v2436_v10 = vpop.permute.xlu1 %2435 }
0x1719   : > { %v2438_v30 = vmul.f32 %v7304_v1, %v2436_v10 }
0x171b   : > { %v2455_v31 = vrot.slane %v2438_v30, %v2454_v14  ;;  %2440 = vrot.lane.b32.xlu1 %v2438_v30, %s7688_s25 }
0x171d   : > { %v2456_v32 = vcombine.high %v2455_v31, %v2455_v31  ;;  %v2463_v11 = vrot.slane %v2455_v31, %v2454_v14 }
0x171f   : > { %v2476_v33 = vrot.slane %v2463_v11, %v2334_v52  ;;  %v2470_v29 = vrot.slane %v2456_v32, %v2454_v14  ;;  %v2471_v28 = vcombine.high %v2463_v11, %v2463_v11 }
0x1721   : > { %2489 = vrot.lane.b32.xlu1 %v2476_v33, %s7688_s25  ;;  %v2480_v35 = vrot.slane %v2470_v29, %v2334_v52  ;;  %v2472_v36 = vcombine.high %v2470_v29, %v2470_v29  ;;  %v2484_v37 = vrot.slane %v2471_v28, %v2334_v52 }
0x1723   : > { %2491 = vrot.lane.b32.xlu0 %v2480_v35, %s7688_s25  ;;  %v2488_v34 = vrot.slane %v2472_v36, %v2334_v52 }
0x1725   : > { %2493 = vrot.lane.b32.xlu1 %v2484_v37, %s7688_s25 }
0x1727   : > { %2495 = vrot.lane.b32.xlu0 %v2488_v34, %s7688_s25 }
0x178d   : > { %v2441_v39 = vpop.permute.xlu1 %2440 }
0x178e   : > { %2443 = vst.msk [vmem:[#allocation2 + $0x4] sm:$0xf] %vm2306_vm15, %v2441_v39 }
0x1793   : > { %v2490_v40 = vpop.permute.xlu1 %2489 }
0x1794   : > { %2502 = vst.msk [vmem:[#allocation5 + $0x3] sm:$0x1] %vm2501_vm1, %v2490_v40 }
0x1795   : > { %v2492_v41 = vpop.permute.xlu0 %2491 }
0x1796   : > { %2503 = vst.msk [vmem:[#allocation5 + $0xb] sm:$0x1] %vm2501_vm1, %v2492_v41 }
0x1797   : > { %v2494_v43 = vpop.permute.xlu1 %2493 }
0x1798   : > { %2504 = vst.msk [vmem:[#allocation5 + $0x13] sm:$0x1] %vm2501_vm1, %v2494_v43 }
0x1799   : > { %v2496_v44 = vpop.permute.xlu0 %2495 }
0x179a   : > { %2505 = vst.msk [vmem:[#allocation5 + $0x1b] sm:$0x1] %vm2501_vm1, %v2496_v44 }
0x179b PF: > { %s2506_s20 = sadd.s32 4, %s7893_s27 }
0x179c   : > { %p5649_p7 = scmp.ge.s32.totalorder %s2506_s20, 12 }
0x179d   : > { %v6687_v45 = vpack.c.bf16 (!%p5649_p7), %v7928_v16, %v7923_v15  ;;  %v7691_v38 = vmov (!%p5649_p7), 0.0|0.0   ;;  %v6690_v49 = vpack.c.bf16 (!%p5649_p7), %v7938_v18, %v7933_v17  ;;  %vm7692_vm2 = vmmov (!%p5649_p7), 0   ;;  %v2511_v50 = vld [vmem:[#allocation2] sm:$0xf] (!%p5649_p7)  ;;  %v2513_v42 = vld [vmem:[#allocation4 + $0x4] sm:$0x1] (!%p5649_p7) }
0x179e   : > { %2510 = sbr.rel (%p5649_p7) target bundleno = 7485 (0x1d3d), region = 134  ;;  %6686 = vmatprep.subr.bf16.mxu0 (!%p5649_p7), %v7691_v38  ;;  %6692 = vmatprep.subr.bf16.mxu1 (!%p5649_p7), %v7691_v38  ;;  %v7693_v48 = vmov (!%p5649_p7), 0.0   ;;  %vm2517_vm3 = vcmask (!%p5649_p7), 261120   ;;  %v2514_v51 = vld [vmem:[#allocation4 + $0xc] sm:$0x1] (!%p5649_p7)  ;;  %s7694_s16 = smov (!%p5649_p7), 32  }
0x179f   : > { %6688 = vmatpush3.bf16.msra.mxu0 (!%p5649_p7), %v6687_v45  ;;  %6182 = vmatprep.mubr.msk.f32.mxu0 (!%p5649_p7), %vm7692_vm2, %v7693_v48  ;;  %v2515_v56 = vld [vmem:[#allocation4 + $0x14] sm:$0x1] (!%p5649_p7)  ;;  %v2516_v61 = vld [vmem:[#allocation4 + $0x1c] sm:$0x1] (!%p5649_p7)  ;;  %v2512_v1 = vld [vmem:[#allocation3] sm:$0xf] (!%p5649_p7) }
0x17a0   : > { %6689 = vmatprep.subr.bf16.mxu0 (!%p5649_p7), %v7691_v38  ;;  %6201 = vmatprep.mubr.msk.f32.mxu1 (!%p5649_p7), %vm7692_vm2, %v7693_v48  ;;  %v2632_v3 = vrot.slane (!%p5649_p7), %v2512_v1, 1  ;;  %v2633_v6 = vrot.slane (!%p5649_p7), %v2512_v1, 2  ;;  %v2634_v7 = vrot.slane (!%p5649_p7), %v2512_v1, 3  ;;  %vm2720_vm4 = vcmask (!%p5649_p7), 1041409   ;;  %s7695_s21 = smov (!%p5649_p7), 64   ;;  %s7696_s18 = smov (!%p5649_p7), 96  }
0x17a1   : > { %vm2723_vm5 = vcmask (!%p5649_p7), 1042434   ;;  %vm2726_vm6 = vcmask (!%p5649_p7), 1043459   ;;  %vm2731_vm7 = vcmask (!%p5649_p7), 257024   ;;  %vm2762_vm8 = vcmask (!%p5649_p7), 523264  }
0x17a2   : > { %vm2926_vm9 = vcmask (!%p5649_p7), 253952  }
0x17a3   : > { %6691 = vmatpush3.bf16.msra.mxu0 (!%p5649_p7), %v6690_v49 }
0x17a6   : > { %6183 = vmatmul.mubr.msk.f32.vlgmr.msra.gmra.mrb[0].mxu0 %vm2517_vm3, %v2511_v50 }
0x1879   : > { %v2587_v47 = vpop.f32.mrb[0].mxu0 }
0x187a   : > { %v2592_v46 = vrot.slane %v2587_v47, 1  ;;  %v2599_v54 = vadd.f32 %v2587_v47, %v2513_v42  ;;  %v6184_v55 = vpop.f32.mrb[1].mxu0  ;;  %v2593_v52 = vrot.slane %v2587_v47, 2  ;;  %v2594_v60 = vrot.slane %v2587_v47, 3 }
0x187c   : > { %v2600_v59 = vadd.f32 %v2592_v46, %v2514_v51  ;;  %7307 = vtanh.f32 %v2599_v54  ;;  %v2601_v53 = vadd.f32 %v2593_v52, %v2515_v56  ;;  %v2602_v62 = vadd.f32 %v2594_v60, %v2516_v61 }
0x187d   : > { %v5651_v0 = vmul.f32 -1.442695, %v2599_v54 }
0x187e   : > { %7309 = vtanh.f32 %v2600_v59  ;;  %v5652_v8 = vmul.f32 -1.442695, %v2600_v59  ;;  %v5653_v9 = vmul.f32 -1.442695, %v2601_v53  ;;  %v5654_v5 = vmul.f32 -1.442695, %v2602_v62 }
0x187f   : > { %7311 = vtanh.f32 %v2601_v53 }
0x1880   : > { %7313 = vtanh.f32 %v2602_v62 }
0x1881   : > { %7315 = vpow2.f32 %v5652_v8 }
0x1882   : > { %7317 = vpow2.f32 %v5651_v0  ;;  %v6699_v0 = vpack.c.bf16 %v7968_v24, %v7963_v23 }
0x1883   : > { %7319 = vpow2.f32 %v5653_v9 }
0x1884   : > { %7321 = vpow2.f32 %v5654_v5  ;;  %v2748_v5 = vld [vmem:[#allocation2 + $0x4] sm:$0xf] }
0x1886   : > { %v7308_v58 = vpop.eup %7307 }
0x1887   : > { %2655 = vrot.lane.b32.xlu1 %v7308_v58, %s7694_s16 }
0x1888   : > { %v7310_v57 = vpop.eup %7309 }
0x1889   : > { %2657 = vrot.lane.b32.xlu0 %v7310_v57, %s7694_s16  ;;  %v7312_v2 = vpop.eup %7311 }
0x188a   : > { %v7314_v63 = vpop.eup %7313 }
0x188b   : > { %2661 = vrot.lane.b32.xlu1 %v7314_v63, %s7694_s16  ;;  %v7316_v4 = vpop.eup %7315 }
0x188c   : > { %v7318_v12 = vpop.eup %7317  ;;  %v2616_v13 = vadd.f32 1.0, %v7316_v4  ;;  %v6702_v4 = vpack.c.bf16 %v7978_v26, %v7973_v25 }
0x188d   : > { %2659 = vrot.lane.b32.xlu0 %v7312_v2, %s7694_s16  ;;  %v7320_v14 = vpop.eup %7319  ;;  %v2615_v10 = vadd.f32 1.0, %v7318_v12 }
0x188e   : > { %v2617_v30 = vadd.f32 1.0, %v7320_v14  ;;  %7323 = vrcp.f32 %v2616_v13  ;;  %v7322_v31 = vpop.eup %7321  ;;  %v2750_v13 = vld [vmem:[#allocation3 + $0x4] sm:$0xf] }
0x188f   : > { %2639 = vrot.lane.b32.xlu1 %v2633_v6, %s7694_s16  ;;  %7325 = vrcp.f32 %v2615_v10  ;;  %v2618_v32 = vadd.f32 1.0, %v7322_v31  ;;  %v6696_v6 = vpack.c.bf16 %v7958_v22, %v7953_v21 }
0x1890   : > { %7327 = vrcp.f32 %v2617_v30 }
0x1891   : > { %2637 = vrot.lane.b32.xlu0 %v2632_v3, %s7694_s16  ;;  %7329 = vrcp.f32 %v2618_v32  ;;  %v6693_v3 = vpack.c.bf16 %v7948_v20, %v7943_v19 }
0x1893   : > { %2641 = vrot.lane.b32.xlu1 %v2634_v7, %s7694_s16  ;;  %6694 = vmatpush3.bf16.msra.mxu1 %v6693_v3 }
0x1894   : > { %6695 = vmatprep.subr.bf16.mxu1 %v7691_v38 }
0x1895   : > { %2635 = vrot.lane.b32.xlu0 %v2512_v1, %s7694_s16 }
0x1897   : > { %6697 = vmatpush3.bf16.msra.mxu1 %v6696_v6 }
0x1898   : > { %v8333_v11 = vpop.eup %7323  ;;  %6698 = vmatprep.subr.bf16.mxu1 %v7691_v38 }
0x1899   : > { %v8336_v35 = vpop.eup %7325 }
0x189a   : > { %v8339_v36 = vpop.eup %7327 }
0x189b   : > { %v8345_v41 = vpop.eup %7329  ;;  %6700 = vmatpush3.bf16.msra.mxu1 %v6699_v0 }
0x189c   : > { %6701 = vmatprep.subr.bf16.mxu1 %v7691_v38 }
0x189f   : > { %6703 = vmatpush3.bf16.msra.mxu1 %v6702_v4 }
0x18f9   : > { %v2656_v33 = vpop.permute.xlu1 %2655 }
0x18fa   : > { %v2667_v34 = vmul.f32 %v8336_v35, %v2656_v33 }
0x18fb   : > { %v2658_v29 = vpop.permute.xlu0 %2657 }
0x18fc   : > { %v2668_v28 = vmul.f32 %v8333_v11, %v2658_v29 }
0x18fd   : > { %v2662_v40 = vpop.permute.xlu1 %2661 }
0x18fe   : > { %2677 = vrot.lane.b32.xlu0 %v2668_v28, %s7694_s16  ;;  %v2670_v43 = vmul.f32 %v8345_v41, %v2662_v40 }
0x18ff   : > { %v2660_v37 = vpop.permute.xlu0 %2659 }
0x1900   : > { %v2669_v39 = vmul.f32 %v8339_v36, %v2660_v37 }
0x1901   : > { %v2640_v45 = vpop.permute.xlu1 %2639 }
0x1902   : > { %2679 = vrot.lane.b32.xlu1 %v2669_v39, %s7694_s16  ;;  %2675 = vrot.lane.b32.xlu0 %v2667_v34, %s7694_s16  ;;  %v2649_v47 = vmul.f32 %v8339_v36, %v2640_v45 }
0x1903   : > { %v2638_v44 = vpop.permute.xlu0 %2637 }
0x1904   : > { %v2648_v48 = vmul.f32 %v8333_v11, %v2638_v44 }
0x1905   : > { %v2642_v50 = vpop.permute.xlu1 %2641 }
0x1906   : > { %2681 = vrot.lane.b32.xlu1 %v2670_v43, %s7694_s16  ;;  %v2650_v59 = vmul.f32 %v8345_v41, %v2642_v50  ;;  %v2757_v43 = vlaneseq }
0x1907   : > { %v2636_v49 = vpop.permute.xlu0 %2635 }
0x1908   : > { %v2647_v46 = vmul.f32 %v8336_v35, %v2636_v49  ;;  %v2758_v44 = vshrl.u32 %v2757_v43, 7 }
0x1970   : > { %v2678_v42 = vpop.permute.xlu0 %2677 }
0x1971   : > { %v2688_v51 = vadd.f32 %v2678_v42, %v2648_v48 }
0x1973   : > { %7331 = vtanh.f32 %v2688_v51  ;;  %v2737_v52 = vrot.slane %v2688_v51, 7 }
0x1974   : > { %v2680_v54 = vpop.permute.xlu1 %2679  ;;  %v2676_v55 = vpop.permute.xlu0 %2675 }
0x1975   : > { %v2689_v56 = vadd.f32 %v2680_v54, %v2649_v47  ;;  %v2687_v60 = vadd.f32 %v2676_v55, %v2647_v46 }
0x1977   : > { %7333 = vtanh.f32 %v2689_v56  ;;  %v2739_v61 = vrot.slane %v2689_v56, 6  ;;  %v2738_v53 = vsel %vm2720_vm4, %v2737_v52, %v2687_v60 }
0x1978   : > { %7335 = vtanh.f32 %v2687_v60  ;;  %v2682_v62 = vpop.permute.xlu1 %2681 }
0x1979   : > { %v2690_v58 = vadd.f32 %v2682_v62, %v2650_v59  ;;  %v2740_v57 = vsel %vm2723_vm5, %v2739_v61, %v2738_v53 }
0x197b   : > { %7337 = vtanh.f32 %v2690_v58  ;;  %v2741_v1 = vrot.slane %v2690_v58, 5 }
0x197d   : > { %v7332_v2 = vpop.eup %7331  ;;  %v8356_v63 = vsel %vm2726_vm6, %v2741_v1, %v2740_v57  ;;  %v7697_v57 = vmov 1966171168  }
0x197e   : > { %2701 = vrot.lane.b32.xlu0 %v7332_v2, %s7694_s16  ;;  %v2875_v1 = vunpack.c.l.s4 %v7697_v57 }
0x1980   : > { %v2876_v2 = vunpack.c.0.s8 %v2875_v1 }
0x1981   : > { %v7334_v7 = vpop.eup %7333 }
0x1982   : > { %v7336_v8 = vpop.eup %7335  ;;  %2703 = vrot.lane.b32.xlu1 %v7334_v7, %s7694_s16  ;;  %v2879_v3 = vsub.s32 %v2876_v2, %v2758_v44 }
0x1983   : > { %2699 = vrot.lane.b32.xlu0 %v7336_v8, %s7694_s16 }
0x1985   : > { %v7338_v9 = vpop.eup %7337 }
0x1986   : > { %2705 = vrot.lane.b32.xlu1 %v7338_v9, %s7694_s16 }
0x198a   : > { %2752 = vrot.lane.b32.xlu1 %v2748_v5, %s7694_s16 }
0x198e   : > { %2844 = vrot.lane.b32.xlu1 %v2750_v13, %s7694_s16 }
0x19f0   : > { %v2702_v12 = vpop.permute.xlu0 %2701 }
0x19f1   : > { %v2712_v14 = vmul.f32 %v8333_v11, %v2702_v12 }
0x19f3   : > { %v2719_v33 = vrot.slane %v2712_v14, 7 }
0x19f4   : > { %v2704_v10 = vpop.permute.xlu1 %2703 }
0x19f5   : > { %v2713_v30 = vmul.f32 %v8339_v36, %v2704_v10  ;;  %v2700_v31 = vpop.permute.xlu0 %2699 }
0x19f6   : > { %v2711_v32 = vmul.f32 %v8336_v35, %v2700_v31 }
0x19f7   : > { %v2722_v29 = vrot.slane %v2713_v30, 6 }
0x19f8   : > { %v2706_v28 = vpop.permute.xlu1 %2705  ;;  %v2721_v38 = vsel %vm2720_vm4, %v2719_v33, %v2711_v32 }
0x19f9   : > { %v2714_v37 = vmul.f32 %v8345_v41, %v2706_v28  ;;  %v2724_v39 = vsel %vm2723_vm5, %v2722_v29, %v2721_v38  ;;  %v2759_v41 = vsub.s32 0, %v2758_v44 }
0x19fb   : > { %v2725_v34 = vrot.slane %v2714_v37, 5  ;;  %v2760_v45 = vrot.slane %v7983_v27, %v2759_v41 }
0x19fc   : > { %v2753_v40 = vpop.permute.xlu1 %2752 }
0x19fd   : > { %v2727_v11 = vsel %vm2726_vm6, %v2725_v34, %v2724_v39 }
0x19fe   : > { %2728 = vrot.lane.b32.xlu0 %v2727_v11, %s7695_s21 }
0x1a00   : > { %v2845_v56 = vpop.permute.xlu1 %2844 }
0x1a70   : > { %v2729_v36 = vpop.permute.xlu0 %2728 }
0x1a71   : > { %2732 = vst.msk [vmem:[#allocation2] sm:$0xf] %vm2731_vm7, %v2729_v36  ;;  %v2755_v35 = vsel %vm2517_vm3, %v2729_v36, %v2753_v40 }
0x1a72   : > { %6202 = vmatmul.mubr.msk.f32.vlgmr.msra.gmra.mrb[0].mxu1 %vm2762_vm8, %v2755_v35 }
0x1b45   : > { %v2832_v49 = vpop.f32.mrb[0].mxu1 }
0x1b46   : > { %v2833_v48 = vadd.f32 %v2832_v49, %v2760_v45  ;;  %v6203_v50 = vpop.f32.mrb[1].mxu1 }
0x1b48   : > { %7339 = vtanh.f32 %v2833_v48  ;;  %v5656_v51 = vmul.f32 -1.442695, %v2833_v48 }
0x1b4a   : > { %7341 = vpow2.f32 %v5656_v51 }
0x1b52   : > { %v7340_v42 = vpop.eup %7339 }
0x1b53   : > { %2849 = vrot.lane.b32.xlu0 %v7340_v42, %s7694_s16 }
0x1b54   : > { %v7342_v47 = vpop.eup %7341 }
0x1b55   : > { %v2839_v46 = vadd.f32 1.0, %v7342_v47 }
0x1b57   : > { %7343 = vrcp.f32 %v2839_v46 }
0x1b61   : > { %v7344_v54 = vpop.eup %7343 }
0x1b62   : > { %v2847_v60 = vmul.f32 %v7344_v54, %v2845_v56 }
0x1bc5   : > { %v2850_v55 = vpop.permute.xlu0 %2849 }
0x1bc6   : > { %v2852_v52 = vmul.f32 %v7344_v54, %v2850_v55 }
0x1bc8   : > { %2854 = vrot.lane.b32.xlu0 %v2852_v52, %s7694_s16 }
0x1bcc   : > { %2743 = vrot.lane.b32.xlu0 %v8356_v63, %s7696_s18 }
0x1c3a   : > { %v2855_v59 = vpop.permute.xlu0 %2854 }
0x1c3b   : > { %v2857_v61 = vadd.f32 %v2855_v59, %v2847_v60 }
0x1c3d   : > { %7345 = vtanh.f32 %v2857_v61  ;;  %2870 = vrot.lane.b32.xlu0 %v2857_v61, %s7696_s18 }
0x1c3e   : > { %v2744_v53 = vpop.permute.xlu0 %2743 }
0x1c3f   : > { %2746 = vst.msk [vmem:[#allocation3] sm:$0xf] %vm2731_vm7, %v2744_v53 }
0x1c47   : > { %v7346_v62 = vpop.eup %7345 }
0x1c48   : > { %2860 = vrot.lane.b32.xlu1 %v7346_v62, %s7694_s16 }
0x1caf   : > { %v2871_v58 = vpop.permute.xlu0 %2870 }
0x1cb0   : > { %2873 = vst.msk [vmem:[#allocation3 + $0x4] sm:$0xf] %vm2731_vm7, %v2871_v58 }
0x1cba   : > { %v2861_v63 = vpop.permute.xlu1 %2860 }
0x1cbb   : > { %v2863_v6 = vmul.f32 %v7344_v54, %v2861_v63 }
0x1cbd   : > { %v2880_v7 = vrot.slane %v2863_v6, %v2879_v3  ;;  %2865 = vrot.lane.b32.xlu1 %v2863_v6, %s7695_s21 }
0x1cbf   : > { %v2881_v8 = vcombine.high %v2880_v7, %v2880_v7  ;;  %v2888_v0 = vrot.slane %v2880_v7, %v2879_v3 }
0x1cc1   : > { %v2901_v9 = vrot.slane %v2888_v0, %v2759_v41  ;;  %v2895_v5 = vrot.slane %v2881_v8, %v2879_v3  ;;  %v2896_v4 = vcombine.high %v2888_v0, %v2888_v0 }
0x1cc3   : > { %2914 = vrot.lane.b32.xlu1 %v2901_v9, %s7695_s21  ;;  %v2905_v12 = vrot.slane %v2895_v5, %v2759_v41  ;;  %v2897_v13 = vcombine.high %v2895_v5, %v2895_v5  ;;  %v2909_v14 = vrot.slane %v2896_v4, %v2759_v41 }
0x1cc5   : > { %2916 = vrot.lane.b32.xlu0 %v2905_v12, %s7695_s21  ;;  %v2913_v10 = vrot.slane %v2897_v13, %v2759_v41 }
0x1cc7   : > { %2918 = vrot.lane.b32.xlu1 %v2909_v14, %s7695_s21 }
0x1cc9   : > { %2920 = vrot.lane.b32.xlu0 %v2913_v10, %s7695_s21 }
0x1d2f   : > { %v2866_v30 = vpop.permute.xlu1 %2865 }
0x1d30   : > { %2868 = vst.msk [vmem:[#allocation2 + $0x4] sm:$0xf] %vm2731_vm7, %v2866_v30 }
0x1d35   : > { %v2915_v31 = vpop.permute.xlu1 %2914 }
0x1d36   : > { %2927 = vst.msk [vmem:[#allocation5 + $0x4] sm:$0x1] %vm2926_vm9, %v2915_v31 }
0x1d37   : > { %v2917_v32 = vpop.permute.xlu0 %2916 }
0x1d38   : > { %2928 = vst.msk [vmem:[#allocation5 + $0xc] sm:$0x1] %vm2926_vm9, %v2917_v32 }
0x1d39   : > { %v2919_v33 = vpop.permute.xlu1 %2918 }
0x1d3a   : > { %2929 = vst.msk [vmem:[#allocation5 + $0x14] sm:$0x1] %vm2926_vm9, %v2919_v33 }
0x1d3b   : > { %v2921_v29 = vpop.permute.xlu0 %2920 }
0x1d3c   : > { %2930 = vst.msk [vmem:[#allocation5 + $0x1c] sm:$0x1] %vm2926_vm9, %v2921_v29 }
0x1d3d PF: > { %s2931_s30 = sadd.s32 5, %s7893_s27 }
0x1d3e   : > { %p5657_p8 = scmp.ge.s32.totalorder %s2931_s30, 12 }
0x1d3f   : > { %v6705_v28 = vpack.c.bf16 (!%p5657_p8), %v7928_v16, %v7923_v15  ;;  %v7698_v38 = vmov (!%p5657_p8), 0.0|0.0   ;;  %v6708_v37 = vpack.c.bf16 (!%p5657_p8), %v7938_v18, %v7933_v17  ;;  %vm7699_vm10 = vmmov (!%p5657_p8), 0   ;;  %v2936_v39 = vld [vmem:[#allocation2] sm:$0xf] (!%p5657_p8)  ;;  %v2938_v11 = vld [vmem:[#allocation4 + $0x5] sm:$0x1] (!%p5657_p8) }
0x1d40   : > { %2935 = sbr.rel (%p5657_p8) target bundleno = 8927 (0x22df), region = 138  ;;  %6704 = vmatprep.subr.bf16.mxu0 (!%p5657_p8), %v7698_v38  ;;  %6710 = vmatprep.subr.bf16.mxu1 (!%p5657_p8), %v7698_v38  ;;  %v7700_v34 = vmov (!%p5657_p8), 0.0   ;;  %vm2942_vm11 = vcmask (!%p5657_p8), 261120   ;;  %v2939_v40 = vld [vmem:[#allocation4 + $0xd] sm:$0x1] (!%p5657_p8)  ;;  %s7701_s28 = smov (!%p5657_p8), 32  }
0x1d41   : > { %6706 = vmatpush3.bf16.msra.mxu0 (!%p5657_p8), %v6705_v28  ;;  %6212 = vmatprep.mubr.msk.f32.mxu0 (!%p5657_p8), %vm7699_vm10, %v7700_v34  ;;  %v2940_v45 = vld [vmem:[#allocation4 + $0x15] sm:$0x1] (!%p5657_p8)  ;;  %v2941_v50 = vld [vmem:[#allocation4 + $0x1d] sm:$0x1] (!%p5657_p8)  ;;  %v2937_v54 = vld [vmem:[#allocation3] sm:$0xf] (!%p5657_p8) }
0x1d42   : > { %6707 = vmatprep.subr.bf16.mxu0 (!%p5657_p8), %v7698_v38  ;;  %6231 = vmatprep.mubr.msk.f32.mxu1 (!%p5657_p8), %vm7699_vm10, %v7700_v34  ;;  %v3057_v56 = vrot.slane (!%p5657_p8), %v2937_v54, 1  ;;  %v3058_v60 = vrot.slane (!%p5657_p8), %v2937_v54, 2  ;;  %v3059_v59 = vrot.slane (!%p5657_p8), %v2937_v54, 3  ;;  %vm3145_vm12 = vcmask (!%p5657_p8), 1041409   ;;  %s7702_s23 = smov (!%p5657_p8), 64   ;;  %s7703_s15 = smov (!%p5657_p8), 96  }
0x1d43   : > { %vm3148_vm13 = vcmask (!%p5657_p8), 1042434   ;;  %vm3151_vm14 = vcmask (!%p5657_p8), 1043459   ;;  %vm3156_vm15 = vcmask (!%p5657_p8), 257024   ;;  %vm3187_vm0 = vcmask (!%p5657_p8), 523264  }
0x1d44   : > { %vm3351_vm1 = vcmask (!%p5657_p8), 253952  }
0x1d45   : > { %6709 = vmatpush3.bf16.msra.mxu0 (!%p5657_p8), %v6708_v37 }
0x1d48   : > { %6213 = vmatmul.mubr.msk.f32.vlgmr.msra.gmra.mrb[0].mxu0 %vm2942_vm11, %v2936_v39 }
0x1e1b   : > { %v3012_v36 = vpop.f32.mrb[0].mxu0 }
0x1e1c   : > { %v3017_v35 = vrot.slane %v3012_v36, 1  ;;  %v3024_v43 = vadd.f32 %v3012_v36, %v2938_v11  ;;  %v6214_v44 = vpop.f32.mrb[1].mxu0  ;;  %v3018_v41 = vrot.slane %v3012_v36, 2  ;;  %v3019_v49 = vrot.slane %v3012_v36, 3 }
0x1e1e   : > { %v3025_v48 = vadd.f32 %v3017_v35, %v2939_v40  ;;  %7347 = vtanh.f32 %v3024_v43  ;;  %v3026_v42 = vadd.f32 %v3018_v41, %v2940_v45  ;;  %v3027_v51 = vadd.f32 %v3019_v49, %v2941_v50 }
0x1e1f   : > { %v5659_v53 = vmul.f32 -1.442695, %v3024_v43 }
0x1e20   : > { %7349 = vtanh.f32 %v3025_v48  ;;  %v5660_v61 = vmul.f32 -1.442695, %v3025_v48  ;;  %v5661_v62 = vmul.f32 -1.442695, %v3026_v42  ;;  %v5662_v58 = vmul.f32 -1.442695, %v3027_v51 }
0x1e21   : > { %7351 = vtanh.f32 %v3026_v42 }
0x1e22   : > { %7353 = vtanh.f32 %v3027_v51 }
0x1e23   : > { %7355 = vpow2.f32 %v5660_v61 }
0x1e24   : > { %7357 = vpow2.f32 %v5659_v53  ;;  %v6717_v53 = vpack.c.bf16 %v7968_v24, %v7963_v23 }
0x1e25   : > { %7359 = vpow2.f32 %v5661_v62 }
0x1e26   : > { %7361 = vpow2.f32 %v5662_v58  ;;  %v3173_v58 = vld [vmem:[#allocation2 + $0x4] sm:$0xf] }
0x1e28   : > { %v7348_v47 = vpop.eup %7347 }
0x1e29   : > { %3080 = vrot.lane.b32.xlu1 %v7348_v47, %s7701_s28 }
0x1e2a   : > { %v7350_v46 = vpop.eup %7349 }
0x1e2b   : > { %3082 = vrot.lane.b32.xlu0 %v7350_v46, %s7701_s28  ;;  %v7352_v55 = vpop.eup %7351 }
0x1e2c   : > { %v7354_v52 = vpop.eup %7353 }
0x1e2d   : > { %3086 = vrot.lane.b32.xlu1 %v7354_v52, %s7701_s28  ;;  %v7356_v57 = vpop.eup %7355 }
0x1e2e   : > { %v7358_v1 = vpop.eup %7357  ;;  %v3041_v2 = vadd.f32 1.0, %v7356_v57  ;;  %v6720_v57 = vpack.c.bf16 %v7978_v26, %v7973_v25 }
0x1e2f   : > { %3084 = vrot.lane.b32.xlu0 %v7352_v55, %s7701_s28  ;;  %v7360_v3 = vpop.eup %7359  ;;  %v3040_v63 = vadd.f32 1.0, %v7358_v1 }
0x1e30   : > { %v3042_v6 = vadd.f32 1.0, %v7360_v3  ;;  %7363 = vrcp.f32 %v3041_v2  ;;  %v7362_v7 = vpop.eup %7361  ;;  %v3175_v2 = vld [vmem:[#allocation3 + $0x4] sm:$0xf] }
0x1e31   : > { %3064 = vrot.lane.b32.xlu1 %v3058_v60, %s7701_s28  ;;  %7365 = vrcp.f32 %v3040_v63  ;;  %v3043_v8 = vadd.f32 1.0, %v7362_v7  ;;  %v6714_v60 = vpack.c.bf16 %v7958_v22, %v7953_v21 }
0x1e32   : > { %7367 = vrcp.f32 %v3042_v6 }
0x1e33   : > { %3062 = vrot.lane.b32.xlu0 %v3057_v56, %s7701_s28  ;;  %7369 = vrcp.f32 %v3043_v8  ;;  %v6711_v56 = vpack.c.bf16 %v7948_v20, %v7943_v19 }
0x1e35   : > { %3066 = vrot.lane.b32.xlu1 %v3059_v59, %s7701_s28  ;;  %6712 = vmatpush3.bf16.msra.mxu1 %v6711_v56 }
0x1e36   : > { %6713 = vmatprep.subr.bf16.mxu1 %v7698_v38 }
0x1e37   : > { %3060 = vrot.lane.b32.xlu0 %v2937_v54, %s7701_s28 }
0x1e39   : > { %6715 = vmatpush3.bf16.msra.mxu1 %v6714_v60 }
0x1e3a   : > { %v8415_v0 = vpop.eup %7363  ;;  %6716 = vmatprep.subr.bf16.mxu1 %v7698_v38 }
0x1e3b   : > { %v8418_v12 = vpop.eup %7365 }
0x1e3c   : > { %v8421_v13 = vpop.eup %7367 }
0x1e3d   : > { %v8427_v32 = vpop.eup %7369  ;;  %6718 = vmatpush3.bf16.msra.mxu1 %v6717_v53 }
0x1e3e   : > { %6719 = vmatprep.subr.bf16.mxu1 %v7698_v38 }
0x1e41   : > { %6721 = vmatpush3.bf16.msra.mxu1 %v6720_v57 }
0x1e9b   : > { %v3081_v9 = vpop.permute.xlu1 %3080 }
0x1e9c   : > { %v3092_v10 = vmul.f32 %v8418_v12, %v3081_v9 }
0x1e9d   : > { %v3083_v5 = vpop.permute.xlu0 %3082 }
0x1e9e   : > { %v3093_v4 = vmul.f32 %v8415_v0, %v3083_v5 }
0x1e9f   : > { %v3087_v31 = vpop.permute.xlu1 %3086 }
0x1ea0   : > { %3102 = vrot.lane.b32.xlu0 %v3093_v4, %s7701_s28  ;;  %v3095_v33 = vmul.f32 %v8427_v32, %v3087_v31 }
0x1ea1   : > { %v3085_v14 = vpop.permute.xlu0 %3084 }
0x1ea2   : > { %v3094_v30 = vmul.f32 %v8421_v13, %v3085_v14 }
0x1ea3   : > { %v3065_v28 = vpop.permute.xlu1 %3064 }
0x1ea4   : > { %3104 = vrot.lane.b32.xlu1 %v3094_v30, %s7701_s28  ;;  %3100 = vrot.lane.b32.xlu0 %v3092_v10, %s7701_s28  ;;  %v3074_v36 = vmul.f32 %v8421_v13, %v3065_v28 }
0x1ea5   : > { %v3063_v29 = vpop.permute.xlu0 %3062 }
0x1ea6   : > { %v3073_v34 = vmul.f32 %v8415_v0, %v3063_v29 }
0x1ea7   : > { %v3067_v39 = vpop.permute.xlu1 %3066 }
0x1ea8   : > { %3106 = vrot.lane.b32.xlu1 %v3095_v33, %s7701_s28  ;;  %v3075_v48 = vmul.f32 %v8427_v32, %v3067_v39  ;;  %v3182_v33 = vlaneseq }
0x1ea9   : > { %v3061_v37 = vpop.permute.xlu0 %3060 }
0x1eaa   : > { %v3072_v35 = vmul.f32 %v8418_v12, %v3061_v37  ;;  %v3183_v29 = vshrl.u32 %v3182_v33, 7 }
0x1f12   : > { %v3103_v11 = vpop.permute.xlu0 %3102 }
0x1f13   : > { %v3113_v40 = vadd.f32 %v3103_v11, %v3073_v34 }
0x1f15   : > { %7371 = vtanh.f32 %v3113_v40  ;;  %v3162_v41 = vrot.slane %v3113_v40, 7 }
0x1f16   : > { %v3105_v43 = vpop.permute.xlu1 %3104  ;;  %v3101_v44 = vpop.permute.xlu0 %3100 }
0x1f17   : > { %v3114_v45 = vadd.f32 %v3105_v43, %v3074_v36  ;;  %v3112_v49 = vadd.f32 %v3101_v44, %v3072_v35 }
0x1f19   : > { %7373 = vtanh.f32 %v3114_v45  ;;  %v3164_v50 = vrot.slane %v3114_v45, 6  ;;  %v3163_v42 = vsel %vm3145_vm12, %v3162_v41, %v3112_v49 }
0x1f1a   : > { %7375 = vtanh.f32 %v3112_v49  ;;  %v3107_v51 = vpop.permute.xlu1 %3106 }
0x1f1b   : > { %v3115_v47 = vadd.f32 %v3107_v51, %v3075_v48  ;;  %v3165_v46 = vsel %vm3148_vm13, %v3164_v50, %v3163_v42 }
0x1f1d   : > { %7377 = vtanh.f32 %v3115_v47  ;;  %v3166_v54 = vrot.slane %v3115_v47, 5 }
0x1f1f   : > { %v7372_v55 = vpop.eup %7371  ;;  %v8438_v52 = vsel %vm3151_vm14, %v3166_v54, %v3165_v46  ;;  %v7704_v46 = vmov 1966171168  }
0x1f20   : > { %3126 = vrot.lane.b32.xlu0 %v7372_v55, %s7701_s28  ;;  %v3300_v54 = vunpack.c.l.s4 %v7704_v46 }
0x1f22   : > { %v3301_v55 = vunpack.c.0.s8 %v3300_v54 }
0x1f23   : > { %v7374_v59 = vpop.eup %7373 }
0x1f24   : > { %v7376_v61 = vpop.eup %7375  ;;  %3128 = vrot.lane.b32.xlu1 %v7374_v59, %s7701_s28  ;;  %v3304_v56 = vsub.s32 %v3301_v55, %v3183_v29 }
0x1f25   : > { %3124 = vrot.lane.b32.xlu0 %v7376_v61, %s7701_s28 }
0x1f27   : > { %v7378_v62 = vpop.eup %7377 }
0x1f28   : > { %3130 = vrot.lane.b32.xlu1 %v7378_v62, %s7701_s28 }
0x1f2c   : > { %3177 = vrot.lane.b32.xlu1 %v3173_v58, %s7701_s28 }
0x1f30   : > { %3269 = vrot.lane.b32.xlu1 %v3175_v2, %s7701_s28 }
0x1f92   : > { %v3127_v1 = vpop.permute.xlu0 %3126 }
0x1f93   : > { %v3137_v3 = vmul.f32 %v8415_v0, %v3127_v1 }
0x1f95   : > { %v3144_v9 = vrot.slane %v3137_v3, 7 }
0x1f96   : > { %v3129_v63 = vpop.permute.xlu1 %3128 }
0x1f97   : > { %v3138_v6 = vmul.f32 %v8421_v13, %v3129_v63  ;;  %v3125_v7 = vpop.permute.xlu0 %3124 }
0x1f98   : > { %v3136_v8 = vmul.f32 %v8418_v12, %v3125_v7 }
0x1f99   : > { %v3147_v5 = vrot.slane %v3138_v6, 6 }
0x1f9a   : > { %v3131_v4 = vpop.permute.xlu1 %3130  ;;  %v3146_v38 = vsel %vm3145_vm12, %v3144_v9, %v3136_v8 }
0x1f9b   : > { %v3139_v14 = vmul.f32 %v8427_v32, %v3131_v4  ;;  %v3149_v30 = vsel %vm3148_vm13, %v3147_v5, %v3146_v38  ;;  %v3184_v32 = vsub.s32 0, %v3183_v29 }
0x1f9d   : > { %v3150_v10 = vrot.slane %v3139_v14, 5  ;;  %v3185_v28 = vrot.slane %v7983_v27, %v3184_v32 }
0x1f9e   : > { %v3178_v31 = vpop.permute.xlu1 %3177 }
0x1f9f   : > { %v3152_v0 = vsel %vm3151_vm14, %v3150_v10, %v3149_v30 }
0x1fa0   : > { %3153 = vrot.lane.b32.xlu0 %v3152_v0, %s7702_s23 }
0x1fa2   : > { %v3270_v45 = vpop.permute.xlu1 %3269 }
0x2012   : > { %v3154_v13 = vpop.permute.xlu0 %3153 }
0x2013   : > { %3157 = vst.msk [vmem:[#allocation2] sm:$0xf] %vm3156_vm15, %v3154_v13  ;;  %v3180_v12 = vsel %vm2942_vm11, %v3154_v13, %v3178_v31 }
0x2014   : > { %6232 = vmatmul.mubr.msk.f32.vlgmr.msra.gmra.mrb[0].mxu1 %vm3187_vm0, %v3180_v12 }
0x20e7   : > { %v3257_v37 = vpop.f32.mrb[0].mxu1 }
0x20e8   : > { %v3258_v34 = vadd.f32 %v3257_v37, %v3185_v28  ;;  %v6233_v39 = vpop.f32.mrb[1].mxu1 }
0x20ea   : > { %7379 = vtanh.f32 %v3258_v34  ;;  %v5664_v40 = vmul.f32 -1.442695, %v3258_v34 }
0x20ec   : > { %7381 = vpow2.f32 %v5664_v40 }
0x20f4   : > { %v7380_v11 = vpop.eup %7379 }
0x20f5   : > { %3274 = vrot.lane.b32.xlu0 %v7380_v11, %s7701_s28 }
0x20f6   : > { %v7382_v36 = vpop.eup %7381 }
0x20f7   : > { %v3264_v35 = vadd.f32 1.0, %v7382_v36 }
0x20f9   : > { %7383 = vrcp.f32 %v3264_v35 }
0x2103   : > { %v7384_v43 = vpop.eup %7383 }
0x2104   : > { %v3272_v49 = vmul.f32 %v7384_v43, %v3270_v45 }
0x2167   : > { %v3275_v44 = vpop.permute.xlu0 %3274 }
0x2168   : > { %v3277_v41 = vmul.f32 %v7384_v43, %v3275_v44 }
0x216a   : > { %3279 = vrot.lane.b32.xlu0 %v3277_v41, %s7701_s28 }
0x216e   : > { %3168 = vrot.lane.b32.xlu0 %v8438_v52, %s7703_s15 }
0x21dc   : > { %v3280_v48 = vpop.permute.xlu0 %3279 }
0x21dd   : > { %v3282_v50 = vadd.f32 %v3280_v48, %v3272_v49 }
0x21df   : > { %7385 = vtanh.f32 %v3282_v50  ;;  %3295 = vrot.lane.b32.xlu0 %v3282_v50, %s7703_s15 }
0x21e0   : > { %v3169_v42 = vpop.permute.xlu0 %3168 }
0x21e1   : > { %3171 = vst.msk [vmem:[#allocation3] sm:$0xf] %vm3156_vm15, %v3169_v42 }
0x21e9   : > { %v7386_v51 = vpop.eup %7385 }
0x21ea   : > { %3285 = vrot.lane.b32.xlu1 %v7386_v51, %s7701_s28 }
0x2251   : > { %v3296_v47 = vpop.permute.xlu0 %3295 }
0x2252   : > { %3298 = vst.msk [vmem:[#allocation3 + $0x4] sm:$0xf] %vm3156_vm15, %v3296_v47 }
0x225c   : > { %v3286_v52 = vpop.permute.xlu1 %3285 }
0x225d   : > { %v3288_v60 = vmul.f32 %v7384_v43, %v3286_v52 }
0x225f   : > { %v3305_v59 = vrot.slane %v3288_v60, %v3304_v56  ;;  %3290 = vrot.lane.b32.xlu1 %v3288_v60, %s7702_s23 }
0x2261   : > { %v3306_v61 = vcombine.high %v3305_v59, %v3305_v59  ;;  %v3313_v53 = vrot.slane %v3305_v59, %v3304_v56 }
0x2263   : > { %v3326_v62 = vrot.slane %v3313_v53, %v3184_v32  ;;  %v3320_v58 = vrot.slane %v3306_v61, %v3304_v56  ;;  %v3321_v57 = vcombine.high %v3313_v53, %v3313_v53 }
0x2265   : > { %3339 = vrot.lane.b32.xlu1 %v3326_v62, %s7702_s23  ;;  %v3330_v1 = vrot.slane %v3320_v58, %v3184_v32  ;;  %v3322_v2 = vcombine.high %v3320_v58, %v3320_v58  ;;  %v3334_v3 = vrot.slane %v3321_v57, %v3184_v32 }
0x2267   : > { %3341 = vrot.lane.b32.xlu0 %v3330_v1, %s7702_s23  ;;  %v3338_v63 = vrot.slane %v3322_v2, %v3184_v32 }
0x2269   : > { %3343 = vrot.lane.b32.xlu1 %v3334_v3, %s7702_s23 }
0x226b   : > { %3345 = vrot.lane.b32.xlu0 %v3338_v63, %s7702_s23 }
0x22d1   : > { %v3291_v6 = vpop.permute.xlu1 %3290 }
0x22d2   : > { %3293 = vst.msk [vmem:[#allocation2 + $0x4] sm:$0xf] %vm3156_vm15, %v3291_v6 }
0x22d7   : > { %v3340_v7 = vpop.permute.xlu1 %3339 }
0x22d8   : > { %3352 = vst.msk [vmem:[#allocation5 + $0x5] sm:$0x1] %vm3351_vm1, %v3340_v7 }
0x22d9   : > { %v3342_v8 = vpop.permute.xlu0 %3341 }
0x22da   : > { %3353 = vst.msk [vmem:[#allocation5 + $0xd] sm:$0x1] %vm3351_vm1, %v3342_v8 }
0x22db   : > { %v3344_v9 = vpop.permute.xlu1 %3343 }
0x22dc   : > { %3354 = vst.msk [vmem:[#allocation5 + $0x15] sm:$0x1] %vm3351_vm1, %v3344_v9 }
0x22dd   : > { %v3346_v5 = vpop.permute.xlu0 %3345 }
0x22de   : > { %3355 = vst.msk [vmem:[#allocation5 + $0x1d] sm:$0x1] %vm3351_vm1, %v3346_v5 }
0x22df PF: > { %s3356_s25 = sadd.s32 6, %s7893_s27 }
0x22e0   : > { %p5665_p11 = scmp.ge.s32.totalorder %s3356_s25, 12 }
0x22e1   : > { %v6723_v4 = vpack.c.bf16 (!%p5665_p11), %v7928_v16, %v7923_v15  ;;  %v7705_v38 = vmov (!%p5665_p11), 0.0|0.0   ;;  %v6726_v14 = vpack.c.bf16 (!%p5665_p11), %v7938_v18, %v7933_v17  ;;  %vm7706_vm2 = vmmov (!%p5665_p11), 0   ;;  %v3361_v30 = vld [vmem:[#allocation2] sm:$0xf] (!%p5665_p11)  ;;  %v3363_v0 = vld [vmem:[#allocation4 + $0x6] sm:$0x1] (!%p5665_p11) }
0x22e2   : > { %3360 = sbr.rel (%p5665_p11) target bundleno = 10369 (0x2881), region = 142  ;;  %6722 = vmatprep.subr.bf16.mxu0 (!%p5665_p11), %v7705_v38  ;;  %6728 = vmatprep.subr.bf16.mxu1 (!%p5665_p11), %v7705_v38  ;;  %v7707_v10 = vmov (!%p5665_p11), 0.0   ;;  %vm3367_vm3 = vcmask (!%p5665_p11), 261120   ;;  %v3364_v31 = vld [vmem:[#allocation4 + $0xe] sm:$0x1] (!%p5665_p11)  ;;  %s7708_s0 = smov (!%p5665_p11), 32  }
0x22e3   : > { %6724 = vmatpush3.bf16.msra.mxu0 (!%p5665_p11), %v6723_v4  ;;  %6242 = vmatprep.mubr.msk.f32.mxu0 (!%p5665_p11), %vm7706_vm2, %v7707_v10  ;;  %v3365_v28 = vld [vmem:[#allocation4 + $0x16] sm:$0x1] (!%p5665_p11)  ;;  %v3366_v39 = vld [vmem:[#allocation4 + $0x1e] sm:$0x1] (!%p5665_p11)  ;;  %v3362_v43 = vld [vmem:[#allocation3] sm:$0xf] (!%p5665_p11) }
0x22e4   : > { %6725 = vmatprep.subr.bf16.mxu0 (!%p5665_p11), %v7705_v38  ;;  %6261 = vmatprep.mubr.msk.f32.mxu1 (!%p5665_p11), %vm7706_vm2, %v7707_v10  ;;  %v3482_v45 = vrot.slane (!%p5665_p11), %v3362_v43, 1  ;;  %v3483_v49 = vrot.slane (!%p5665_p11), %v3362_v43, 2  ;;  %v3484_v48 = vrot.slane (!%p5665_p11), %v3362_v43, 3  ;;  %vm3570_vm4 = vcmask (!%p5665_p11), 1041409   ;;  %s7709_s20 = smov (!%p5665_p11), 64   ;;  %s7710_s16 = smov (!%p5665_p11), 96  }
0x22e5   : > { %vm3573_vm5 = vcmask (!%p5665_p11), 1042434   ;;  %vm3576_vm6 = vcmask (!%p5665_p11), 1043459   ;;  %vm3581_vm7 = vcmask (!%p5665_p11), 257024   ;;  %vm3612_vm8 = vcmask (!%p5665_p11), 523264  }
0x22e6   : > { %vm3776_vm9 = vcmask (!%p5665_p11), 253952  }
0x22e7   : > { %6727 = vmatpush3.bf16.msra.mxu0 (!%p5665_p11), %v6726_v14 }
0x22ea   : > { %6243 = vmatmul.mubr.msk.f32.vlgmr.msra.gmra.mrb[0].mxu0 %vm3367_vm3, %v3361_v30 }
0x23bd   : > { %v3437_v13 = vpop.f32.mrb[0].mxu0 }
0x23be   : > { %v3442_v12 = vrot.slane %v3437_v13, 1  ;;  %v3449_v33 = vadd.f32 %v3437_v13, %v3363_v0  ;;  %v6244_v29 = vpop.f32.mrb[1].mxu0  ;;  %v3443_v32 = vrot.slane %v3437_v13, 2  ;;  %v3444_v37 = vrot.slane %v3437_v13, 3 }
0x23c0   : > { %v3450_v34 = vadd.f32 %v3442_v12, %v3364_v31  ;;  %7387 = vtanh.f32 %v3449_v33  ;;  %v3451_v11 = vadd.f32 %v3443_v32, %v3365_v28  ;;  %v3452_v40 = vadd.f32 %v3444_v37, %v3366_v39 }
0x23c1   : > { %v5667_v42 = vmul.f32 -1.442695, %v3449_v33 }
0x23c2   : > { %7389 = vtanh.f32 %v3450_v34  ;;  %v5668_v50 = vmul.f32 -1.442695, %v3450_v34  ;;  %v5669_v51 = vmul.f32 -1.442695, %v3451_v11  ;;  %v5670_v47 = vmul.f32 -1.442695, %v3452_v40 }
0x23c3   : > { %7391 = vtanh.f32 %v3451_v11 }
0x23c4   : > { %7393 = vtanh.f32 %v3452_v40 }
0x23c5   : > { %7395 = vpow2.f32 %v5668_v50 }
0x23c6   : > { %7397 = vpow2.f32 %v5667_v42  ;;  %v6735_v42 = vpack.c.bf16 %v7968_v24, %v7963_v23 }
0x23c7   : > { %7399 = vpow2.f32 %v5669_v51 }
0x23c8   : > { %7401 = vpow2.f32 %v5670_v47  ;;  %v3598_v47 = vld [vmem:[#allocation2 + $0x4] sm:$0xf] }
0x23ca   : > { %v7388_v36 = vpop.eup %7387 }
0x23cb   : > { %3505 = vrot.lane.b32.xlu1 %v7388_v36, %s7708_s0 }
0x23cc   : > { %v7390_v35 = vpop.eup %7389 }
0x23cd   : > { %3507 = vrot.lane.b32.xlu0 %v7390_v35, %s7708_s0  ;;  %v7392_v44 = vpop.eup %7391 }
0x23ce   : > { %v7394_v41 = vpop.eup %7393 }
0x23cf   : > { %3511 = vrot.lane.b32.xlu1 %v7394_v41, %s7708_s0  ;;  %v7396_v46 = vpop.eup %7395 }
0x23d0   : > { %v7398_v54 = vpop.eup %7397  ;;  %v3466_v55 = vadd.f32 1.0, %v7396_v46  ;;  %v6738_v46 = vpack.c.bf16 %v7978_v26, %v7973_v25 }
0x23d1   : > { %3509 = vrot.lane.b32.xlu0 %v7392_v44, %s7708_s0  ;;  %v7400_v56 = vpop.eup %7399  ;;  %v3465_v52 = vadd.f32 1.0, %v7398_v54 }
0x23d2   : > { %v3467_v60 = vadd.f32 1.0, %v7400_v56  ;;  %7403 = vrcp.f32 %v3466_v55  ;;  %v7402_v59 = vpop.eup %7401  ;;  %v3600_v55 = vld [vmem:[#allocation3 + $0x4] sm:$0xf] }
0x23d3   : > { %3489 = vrot.lane.b32.xlu1 %v3483_v49, %s7708_s0  ;;  %7405 = vrcp.f32 %v3465_v52  ;;  %v3468_v61 = vadd.f32 1.0, %v7402_v59  ;;  %v6732_v49 = vpack.c.bf16 %v7958_v22, %v7953_v21 }
0x23d4   : > { %7407 = vrcp.f32 %v3467_v60 }
0x23d5   : > { %3487 = vrot.lane.b32.xlu0 %v3482_v45, %s7708_s0  ;;  %7409 = vrcp.f32 %v3468_v61  ;;  %v6729_v45 = vpack.c.bf16 %v7948_v20, %v7943_v19 }
0x23d7   : > { %3491 = vrot.lane.b32.xlu1 %v3484_v48, %s7708_s0  ;;  %6730 = vmatpush3.bf16.msra.mxu1 %v6729_v45 }
0x23d8   : > { %6731 = vmatprep.subr.bf16.mxu1 %v7705_v38 }
0x23d9   : > { %3485 = vrot.lane.b32.xlu0 %v3362_v43, %s7708_s0 }
0x23db   : > { %6733 = vmatpush3.bf16.msra.mxu1 %v6732_v49 }
0x23dc   : > { %v8497_v53 = vpop.eup %7403  ;;  %6734 = vmatprep.subr.bf16.mxu1 %v7705_v38 }
0x23dd   : > { %v8500_v1 = vpop.eup %7405 }
0x23de   : > { %v8503_v2 = vpop.eup %7407 }
0x23df   : > { %v8509_v8 = vpop.eup %7409  ;;  %6736 = vmatpush3.bf16.msra.mxu1 %v6735_v42 }
0x23e0   : > { %6737 = vmatprep.subr.bf16.mxu1 %v7705_v38 }
0x23e3   : > { %6739 = vmatpush3.bf16.msra.mxu1 %v6738_v46 }
0x243d   : > { %v3506_v62 = vpop.permute.xlu1 %3505 }
0x243e   : > { %v3517_v63 = vmul.f32 %v8500_v1, %v3506_v62 }
0x243f   : > { %v3508_v58 = vpop.permute.xlu0 %3507 }
0x2440   : > { %v3518_v57 = vmul.f32 %v8497_v53, %v3508_v58 }
0x2441   : > { %v3512_v7 = vpop.permute.xlu1 %3511 }
0x2442   : > { %3527 = vrot.lane.b32.xlu0 %v3518_v57, %s7708_s0  ;;  %v3520_v9 = vmul.f32 %v8509_v8, %v3512_v7 }
0x2443   : > { %v3510_v3 = vpop.permute.xlu0 %3509 }
0x2444   : > { %v3519_v6 = vmul.f32 %v8503_v2, %v3510_v3 }
0x2445   : > { %v3490_v4 = vpop.permute.xlu1 %3489 }
0x2446   : > { %3529 = vrot.lane.b32.xlu1 %v3519_v6, %s7708_s0  ;;  %3525 = vrot.lane.b32.xlu0 %v3517_v63, %s7708_s0  ;;  %v3499_v13 = vmul.f32 %v8503_v2, %v3490_v4 }
0x2447   : > { %v3488_v5 = vpop.permute.xlu0 %3487 }
0x2448   : > { %v3498_v10 = vmul.f32 %v8497_v53, %v3488_v5 }
0x2449   : > { %v3492_v30 = vpop.permute.xlu1 %3491 }
0x244a   : > { %3531 = vrot.lane.b32.xlu1 %v3520_v9, %s7708_s0  ;;  %v3500_v34 = vmul.f32 %v8509_v8, %v3492_v30  ;;  %v3607_v9 = vlaneseq }
0x244b   : > { %v3486_v14 = vpop.permute.xlu0 %3485 }
0x244c   : > { %v3497_v12 = vmul.f32 %v8500_v1, %v3486_v14  ;;  %v3608_v5 = vshrl.u32 %v3607_v9, 7 }
0x24b4   : > { %v3528_v0 = vpop.permute.xlu0 %3527 }
0x24b5   : > { %v3538_v31 = vadd.f32 %v3528_v0, %v3498_v10 }
0x24b7   : > { %7411 = vtanh.f32 %v3538_v31  ;;  %v3587_v32 = vrot.slane %v3538_v31, 7 }
0x24b8   : > { %v3530_v33 = vpop.permute.xlu1 %3529  ;;  %v3526_v29 = vpop.permute.xlu0 %3525 }
0x24b9   : > { %v3539_v28 = vadd.f32 %v3530_v33, %v3499_v13  ;;  %v3537_v37 = vadd.f32 %v3526_v29, %v3497_v12 }
0x24bb   : > { %7413 = vtanh.f32 %v3539_v28  ;;  %v3589_v39 = vrot.slane %v3539_v28, 6  ;;  %v3588_v11 = vsel %vm3570_vm4, %v3587_v32, %v3537_v37 }
0x24bc   : > { %7415 = vtanh.f32 %v3537_v37  ;;  %v3532_v40 = vpop.permute.xlu1 %3531 }
0x24bd   : > { %v3540_v36 = vadd.f32 %v3532_v40, %v3500_v34  ;;  %v3590_v35 = vsel %vm3573_vm5, %v3589_v39, %v3588_v11 }
0x24bf   : > { %7417 = vtanh.f32 %v3540_v36  ;;  %v3591_v43 = vrot.slane %v3540_v36, 5 }
0x24c1   : > { %v7412_v44 = vpop.eup %7411  ;;  %v8520_v41 = vsel %vm3576_vm6, %v3591_v43, %v3590_v35  ;;  %v7711_v35 = vmov 1966171168  }
0x24c2   : > { %3551 = vrot.lane.b32.xlu0 %v7412_v44, %s7708_s0  ;;  %v3725_v43 = vunpack.c.l.s4 %v7711_v35 }
0x24c4   : > { %v3726_v44 = vunpack.c.0.s8 %v3725_v43 }
0x24c5   : > { %v7414_v48 = vpop.eup %7413 }
0x24c6   : > { %v7416_v50 = vpop.eup %7415  ;;  %3553 = vrot.lane.b32.xlu1 %v7414_v48, %s7708_s0  ;;  %v3729_v45 = vsub.s32 %v3726_v44, %v3608_v5 }
0x24c7   : > { %3549 = vrot.lane.b32.xlu0 %v7416_v50, %s7708_s0 }
0x24c9   : > { %v7418_v51 = vpop.eup %7417 }
0x24ca   : > { %3555 = vrot.lane.b32.xlu1 %v7418_v51, %s7708_s0 }
0x24ce   : > { %3602 = vrot.lane.b32.xlu1 %v3598_v47, %s7708_s0 }
0x24d2   : > { %3694 = vrot.lane.b32.xlu1 %v3600_v55, %s7708_s0 }
0x2534   : > { %v3552_v54 = vpop.permute.xlu0 %3551 }
0x2535   : > { %v3562_v56 = vmul.f32 %v8497_v53, %v3552_v54 }
0x2537   : > { %v3569_v62 = vrot.slane %v3562_v56, 7 }
0x2538   : > { %v3554_v52 = vpop.permute.xlu1 %3553 }
0x2539   : > { %v3563_v60 = vmul.f32 %v8503_v2, %v3554_v52  ;;  %v3550_v59 = vpop.permute.xlu0 %3549 }
0x253a   : > { %v3561_v61 = vmul.f32 %v8500_v1, %v3550_v59 }
0x253b   : > { %v3572_v58 = vrot.slane %v3563_v60, 6 }
0x253c   : > { %v3556_v57 = vpop.permute.xlu1 %3555  ;;  %v3571_v38 = vsel %vm3570_vm4, %v3569_v62, %v3561_v61 }
0x253d   : > { %v3564_v3 = vmul.f32 %v8509_v8, %v3556_v57  ;;  %v3574_v6 = vsel %vm3573_vm5, %v3572_v58, %v3571_v38  ;;  %v3609_v8 = vsub.s32 0, %v3608_v5 }
0x253f   : > { %v3575_v63 = vrot.slane %v3564_v3, 5  ;;  %v3610_v4 = vrot.slane %v7983_v27, %v3609_v8 }
0x2540   : > { %v3603_v7 = vpop.permute.xlu1 %3602 }
0x2541   : > { %v3577_v53 = vsel %vm3576_vm6, %v3575_v63, %v3574_v6 }
0x2542   : > { %3578 = vrot.lane.b32.xlu0 %v3577_v53, %s7709_s20 }
0x2544   : > { %v3695_v28 = vpop.permute.xlu1 %3694 }
0x25b4   : > { %v3579_v2 = vpop.permute.xlu0 %3578 }
0x25b5   : > { %3582 = vst.msk [vmem:[#allocation2] sm:$0xf] %vm3581_vm7, %v3579_v2  ;;  %v3605_v1 = vsel %vm3367_vm3, %v3579_v2, %v3603_v7 }
0x25b6   : > { %6262 = vmatmul.mubr.msk.f32.vlgmr.msra.gmra.mrb[0].mxu1 %vm3612_vm8, %v3605_v1 }
0x2689   : > { %v3682_v14 = vpop.f32.mrb[0].mxu1 }
0x268a   : > { %v3683_v10 = vadd.f32 %v3682_v14, %v3610_v4  ;;  %v6263_v30 = vpop.f32.mrb[1].mxu1 }
0x268c   : > { %7419 = vtanh.f32 %v3683_v10  ;;  %v5672_v31 = vmul.f32 -1.442695, %v3683_v10 }
0x268e   : > { %7421 = vpow2.f32 %v5672_v31 }
0x2696   : > { %v7420_v0 = vpop.eup %7419 }
0x2697   : > { %3699 = vrot.lane.b32.xlu0 %v7420_v0, %s7708_s0 }
0x2698   : > { %v7422_v13 = vpop.eup %7421 }
0x2699   : > { %v3689_v12 = vadd.f32 1.0, %v7422_v13 }
0x269b   : > { %7423 = vrcp.f32 %v3689_v12 }
0x26a5   : > { %v7424_v33 = vpop.eup %7423 }
0x26a6   : > { %v3697_v37 = vmul.f32 %v7424_v33, %v3695_v28 }
0x2709   : > { %v3700_v29 = vpop.permute.xlu0 %3699 }
0x270a   : > { %v3702_v32 = vmul.f32 %v7424_v33, %v3700_v29 }
0x270c   : > { %3704 = vrot.lane.b32.xlu0 %v3702_v32, %s7708_s0 }
0x2710   : > { %3593 = vrot.lane.b32.xlu0 %v8520_v41, %s7710_s16 }
0x277e   : > { %v3705_v34 = vpop.permute.xlu0 %3704 }
0x277f   : > { %v3707_v39 = vadd.f32 %v3705_v34, %v3697_v37 }
0x2781   : > { %7425 = vtanh.f32 %v3707_v39  ;;  %3720 = vrot.lane.b32.xlu0 %v3707_v39, %s7710_s16 }
0x2782   : > { %v3594_v11 = vpop.permute.xlu0 %3593 }
0x2783   : > { %3596 = vst.msk [vmem:[#allocation3] sm:$0xf] %vm3581_vm7, %v3594_v11 }
0x278b   : > { %v7426_v40 = vpop.eup %7425 }
0x278c   : > { %3710 = vrot.lane.b32.xlu1 %v7426_v40, %s7708_s0 }
0x27f3   : > { %v3721_v36 = vpop.permute.xlu0 %3720 }
0x27f4   : > { %3723 = vst.msk [vmem:[#allocation3 + $0x4] sm:$0xf] %vm3581_vm7, %v3721_v36 }
0x27fe   : > { %v3711_v41 = vpop.permute.xlu1 %3710 }
0x27ff   : > { %v3713_v49 = vmul.f32 %v7424_v33, %v3711_v41 }
0x2801   : > { %v3730_v48 = vrot.slane %v3713_v49, %v3729_v45  ;;  %3715 = vrot.lane.b32.xlu1 %v3713_v49, %s7709_s20 }
0x2803   : > { %v3731_v50 = vcombine.high %v3730_v48, %v3730_v48  ;;  %v3738_v42 = vrot.slane %v3730_v48, %v3729_v45 }
0x2805   : > { %v3751_v51 = vrot.slane %v3738_v42, %v3609_v8  ;;  %v3745_v47 = vrot.slane %v3731_v50, %v3729_v45  ;;  %v3746_v46 = vcombine.high %v3738_v42, %v3738_v42 }
0x2807   : > { %3764 = vrot.lane.b32.xlu1 %v3751_v51, %s7709_s20  ;;  %v3755_v54 = vrot.slane %v3745_v47, %v3609_v8  ;;  %v3747_v55 = vcombine.high %v3745_v47, %v3745_v47  ;;  %v3759_v56 = vrot.slane %v3746_v46, %v3609_v8 }
0x2809   : > { %3766 = vrot.lane.b32.xlu0 %v3755_v54, %s7709_s20  ;;  %v3763_v52 = vrot.slane %v3747_v55, %v3609_v8 }
0x280b   : > { %3768 = vrot.lane.b32.xlu1 %v3759_v56, %s7709_s20 }
0x280d   : > { %3770 = vrot.lane.b32.xlu0 %v3763_v52, %s7709_s20 }
0x2873   : > { %v3716_v60 = vpop.permute.xlu1 %3715 }
0x2874   : > { %3718 = vst.msk [vmem:[#allocation2 + $0x4] sm:$0xf] %vm3581_vm7, %v3716_v60 }
0x2879   : > { %v3765_v59 = vpop.permute.xlu1 %3764 }
0x287a   : > { %3777 = vst.msk [vmem:[#allocation5 + $0x6] sm:$0x1] %vm3776_vm9, %v3765_v59 }
0x287b   : > { %v3767_v61 = vpop.permute.xlu0 %3766 }
0x287c   : > { %3778 = vst.msk [vmem:[#allocation5 + $0xe] sm:$0x1] %vm3776_vm9, %v3767_v61 }
0x287d   : > { %v3769_v62 = vpop.permute.xlu1 %3768 }
0x287e   : > { %3779 = vst.msk [vmem:[#allocation5 + $0x16] sm:$0x1] %vm3776_vm9, %v3769_v62 }
0x287f   : > { %v3771_v58 = vpop.permute.xlu0 %3770 }
0x2880   : > { %3780 = vst.msk [vmem:[#allocation5 + $0x1e] sm:$0x1] %vm3776_vm9, %v3771_v58 }
0x2881 PF: > { %s3781_s21 = sadd.s32 7, %s7893_s27 }
0x2882   : > { %p5673_p12 = scmp.ge.s32.totalorder %s3781_s21, 12 }
0x2883   : > { %v6741_v57 = vpack.c.bf16 (!%p5673_p12), %v7928_v16, %v7923_v15  ;;  %v7712_v38 = vmov (!%p5673_p12), 0.0|0.0   ;;  %v6744_v3 = vpack.c.bf16 (!%p5673_p12), %v7938_v18, %v7933_v17  ;;  %vm7713_vm10 = vmmov (!%p5673_p12), 0   ;;  %v3786_v6 = vld [vmem:[#allocation2] sm:$0xf] (!%p5673_p12)  ;;  %v3788_v15 = vld [vmem:[#allocation4 + $0x7] sm:$0x1] (!%p5673_p12) }
0x2884   : > { %3785 = sbr.rel (%p5673_p12) target bundleno = 11811 (0x2e23), region = 146  ;;  %6740 = vmatprep.subr.bf16.mxu0 (!%p5673_p12), %v7712_v38  ;;  %6746 = vmatprep.subr.bf16.mxu1 (!%p5673_p12), %v7712_v38  ;;  %v7714_v63 = vmov (!%p5673_p12), 0.0   ;;  %vm3792_vm11 = vcmask (!%p5673_p12), 261120   ;;  %v3789_v16 = vld [vmem:[#allocation4 + $0xf] sm:$0x1] (!%p5673_p12)  ;;  %s7715_s27 = smov (!%p5673_p12), 32  }
0x2885   : > { %6742 = vmatpush3.bf16.msra.mxu0 (!%p5673_p12), %v6741_v57  ;;  %6272 = vmatprep.mubr.msk.f32.mxu0 (!%p5673_p12), %vm7713_vm10, %v7714_v63  ;;  %v3790_v5 = vld [vmem:[#allocation4 + $0x17] sm:$0x1] (!%p5673_p12)  ;;  %v3791_v8 = vld [vmem:[#allocation4 + $0x1f] sm:$0x1] (!%p5673_p12)  ;;  %v3787_v0 = vld [vmem:[#allocation3] sm:$0xf] (!%p5673_p12) }
0x2886   : > { %6743 = vmatprep.subr.bf16.mxu0 (!%p5673_p12), %v7712_v38  ;;  %6291 = vmatprep.mubr.msk.f32.mxu1 (!%p5673_p12), %vm7713_vm10, %v7714_v63  ;;  %v3907_v12 = vrot.slane (!%p5673_p12), %v3787_v0, 1  ;;  %v3908_v33 = vrot.slane (!%p5673_p12), %v3787_v0, 2  ;;  %v3909_v29 = vrot.slane (!%p5673_p12), %v3787_v0, 3  ;;  %vm3995_vm12 = vcmask (!%p5673_p12), 1041409   ;;  %s7716_s18 = smov (!%p5673_p12), 64   ;;  %s7717_s30 = smov (!%p5673_p12), 96  }
0x2887   : > { %vm3998_vm13 = vcmask (!%p5673_p12), 1042434   ;;  %vm4001_vm14 = vcmask (!%p5673_p12), 1043459   ;;  %vm4006_vm15 = vcmask (!%p5673_p12), 257024   ;;  %vm4037_vm0 = vcmask (!%p5673_p12), 523264  }
0x2888   : > { %vm4201_vm1 = vcmask (!%p5673_p12), 253952  }
0x2889   : > { %6745 = vmatpush3.bf16.msra.mxu0 (!%p5673_p12), %v6744_v3 }
0x288c   : > { %6273 = vmatmul.mubr.msk.f32.vlgmr.msra.gmra.mrb[0].mxu0 %vm3792_vm11, %v3786_v6 }
0x295f   : > { %v3862_v53 = vpop.f32.mrb[0].mxu0 }
0x2960   : > { %v3867_v7 = vrot.slane %v3862_v53, 1  ;;  %v3874_v2 = vadd.f32 %v3862_v53, %v3788_v15  ;;  %v6274_v1 = vpop.f32.mrb[1].mxu0  ;;  %v3868_v9 = vrot.slane %v3862_v53, 2  ;;  %v3869_v17 = vrot.slane %v3862_v53, 3 }
0x2962   : > { %v3875_v18 = vadd.f32 %v3867_v7, %v3789_v16  ;;  %7427 = vtanh.f32 %v3874_v2  ;;  %v3876_v4 = vadd.f32 %v3868_v9, %v3790_v5  ;;  %v3877_v14 = vadd.f32 %v3869_v17, %v3791_v8 }
0x2963   : > { %v5675_v28 = vmul.f32 -1.442695, %v3874_v2 }
0x2964   : > { %7429 = vtanh.f32 %v3875_v18  ;;  %v5676_v32 = vmul.f32 -1.442695, %v3875_v18  ;;  %v5677_v37 = vmul.f32 -1.442695, %v3876_v4  ;;  %v5678_v34 = vmul.f32 -1.442695, %v3877_v14 }
0x2965   : > { %7431 = vtanh.f32 %v3876_v4 }
0x2966   : > { %7433 = vtanh.f32 %v3877_v14 }
0x2967   : > { %7435 = vpow2.f32 %v5676_v32 }
0x2968   : > { %7437 = vpow2.f32 %v5675_v28 }
0x2969   : > { %7439 = vpow2.f32 %v5677_v37 }
0x296a   : > { %7441 = vpow2.f32 %v5678_v34 }
0x296c   : > { %v7428_v10 = vpop.eup %7427 }
0x296d   : > { %3930 = vrot.lane.b32.xlu1 %v7428_v10, %s7715_s27 }
0x296e   : > { %v7430_v30 = vpop.eup %7429 }
0x296f   : > { %3932 = vrot.lane.b32.xlu0 %v7430_v30, %s7715_s27  ;;  %v7432_v31 = vpop.eup %7431  ;;  %v6747_v30 = vpack.c.bf16 %v7948_v20, %v7943_v19  ;;  %v4023_v19 = vld [vmem:[#allocation2 + $0x4] sm:$0xf]  ;;  %v6756_v20 = vpack.c.bf16 %v7978_v26, %v7973_v25 }
0x2970   : > { %v7434_v13 = vpop.eup %7433 }
0x2971   : > { %3936 = vrot.lane.b32.xlu1 %v7434_v13, %s7715_s27  ;;  %v7436_v39 = vpop.eup %7435  ;;  %6748 = vmatpush3.bf16.msra.mxu1 %v6747_v30 }
0x2972   : > { %v7438_v11 = vpop.eup %7437  ;;  %v3891_v40 = vadd.f32 1.0, %v7436_v39  ;;  %6749 = vmatprep.subr.bf16.mxu1 %v7712_v38 }
0x2973   : > { %3934 = vrot.lane.b32.xlu0 %v7432_v31, %s7715_s27  ;;  %v7440_v36 = vpop.eup %7439  ;;  %v3890_v35 = vadd.f32 1.0, %v7438_v11 }
0x2974   : > { %v3892_v43 = vadd.f32 1.0, %v7440_v36  ;;  %7443 = vrcp.f32 %v3891_v40  ;;  %v7442_v44 = vpop.eup %7441 }
0x2975   : > { %3914 = vrot.lane.b32.xlu1 %v3908_v33, %s7715_s27  ;;  %7445 = vrcp.f32 %v3890_v35  ;;  %v3893_v45 = vadd.f32 1.0, %v7442_v44  ;;  %v4032_v44 = vlaneseq }
0x2976   : > { %7447 = vrcp.f32 %v3892_v43 }
0x2977   : > { %3912 = vrot.lane.b32.xlu0 %v3907_v12, %s7715_s27  ;;  %7449 = vrcp.f32 %v3893_v45  ;;  %v6753_v12 = vpack.c.bf16 %v7968_v24, %v7963_v23  ;;  %v4033_v45 = vshrl.u32 %v4032_v44, 7 }
0x2979   : > { %3916 = vrot.lane.b32.xlu1 %v3909_v29, %s7715_s27 }
0x297b   : > { %3910 = vrot.lane.b32.xlu0 %v3787_v0, %s7715_s27  ;;  %v6750_v0 = vpack.c.bf16 %v7958_v22, %v7953_v21  ;;  %v4025_v22 = vld [vmem:[#allocation3 + $0x4] sm:$0xf] }
0x297d   : > { %6751 = vmatpush3.bf16.msra.mxu1 %v6750_v0 }
0x297e   : > { %v8579_v41 = vpop.eup %7443  ;;  %6752 = vmatprep.subr.bf16.mxu1 %v7712_v38 }
0x297f   : > { %v8582_v42 = vpop.eup %7445 }
0x2980   : > { %v8585_v51 = vpop.eup %7447 }
0x2981   : > { %v8591_v56 = vpop.eup %7449  ;;  %6754 = vmatpush3.bf16.msra.mxu1 %v6753_v12 }
0x2982   : > { %6755 = vmatprep.subr.bf16.mxu1 %v7712_v38 }
0x2985   : > { %6757 = vmatpush3.bf16.msra.mxu1 %v6756_v20 }
0x29df   : > { %v3931_v49 = vpop.permute.xlu1 %3930 }
0x29e0   : > { %v3942_v46 = vmul.f32 %v8582_v42, %v3931_v49 }
0x29e1   : > { %v3933_v48 = vpop.permute.xlu0 %3932 }
0x29e2   : > { %v3943_v50 = vmul.f32 %v8579_v41, %v3933_v48 }
0x29e3   : > { %v3937_v55 = vpop.permute.xlu1 %3936 }
0x29e4   : > { %3952 = vrot.lane.b32.xlu0 %v3943_v50, %s7715_s27  ;;  %v3945_v52 = vmul.f32 %v8591_v56, %v3937_v55 }
0x29e5   : > { %v3935_v47 = vpop.permute.xlu0 %3934 }
0x29e6   : > { %v3944_v54 = vmul.f32 %v8585_v51, %v3935_v47 }
0x29e7   : > { %v3915_v59 = vpop.permute.xlu1 %3914 }
0x29e8   : > { %3954 = vrot.lane.b32.xlu1 %v3944_v54, %s7715_s27  ;;  %3950 = vrot.lane.b32.xlu0 %v3942_v46, %s7715_s27  ;;  %v3924_v63 = vmul.f32 %v8585_v51, %v3915_v59 }
0x29e9   : > { %v3913_v60 = vpop.permute.xlu0 %3912 }
0x29ea   : > { %v3923_v62 = vmul.f32 %v8579_v41, %v3913_v60 }
0x29eb   : > { %v3917_v58 = vpop.permute.xlu1 %3916 }
0x29ec   : > { %3956 = vrot.lane.b32.xlu1 %v3945_v52, %s7715_s27  ;;  %v3925_v1 = vmul.f32 %v8591_v56, %v3917_v58 }
0x29ed   : > { %v3911_v61 = vpop.permute.xlu0 %3910 }
0x29ee   : > { %v3922_v6 = vmul.f32 %v8582_v42, %v3911_v61 }
0x2a56   : > { %v3953_v57 = vpop.permute.xlu0 %3952 }
0x2a57   : > { %v3963_v3 = vadd.f32 %v3953_v57, %v3923_v62 }
0x2a59   : > { %7451 = vtanh.f32 %v3963_v3  ;;  %v4012_v53 = vrot.slane %v3963_v3, 7  ;;  %v7718_v3 = vmov 1966171168  }
0x2a5a   : > { %v3955_v15 = vpop.permute.xlu1 %3954  ;;  %v3951_v16 = vpop.permute.xlu0 %3950 }
0x2a5b   : > { %v3964_v7 = vadd.f32 %v3955_v15, %v3924_v63  ;;  %v3962_v2 = vadd.f32 %v3951_v16, %v3922_v6  ;;  %v4150_v63 = vunpack.c.l.s4 %v7718_v3 }
0x2a5d   : > { %7453 = vtanh.f32 %v3964_v7  ;;  %v4014_v9 = vrot.slane %v3964_v7, 6  ;;  %v4013_v5 = vsel %vm3995_vm12, %v4012_v53, %v3962_v2  ;;  %v4151_v6 = vunpack.c.0.s8 %v4150_v63 }
0x2a5e   : > { %7455 = vtanh.f32 %v3962_v2  ;;  %v3957_v17 = vpop.permute.xlu1 %3956 }
0x2a5f   : > { %v3965_v18 = vadd.f32 %v3957_v17, %v3925_v1  ;;  %v4015_v8 = vsel %vm3998_vm13, %v4014_v9, %v4013_v5  ;;  %v4154_v15 = vsub.s32 %v4151_v6, %v4033_v45 }
0x2a61   : > { %7457 = vtanh.f32 %v3965_v18  ;;  %v4016_v4 = vrot.slane %v3965_v18, 5 }
0x2a63   : > { %v7452_v14 = vpop.eup %7451  ;;  %v8602_v10 = vsel %vm4001_vm14, %v4016_v4, %v4015_v8 }
0x2a64   : > { %3976 = vrot.lane.b32.xlu0 %v7452_v14, %s7715_s27 }
0x2a67   : > { %v7454_v31 = vpop.eup %7453 }
0x2a68   : > { %v7456_v13 = vpop.eup %7455  ;;  %3978 = vrot.lane.b32.xlu1 %v7454_v31, %s7715_s27 }
0x2a69   : > { %3974 = vrot.lane.b32.xlu0 %v7456_v13, %s7715_s27 }
0x2a6b   : > { %v7458_v33 = vpop.eup %7457 }
0x2a6c   : > { %3980 = vrot.lane.b32.xlu1 %v7458_v33, %s7715_s27 }
0x2a70   : > { %4027 = vrot.lane.b32.xlu1 %v4023_v19, %s7715_s27 }
0x2a74   : > { %4119 = vrot.lane.b32.xlu1 %v4025_v22, %s7715_s27 }
0x2ad6   : > { %v3977_v21 = vpop.permute.xlu0 %3976 }
0x2ad7   : > { %v3987_v29 = vmul.f32 %v8579_v41, %v3977_v21  ;;  %v4034_v41 = vsub.s32 0, %v4033_v45 }
0x2ad9   : > { %v3994_v37 = vrot.slane %v3987_v29, 7  ;;  %v4035_v49 = vrot.slane %v7983_v27, %v4034_v41 }
0x2ada   : > { %v3979_v23 = vpop.permute.xlu1 %3978 }
0x2adb   : > { %v3988_v24 = vmul.f32 %v8585_v51, %v3979_v23  ;;  %v3975_v32 = vpop.permute.xlu0 %3974 }
0x2adc   : > { %v3986_v28 = vmul.f32 %v8582_v42, %v3975_v32 }
0x2add   : > { %v3997_v34 = vrot.slane %v3988_v24, 6 }
0x2ade   : > { %v3981_v25 = vpop.permute.xlu1 %3980  ;;  %v3996_v26 = vsel %vm3995_vm12, %v3994_v37, %v3986_v28 }
0x2adf   : > { %v3989_v38 = vmul.f32 %v8591_v56, %v3981_v25  ;;  %v3999_v11 = vsel %vm3998_vm13, %v3997_v34, %v3996_v26 }
0x2ae1   : > { %v4000_v39 = vrot.slane %v3989_v38, 5 }
0x2ae2   : > { %v4028_v36 = vpop.permute.xlu1 %4027 }
0x2ae3   : > { %v4002_v40 = vsel %vm4001_vm14, %v4000_v39, %v3999_v11 }
0x2ae4   : > { %4003 = vrot.lane.b32.xlu0 %v4002_v40, %s7716_s18 }
0x2ae6   : > { %v4120_v27 = vpop.permute.xlu1 %4119 }
0x2b56   : > { %v4004_v35 = vpop.permute.xlu0 %4003 }
0x2b57   : > { %4007 = vst.msk [vmem:[#allocation2] sm:$0xf] %vm4006_vm15, %v4004_v35  ;;  %v4030_v43 = vsel %vm3792_vm11, %v4004_v35, %v4028_v36 }
0x2b58   : > { %6292 = vmatmul.mubr.msk.f32.vlgmr.msra.gmra.mrb[0].mxu1 %vm4037_vm0, %v4030_v43 }
0x2c2b   : > { %v4107_v48 = vpop.f32.mrb[0].mxu1 }
0x2c2c   : > { %v4108_v50 = vadd.f32 %v4107_v48, %v4035_v49  ;;  %v6293_v42 = vpop.f32.mrb[1].mxu1 }
0x2c2e   : > { %7459 = vtanh.f32 %v4108_v50  ;;  %v5680_v47 = vmul.f32 -1.442695, %v4108_v50 }
0x2c30   : > { %7461 = vpow2.f32 %v5680_v47 }
0x2c38   : > { %v7460_v51 = vpop.eup %7459 }
0x2c39   : > { %4124 = vrot.lane.b32.xlu0 %v7460_v51, %s7715_s27 }
0x2c3a   : > { %v7462_v46 = vpop.eup %7461 }
0x2c3b   : > { %v4114_v54 = vadd.f32 1.0, %v7462_v46 }
0x2c3d   : > { %7463 = vrcp.f32 %v4114_v54 }
0x2c47   : > { %v7464_v55 = vpop.eup %7463 }
0x2c48   : > { %v4122_v60 = vmul.f32 %v7464_v55, %v4120_v27 }
0x2cab   : > { %v4125_v56 = vpop.permute.xlu0 %4124 }
0x2cac   : > { %v4127_v52 = vmul.f32 %v7464_v55, %v4125_v56 }
0x2cae   : > { %4129 = vrot.lane.b32.xlu0 %v4127_v52, %s7715_s27 }
0x2cb2   : > { %4018 = vrot.lane.b32.xlu0 %v8602_v10, %s7717_s30 }
0x2d20   : > { %v4130_v59 = vpop.permute.xlu0 %4129 }
0x2d21   : > { %v4132_v61 = vadd.f32 %v4130_v59, %v4122_v60 }
0x2d23   : > { %7465 = vtanh.f32 %v4132_v61  ;;  %4145 = vrot.lane.b32.xlu0 %v4132_v61, %s7717_s30 }
0x2d24   : > { %v4019_v62 = vpop.permute.xlu0 %4018 }
0x2d25   : > { %4021 = vst.msk [vmem:[#allocation3] sm:$0xf] %vm4006_vm15, %v4019_v62 }
0x2d2d   : > { %v7466_v58 = vpop.eup %7465 }
0x2d2e   : > { %4135 = vrot.lane.b32.xlu1 %v7466_v58, %s7715_s27 }
0x2d95   : > { %v4146_v57 = vpop.permute.xlu0 %4145 }
0x2d96   : > { %4148 = vst.msk [vmem:[#allocation3 + $0x4] sm:$0xf] %vm4006_vm15, %v4146_v57 }
0x2da0   : > { %v4136_v16 = vpop.permute.xlu1 %4135 }
0x2da1   : > { %v4138_v53 = vmul.f32 %v7464_v55, %v4136_v16 }
0x2da3   : > { %v4155_v7 = vrot.slane %v4138_v53, %v4154_v15  ;;  %4140 = vrot.lane.b32.xlu1 %v4138_v53, %s7716_s18 }
0x2da5   : > { %v4156_v2 = vcombine.high %v4155_v7, %v4155_v7  ;;  %v4163_v1 = vrot.slane %v4155_v7, %v4154_v15 }
0x2da7   : > { %v4176_v9 = vrot.slane %v4163_v1, %v4034_v41  ;;  %v4170_v5 = vrot.slane %v4156_v2, %v4154_v15  ;;  %v4171_v17 = vcombine.high %v4163_v1, %v4163_v1 }
0x2da9   : > { %4189 = vrot.lane.b32.xlu1 %v4176_v9, %s7716_s18  ;;  %v4180_v18 = vrot.slane %v4170_v5, %v4034_v41  ;;  %v4172_v8 = vcombine.high %v4170_v5, %v4170_v5  ;;  %v4184_v4 = vrot.slane %v4171_v17, %v4034_v41 }
0x2dab   : > { %4191 = vrot.lane.b32.xlu0 %v4180_v18, %s7716_s18  ;;  %v4188_v14 = vrot.slane %v4172_v8, %v4034_v41 }
0x2dad   : > { %4193 = vrot.lane.b32.xlu1 %v4184_v4, %s7716_s18 }
0x2daf   : > { %4195 = vrot.lane.b32.xlu0 %v4188_v14, %s7716_s18 }
0x2e15   : > { %v4141_v10 = vpop.permute.xlu1 %4140 }
0x2e16   : > { %4143 = vst.msk [vmem:[#allocation2 + $0x4] sm:$0xf] %vm4006_vm15, %v4141_v10 }
0x2e1b   : > { %v4190_v30 = vpop.permute.xlu1 %4189 }
0x2e1c   : > { %4202 = vst.msk [vmem:[#allocation5 + $0x7] sm:$0x1] %vm4201_vm1, %v4190_v30 }
0x2e1d   : > { %v4192_v0 = vpop.permute.xlu0 %4191 }
0x2e1e   : > { %4203 = vst.msk [vmem:[#allocation5 + $0xf] sm:$0x1] %vm4201_vm1, %v4192_v0 }
0x2e1f   : > { %v4194_v31 = vpop.permute.xlu1 %4193 }
0x2e20   : > { %4204 = vst.msk [vmem:[#allocation5 + $0x17] sm:$0x1] %vm4201_vm1, %v4194_v31 }
0x2e21   : > { %v4196_v13 = vpop.permute.xlu0 %4195 }
0x2e22   : > { %4205 = vst.msk [vmem:[#allocation5 + $0x1f] sm:$0x1] %vm4201_vm1, %v4196_v13 }
0x2e23 PF: > { %v4210_v12 = vld [vmem:[%s9370_s9] sm:$0xff]  ;;  %v4211_v33 = vld [vmem:[%s9370_s9 + $0x8] sm:$0xff]  ;;  %v4212_v19 = vld [vmem:[%s9370_s9 + $0x10] sm:$0xff]  ;;  %vm4221_vm2 = vcmask 261120   ;;  %v7719_v29 = vmov 0.0|0.0   ;;  %s9410_s1 = sld [smem:[#allocation26_spill]]  ;;  %v4867_v32 = vlaneseq }
0x2e24   : > { %v6758_v20 = vpack.c.bf16 %v4211_v33, %v4210_v12  ;;  %v4213_v21 = vld [vmem:[%s9370_s9 + $0x18] sm:$0xff]  ;;  %v8656_v22 = vld [vmem:[#allocation5] sm:$0xff]  ;;  %6766 = vmatprep.subr.bf16.mxu1 %v7719_v29  ;;  %vm8666_vm3 = vmpackc.low %vm4221_vm2, %vm4221_vm2  ;;  %vm7720_vm4 = vmmov 0   ;;  %v7721_v30 = vmov 0.0   ;;  %s7722_s16 = smov 32   ;;  %vm5221_vm6 = vcmask 523264  }
0x2e25   : > { %v6762_v23 = vpack.c.bf16 %v4213_v21, %v4212_v19  ;;  %6302 = vmatprep.mubr.msk.f32.mxu0 %vm4221_vm2, %v8656_v22  ;;  %v8678_v34 = vld [vmem:[#allocation5 + $0x8] sm:$0xff]  ;;  %6340 = vmatprep.mubr.msk.f32.mxu1 %vm7720_vm4, %v7721_v30  ;;  %v5681_v13 = vld [vmem:[%s9371_s10] ss:$0 sm:$0xff]  ;;  %p5759_p13 = scmp.ne.s32.totalorder %s7653_s24, 1 }
0x2e26   : > { %6759 = vmatprep.subr.bf16.mxu0 %v6758_v20  ;;  %vm5337_vm7 = vcmask (!%p5759_p13), 257024  }
0x2e27   : > { %6761 = vmatpush3.bf16.msra.mxu0 %v6758_v20  ;;  %v8687_v38 = vld [vmem:[#allocation5 + $0x10] sm:$0xff] }
0x2e28   : > { %6763 = vmatprep.subr.bf16.mxu0 %v6762_v23 }
0x2e29   : > { %v4319_v24 = vld [vmem:[%s9410_s1] sm:$0xff]  ;;  %v4320_v28 = vld [vmem:[%s9410_s1 + $0x8] sm:$0xff]  ;;  %v4321_v25 = vld [vmem:[%s9410_s1 + $0x10] sm:$0xff] }
0x2e2a   : > { %v8673_v37 = vpack.c.bf16 %v4320_v28, %v4319_v24  ;;  %v4322_v26 = vld [vmem:[%s9410_s1 + $0x18] sm:$0xff]  ;;  %v4335_v39 = vld [vmem:[%s9410_s1 + $0x80] sm:$0xff]  ;;  %v4336_v11 = vld [vmem:[%s9410_s1 + $0x88] sm:$0xff] }
0x2e2b   : > { %6765 = vmatpush3.bf16.msra.mxu0 %v6762_v23  ;;  %v8698_v40 = vpack.c.bf16 %v4322_v26, %v4321_v25  ;;  %v8702_v36 = vld [vmem:[#allocation5 + $0x18] sm:$0xff]  ;;  %v8704_v35 = vpack.c.bf16 %v4336_v11, %v4335_v39  ;;  %v4323_v43 = vld [vmem:[%s9410_s1 + $0x20] sm:$0xff]  ;;  %v4337_v45 = vld [vmem:[%s9410_s1 + $0x90] sm:$0xff] }
0x2e2c   : > { %6769 = vmatpush3.bf16.xpose.msk.msra.mxu1 %vm8666_vm3, %v8673_v37  ;;  %6798 = vmatprep.subr.bf16.mxu0 %v7719_v29  ;;  %v4324_v44 = vld [vmem:[%s9410_s1 + $0x28] sm:$0xff]  ;;  %v4338_v41 = vld [vmem:[%s9410_s1 + $0x98] sm:$0xff]  ;;  %v4325_v50 = vld [vmem:[%s9410_s1 + $0x30] sm:$0xff] }
0x2e2d   : > { %6770 = vmatprep.subr.bf16.mxu1 %v7719_v29  ;;  %v8728_v49 = vpack.c.bf16 %v4324_v44, %v4323_v43  ;;  %v8730_v48 = vpack.c.bf16 %v4338_v41, %v4337_v45  ;;  %v4326_v42 = vld [vmem:[%s9410_s1 + $0x38] sm:$0xff]  ;;  %v4339_v51 = vld [vmem:[%s9410_s1 + $0xa0] sm:$0xff]  ;;  %v4340_v47 = vld [vmem:[%s9410_s1 + $0xa8] sm:$0xff] }
0x2e2e   : > { %6303 = vmatmul.mubr.msk.f32.vlgmr.msra.gmra.mrb[0].mxu0 %vm4221_vm2, %v8678_v34  ;;  %v8752_v46 = vpack.c.bf16 %v4326_v42, %v4325_v50  ;;  %v8754_v54 = vpack.c.bf16 %v4340_v47, %v4339_v51  ;;  %v4327_v55 = vld [vmem:[%s9410_s1 + $0x40] sm:$0xff]  ;;  %v4328_v56 = vld [vmem:[%s9410_s1 + $0x48] sm:$0xff]  ;;  %v4341_v52 = vld [vmem:[%s9410_s1 + $0xb0] sm:$0xff] }
0x2e2f   : > { %6305 = vmatprep.mubr.msk.f32.mxu0 %vm4221_vm2, %v8687_v38  ;;  %v4342_v27 = vld [vmem:[%s9410_s1 + $0xb8] sm:$0xff]  ;;  %v8776_v60 = vpack.c.bf16 %v4328_v56, %v4327_v55  ;;  %v4329_v61 = vld [vmem:[%s9410_s1 + $0x50] sm:$0xff]  ;;  %v4343_v58 = vld [vmem:[%s9410_s1 + $0xc0] sm:$0xff] }
0x2e30   : > { %v8778_v59 = vpack.c.bf16 %v4342_v27, %v4341_v52  ;;  %v4330_v62 = vld [vmem:[%s9410_s1 + $0x58] sm:$0xff]  ;;  %v4344_v57 = vld [vmem:[%s9410_s1 + $0xc8] sm:$0xff]  ;;  %v4331_v6 = vld [vmem:[%s9410_s1 + $0x60] sm:$0xff] }
0x2e31   : > { %v8800_v3 = vpack.c.bf16 %v4330_v62, %v4329_v61  ;;  %v8802_v63 = vpack.c.bf16 %v4344_v57, %v4343_v58  ;;  %v4332_v15 = vld [vmem:[%s9410_s1 + $0x68] sm:$0xff]  ;;  %v4345_v16 = vld [vmem:[%s9410_s1 + $0xd0] sm:$0xff]  ;;  %v4346_v53 = vld [vmem:[%s9410_s1 + $0xd8] sm:$0xff] }
0x2e32   : > { %6306 = vmatmul.mubr.msk.f32.gmra.mrb[2].mxu0 %vm4221_vm2, %v8702_v36  ;;  %v8824_v7 = vpack.c.bf16 %v4332_v15, %v4331_v6  ;;  %v8826_v2 = vpack.c.bf16 %v4346_v53, %v4345_v16  ;;  %v4333_v1 = vld [vmem:[%s9410_s1 + $0x70] sm:$0xff]  ;;  %v4334_v9 = vld [vmem:[%s9410_s1 + $0x78] sm:$0xff]  ;;  %v4347_v5 = vld [vmem:[%s9410_s1 + $0xe0] sm:$0xff] }
0x2e33   : > { %v4348_v17 = vld [vmem:[%s9410_s1 + $0xe8] sm:$0xff]  ;;  %v8848_v18 = vpack.c.bf16 %v4334_v9, %v4333_v1  ;;  %v4349_v4 = vld [vmem:[%s9410_s1 + $0xf0] sm:$0xff]  ;;  %v4350_v14 = vld [vmem:[%s9410_s1 + $0xf8] sm:$0xff]  ;;  %6375 = vmatprep.mubr.msk.f32.mxu0 %vm7720_vm4, %v7721_v30 }
0x2e34   : > { %6773 = vmatpush3.bf16.xpose.msk.msra.mxu1 %vm8666_vm3, %v8698_v40  ;;  %6801 = vmatpush3.bf16.xpose.msk.msra.mxu0 %vm8666_vm3, %v8704_v35  ;;  %v8850_v8 = vpack.c.bf16 %v4348_v17, %v4347_v5  ;;  %v8866_v10 = vpack.c.bf16 %v4350_v14, %v4349_v4  ;;  %v4367_v0 = vld [vmem:[%s9410_s1 + $0x180] sm:$0xff]  ;;  %v4368_v31 = vld [vmem:[%s9410_s1 + $0x188] sm:$0xff]  ;;  %v4369_v26 = vld [vmem:[%s9410_s1 + $0x190] sm:$0xff] }
0x2e35   : > { %6774 = vmatprep.subr.bf16.mxu1 %v7719_v29  ;;  %6802 = vmatprep.subr.bf16.mxu0 %v7719_v29  ;;  %v4351_v12 = vld [vmem:[%s9410_s1 + $0x100] sm:$0xff]  ;;  %v4352_v33 = vld [vmem:[%s9410_s1 + $0x108] sm:$0xff]  ;;  %v8891_v20 = vpack.c.bf16 %v4368_v31, %v4367_v0  ;;  %v4370_v39 = vld [vmem:[%s9410_s1 + $0x198] sm:$0xff] }
0x2e36   : > { %v8893_v24 = vpack.c.bf16 %v4352_v33, %v4351_v12  ;;  %v4353_v44 = vld [vmem:[%s9410_s1 + $0x110] sm:$0xff]  ;;  %v4354_v45 = vld [vmem:[%s9410_s1 + $0x118] sm:$0xff]  ;;  %v8925_v50 = vpack.c.bf16 %v4370_v39, %v4369_v26  ;;  %v4371_v51 = vld [vmem:[%s9410_s1 + $0x1a0] sm:$0xff] }
0x2e37   : > { %v8927_v42 = vpack.c.bf16 %v4354_v45, %v4353_v44  ;;  %v4372_v47 = vld [vmem:[%s9410_s1 + $0x1a8] sm:$0xff]  ;;  %v4355_v55 = vld [vmem:[%s9410_s1 + $0x120] sm:$0xff]  ;;  %v4373_v61 = vld [vmem:[%s9410_s1 + $0x1b0] sm:$0xff] }
0x2e38   : > { %v4356_v56 = vld [vmem:[%s9410_s1 + $0x128] sm:$0xff]  ;;  %v8949_v52 = vpack.c.bf16 %v4372_v47, %v4371_v51  ;;  %v4374_v62 = vld [vmem:[%s9410_s1 + $0x1b8] sm:$0xff]  ;;  %v4357_v58 = vld [vmem:[%s9410_s1 + $0x130] sm:$0xff] }
0x2e39   : > { %v8951_v27 = vpack.c.bf16 %v4356_v56, %v4355_v55  ;;  %v4358_v57 = vld [vmem:[%s9410_s1 + $0x138] sm:$0xff]  ;;  %v8973_v6 = vpack.c.bf16 %v4374_v62, %v4373_v61  ;;  %v4375_v16 = vld [vmem:[%s9410_s1 + $0x1c0] sm:$0xff]  ;;  %v4376_v53 = vld [vmem:[%s9410_s1 + $0x1c8] sm:$0xff] }
0x2e3a   : > { %v8975_v15 = vpack.c.bf16 %v4358_v57, %v4357_v58  ;;  %v4359_v1 = vld [vmem:[%s9410_s1 + $0x140] sm:$0xff]  ;;  %v4360_v9 = vld [vmem:[%s9410_s1 + $0x148] sm:$0xff]  ;;  %v8997_v5 = vpack.c.bf16 %v4376_v53, %v4375_v16  ;;  %v4377_v4 = vld [vmem:[%s9410_s1 + $0x1d0] sm:$0xff] }
0x2e3b   : > { %v8999_v17 = vpack.c.bf16 %v4360_v9, %v4359_v1  ;;  %v4378_v14 = vld [vmem:[%s9410_s1 + $0x1d8] sm:$0xff]  ;;  %v4361_v0 = vld [vmem:[%s9410_s1 + $0x150] sm:$0xff]  ;;  %v4379_v33 = vld [vmem:[%s9410_s1 + $0x1e0] sm:$0xff] }
0x2e3c   : > { %6777 = vmatpush3.bf16.xpose.msk.msra.mxu1 %vm8666_vm3, %v8728_v49  ;;  %6805 = vmatpush3.bf16.xpose.msk.msra.mxu0 %vm8666_vm3, %v8730_v48  ;;  %v4362_v31 = vld [vmem:[%s9410_s1 + $0x158] sm:$0xff]  ;;  %v4381_v26 = vld [vmem:[%s9410_s1 + $0x1f0] sm:$0xff] }
0x2e3d   : > { %6778 = vmatprep.subr.bf16.mxu1 %v7719_v29  ;;  %6806 = vmatprep.subr.bf16.mxu0 %v7719_v29  ;;  %v9023_v12 = vpack.c.bf16 %v4362_v31, %v4361_v0  ;;  %v4382_v39 = vld [vmem:[%s9410_s1 + $0x1f8] sm:$0xff] }
0x2e3e   : > { %v4366_v44 = vld [vmem:[%s9410_s1 + $0x178] sm:$0xff]  ;;  %v9069_v45 = vpack.c.bf16 %v4382_v39, %v4381_v26 }
0x2e44   : > { %6781 = vmatpush3.bf16.xpose.msk.msra.mxu1 %vm8666_vm3, %v8752_v46  ;;  %6809 = vmatpush3.bf16.xpose.msk.msra.mxu0 %vm8666_vm3, %v8754_v54 }
0x2e45   : > { %6782 = vmatprep.subr.bf16.mxu1 %v7719_v29  ;;  %6810 = vmatprep.subr.bf16.mxu0 %v7719_v29 }
0x2e4c   : > { %6785 = vmatpush3.bf16.xpose.msk.msra.mxu1 %vm8666_vm3, %v8776_v60  ;;  %6813 = vmatpush3.bf16.xpose.msk.msra.mxu0 %vm8666_vm3, %v8778_v59 }
0x2e4d   : > { %6786 = vmatprep.subr.bf16.mxu1 %v7719_v29  ;;  %6814 = vmatprep.subr.bf16.mxu0 %v7719_v29 }
0x2e54   : > { %6789 = vmatpush3.bf16.xpose.msk.msra.mxu1 %vm8666_vm3, %v8800_v3  ;;  %6817 = vmatpush3.bf16.xpose.msk.msra.mxu0 %vm8666_vm3, %v8802_v63 }
0x2e55   : > { %6790 = vmatprep.subr.bf16.mxu1 %v7719_v29  ;;  %6818 = vmatprep.subr.bf16.mxu0 %v7719_v29 }
0x2e5c   : > { %6793 = vmatpush3.bf16.xpose.msk.msra.mxu1 %vm8666_vm3, %v8824_v7  ;;  %6821 = vmatpush3.bf16.xpose.msk.msra.mxu0 %vm8666_vm3, %v8826_v2 }
0x2e5d   : > { %6794 = vmatprep.subr.bf16.mxu1 %v7719_v29  ;;  %6822 = vmatprep.subr.bf16.mxu0 %v7719_v29 }
0x2e64   : > { %6797 = vmatpush3.bf16.xpose.msk.msra.mxu1 %vm8666_vm3, %v8848_v18  ;;  %6825 = vmatpush3.bf16.xpose.msk.msra.mxu0 %vm8666_vm3, %v8850_v8 }
0x2e65   : > { %6830 = vmatprep.subr.bf16.mxu1 %v7719_v29  ;;  %6826 = vmatprep.subr.bf16.mxu0 %v7719_v29 }
0x2e6c   : > { %6829 = vmatpush3.bf16.xpose.msk.msra.mxu0 %vm8666_vm3, %v8866_v10 }
0x2e6d   : > { %6862 = vmatprep.subr.bf16.mxu0 %v7719_v29 }
0x2f01   : > { %v6304_v19 = vpop.f32.mrb[0].mxu0 }
0x2f02   : > { %v4306_v21 = vadd.f32 %v6304_v19, %v5681_v13  ;;  %v4300_v23 = vpop.f32.mrb[1].mxu0  ;;  %v4380_v19 = vld [vmem:[%s9410_s1 + $0x1e8] sm:$0xff] }
0x2f03   : > { %v4301_v28 = vadd.f32 %v5681_v13, %v4300_v23  ;;  %v4364_v23 = vld [vmem:[%s9410_s1 + $0x168] sm:$0xff] }
0x2f04   : > { %6376 = vmatmul.mubr.msk.f32.vlgmr.msra.gmra.mrb[4].mxu0 %vm4221_vm2, %v4306_v21  ;;  %v4363_v21 = vld [vmem:[%s9410_s1 + $0x160] sm:$0xff] }
0x2f05   : > { %6865 = vmatpush3.bf16.xpose.msk.msra.mxu0 %vm8666_vm3, %v8891_v20  ;;  %6341 = vmatmul.mubr.msk.f32.vlgmr.msra.gmra.mrb[0].mxu1 %vm4221_vm2, %v4301_v28  ;;  %v6307_v25 = vpop.f32.mrb[2].mxu0  ;;  %v9045_v28 = vpack.c.bf16 %v4380_v19, %v4379_v33 }
0x2f06   : > { %6833 = vmatpush3.bf16.xpose.msk.msra.mxu1 %vm8666_vm3, %v8893_v24  ;;  %6866 = vmatprep.subr.bf16.mxu0 %v7719_v29  ;;  %v8910_v11 = vadd.f32 %v6307_v25, %v5681_v13  ;;  %v4310_v43 = vpop.f32.mrb[3].mxu0  ;;  %v9047_v25 = vpack.c.bf16 %v4364_v23, %v4363_v21 }
0x2f07   : > { %6834 = vmatprep.subr.bf16.mxu1 %v7719_v29  ;;  %v8919_v41 = vadd.f32 %v5681_v13, %v4310_v43  ;;  %6445 = vmatprep.mubr.msk.f32.mxu0 %vm7720_vm4, %v7721_v30  ;;  %v9021_v13 = vpack.c.bf16 %v4378_v14, %v4377_v4  ;;  %v4365_v43 = vld [vmem:[%s9410_s1 + $0x170] sm:$0xff] }
0x2f08   : > { %6410 = vmatprep.mubr.msk.f32.mxu1 %vm7720_vm4, %v7721_v30  ;;  %v9071_v51 = vpack.c.bf16 %v4366_v44, %v4365_v43 }
0x2f0d   : > { %6869 = vmatpush3.bf16.xpose.msk.msra.mxu0 %vm8666_vm3, %v8925_v50 }
0x2f0e   : > { %6837 = vmatpush3.bf16.xpose.msk.msra.mxu1 %vm8666_vm3, %v8927_v42  ;;  %6870 = vmatprep.subr.bf16.mxu0 %v7719_v29 }
0x2f0f   : > { %6838 = vmatprep.subr.bf16.mxu1 %v7719_v29 }
0x2f15   : > { %6873 = vmatpush3.bf16.xpose.msk.msra.mxu0 %vm8666_vm3, %v8949_v52 }
0x2f16   : > { %6841 = vmatpush3.bf16.xpose.msk.msra.mxu1 %vm8666_vm3, %v8951_v27  ;;  %6874 = vmatprep.subr.bf16.mxu0 %v7719_v29 }
0x2f17   : > { %6842 = vmatprep.subr.bf16.mxu1 %v7719_v29 }
0x2f1d   : > { %6877 = vmatpush3.bf16.xpose.msk.msra.mxu0 %vm8666_vm3, %v8973_v6 }
0x2f1e   : > { %6845 = vmatpush3.bf16.xpose.msk.msra.mxu1 %vm8666_vm3, %v8975_v15  ;;  %6878 = vmatprep.subr.bf16.mxu0 %v7719_v29 }
0x2f1f   : > { %6846 = vmatprep.subr.bf16.mxu1 %v7719_v29 }
0x2f25   : > { %6881 = vmatpush3.bf16.xpose.msk.msra.mxu0 %vm8666_vm3, %v8997_v5 }
0x2f26   : > { %6849 = vmatpush3.bf16.xpose.msk.msra.mxu1 %vm8666_vm3, %v8999_v17  ;;  %6882 = vmatprep.subr.bf16.mxu0 %v7719_v29 }
0x2f27   : > { %6850 = vmatprep.subr.bf16.mxu1 %v7719_v29 }
0x2f2d   : > { %6885 = vmatpush3.bf16.xpose.msk.msra.mxu0 %vm8666_vm3, %v9021_v13 }
0x2f2e   : > { %6853 = vmatpush3.bf16.xpose.msk.msra.mxu1 %vm8666_vm3, %v9023_v12  ;;  %6886 = vmatprep.subr.bf16.mxu0 %v7719_v29 }
0x2f2f   : > { %6854 = vmatprep.subr.bf16.mxu1 %v7719_v29 }
0x2f35   : > { %6889 = vmatpush3.bf16.xpose.msk.msra.mxu0 %vm8666_vm3, %v9045_v28 }
0x2f36   : > { %6857 = vmatpush3.bf16.xpose.msk.msra.mxu1 %vm8666_vm3, %v9047_v25  ;;  %6890 = vmatprep.subr.bf16.mxu0 %v7719_v29 }
0x2f37   : > { %6858 = vmatprep.subr.bf16.mxu1 %v7719_v29 }
0x2f3d   : > { %6893 = vmatpush3.bf16.xpose.msk.msra.mxu0 %vm8666_vm3, %v9069_v45 }
0x2f3e   : > { %6861 = vmatpush3.bf16.xpose.msk.msra.mxu1 %vm8666_vm3, %v9071_v51  ;;  %6918 = vmatprep.subr.bf16.mxu0 %v7719_v29 }
0x2f3f   : > { %6894 = vmatprep.subr.bf16.mxu1 %v7719_v29 }
0x2f44   : > { %6446 = vmatmul.mubr.msk.f32.vlgmr.msra.gmra.mrb[6].mxu0 %vm4221_vm2, %v8910_v11 }
0x2f45   : > { %6411 = vmatmul.mubr.msk.f32.vlgmr.msra.gmra.mrb[2].mxu1 %vm4221_vm2, %v8919_v41  ;;  %6920 = vmatpush3.bf16.msra.mxu0 %v8704_v35 }
0x2f46   : > { %6896 = vmatpush3.bf16.msra.mxu1 %v8673_v37  ;;  %6921 = vmatprep.subr.bf16.mxu0 %v7719_v29  ;;  %v4868_v37 = vand.u32 127, %v4867_v32 }
0x2f47   : > { %6897 = vmatprep.subr.bf16.mxu1 %v7719_v29  ;;  %6480 = vmatprep.mubr.msk.f32.mxu1 %vm7720_vm4, %v7721_v30 }
0x2f48   : > { %6515 = vmatprep.mubr.msk.f32.mxu0 %vm7720_vm4, %v7721_v30  ;;  %vm4869_vm5 = vcmp.lt.s32.totalorder %v4868_v37, 8 }
0x2f49   : > { %6923 = vmatpush3.bf16.msra.mxu0 %v8730_v48 }
0x2f4a   : > { %6899 = vmatpush3.bf16.msra.mxu1 %v8698_v40  ;;  %6924 = vmatprep.subr.bf16.mxu0 %v7719_v29 }
0x2f4b   : > { %6900 = vmatprep.subr.bf16.mxu1 %v7719_v29 }
0x2f4d   : > { %6926 = vmatpush3.bf16.msra.mxu0 %v8754_v54 }
0x2f4e   : > { %6902 = vmatpush3.bf16.msra.mxu1 %v8728_v49  ;;  %6927 = vmatprep.subr.bf16.mxu0 %v7719_v29 }
0x2f4f   : > { %6903 = vmatprep.subr.bf16.mxu1 %v7719_v29 }
0x2f51   : > { %6929 = vmatpush3.bf16.msra.mxu0 %v8778_v59 }
0x2f52   : > { %6905 = vmatpush3.bf16.msra.mxu1 %v8752_v46  ;;  %6930 = vmatprep.subr.bf16.mxu0 %v7719_v29 }
0x2f53   : > { %6906 = vmatprep.subr.bf16.mxu1 %v7719_v29 }
0x2f55   : > { %6932 = vmatpush3.bf16.msra.mxu0 %v8802_v63 }
0x2f56   : > { %6908 = vmatpush3.bf16.msra.mxu1 %v8776_v60  ;;  %6933 = vmatprep.subr.bf16.mxu0 %v7719_v29 }
0x2f57   : > { %6909 = vmatprep.subr.bf16.mxu1 %v7719_v29 }
0x2f59   : > { %6935 = vmatpush3.bf16.msra.mxu0 %v8826_v2 }
0x2f5a   : > { %6911 = vmatpush3.bf16.msra.mxu1 %v8800_v3  ;;  %6936 = vmatprep.subr.bf16.mxu0 %v7719_v29 }
0x2f5b   : > { %6912 = vmatprep.subr.bf16.mxu1 %v7719_v29 }
0x2f5d   : > { %6938 = vmatpush3.bf16.msra.mxu0 %v8850_v8 }
0x2f5e   : > { %6914 = vmatpush3.bf16.msra.mxu1 %v8824_v7  ;;  %6939 = vmatprep.subr.bf16.mxu0 %v7719_v29 }
0x2f5f   : > { %6915 = vmatprep.subr.bf16.mxu1 %v7719_v29 }
0x2f61   : > { %6941 = vmatpush3.bf16.msra.mxu0 %v8866_v10 }
0x2f62   : > { %6917 = vmatpush3.bf16.msra.mxu1 %v8848_v18  ;;  %6966 = vmatprep.subr.bf16.mxu0 %v7719_v29 }
0x2f63   : > { %6942 = vmatprep.subr.bf16.mxu1 %v7719_v29 }
0x2fd7   : > { %v4621_v40 = vpop.f32.mrb[4].mxu0 }
0x2fd8   : > { %v4500_v35 = vpop.f32.mrb[0].mxu1  ;;  %v6377_v49 = vpop.f32.mrb[5].mxu0  ;;  %v4871_v54 = vsel %vm4869_vm5, %v4621_v40, -1e+30 }
0x2fd9   : > { %v6342_v48 = vpop.f32.mrb[1].mxu1  ;;  %v4870_v46 = vsel %vm4869_vm5, %v4500_v35, -1e+30 }
0x2fda   : > { %4874 = vmax.xlane.f32.xlu0 %v4870_v46 }
0x2fde   : > { %4876 = vmax.xlane.f32.xlu0 %v4871_v54 }
0x3017   : > { %v4863_v60 = vpop.f32.mrb[6].mxu0 }
0x3018   : > { %v4742_v59 = vpop.f32.mrb[2].mxu1  ;;  %v6447_v3 = vpop.f32.mrb[7].mxu0  ;;  %v4873_v2 = vsel %vm4869_vm5, %v4863_v60, -1e+30 }
0x3019   : > { %v6412_v63 = vpop.f32.mrb[3].mxu1  ;;  %v4872_v7 = vsel %vm4869_vm5, %v4742_v59, -1e+30 }
0x301a   : > { %4878 = vmax.xlane.f32.xlu1 %v4872_v7 }
0x301e   : > { %4880 = vmax.xlane.f32.xlu1 %v4873_v2 }
0x3067   : > { %v4875_v18 = vpop.xlane.xlu0 %4874 }
0x3068   : > { %v4882_v8 = vsub.f32 %v4870_v46, %v4875_v18  ;;  %v5754_v46 = vld [vmem:[%s9373_s12] ss:$0 sm:$0xff] }
0x306a   : > { %v4886_v10 = vmul.f32 1.442695, %v4882_v8 }
0x306b   : > { %v4877_v11 = vpop.xlane.xlu0 %4876 }
0x306c   : > { %7467 = vpow2.f32 %v4886_v10  ;;  %v4883_v41 = vsub.f32 %v4871_v54, %v4877_v11 }
0x306e   : > { %v4888_v47 = vmul.f32 1.442695, %v4883_v41 }
0x3070   : > { %7469 = vpow2.f32 %v4888_v47  ;;  %v5335_v47 = vld [vmem:[#allocation2] sm:$0xf] (!%p5759_p13) }
0x3071   : > { %5338 = vst.msk [vmem:[#allocation11] sm:$0xf] (!%p5759_p13), %vm5337_vm7, %v5335_v47 }
0x3076   : > { %v7468_v55 = vpop.eup %7467 }
0x3077   : > { %4894 = vadd.xlane.f32.xlu0 %v7468_v55 }
0x307a   : > { %v7470_v56 = vpop.eup %7469 }
0x307b   : > { %4896 = vadd.xlane.f32.xlu1 %v7470_v56 }
0x30a7   : > { %v4879_v61 = vpop.xlane.xlu1 %4878 }
0x30a8   : > { %v4884_v62 = vsub.f32 %v4872_v7, %v4879_v61  ;;  %v5341_v61 = vld [vmem:[#allocation3 + $0x4] sm:$0xf] (!%p5759_p13) }
0x30a9   : > { %5343 = vst.msk [vmem:[#allocation12 + $0x4] sm:$0xf] (!%p5759_p13), %vm5337_vm7, %v5341_v61 }
0x30aa   : > { %v4890_v58 = vmul.f32 1.442695, %v4884_v62 }
0x30ab   : > { %v4881_v57 = vpop.xlane.xlu1 %4880 }
0x30ac   : > { %7471 = vpow2.f32 %v4890_v58  ;;  %v4885_v16 = vsub.f32 %v4873_v2, %v4881_v57 }
0x30ae   : > { %v4892_v53 = vmul.f32 1.442695, %v4885_v16 }
0x30b0   : > { %7473 = vpow2.f32 %v4892_v53 }
0x30b6   : > { %v9121_v1 = vpop.eup %7471 }
0x30b7   : > { %4898 = vadd.xlane.f32.xlu0 %v9121_v1 }
0x30ba   : > { %v9124_v9 = vpop.eup %7473 }
0x30bb   : > { %4900 = vadd.xlane.f32.xlu1 %v9124_v9 }
0x30cc   : > { %5192 = vrot.lane.b32.xlu1 %v8678_v34, %s7722_s16  ;;  %v5206_v34 = vld [vmem:[%s9372_s11] sm:$0xff] }
0x30cd   : > { %5190 = vrot.lane.b32.xlu0 %v8656_v22, %s7722_s16 }
0x30d0   : > { %5194 = vrot.lane.b32.xlu1 %v8687_v38, %s7722_s16  ;;  %v5207_v38 = vld [vmem:[%s9372_s11 + $0x8] sm:$0xff] }
0x30d4   : > { %5196 = vrot.lane.b32.xlu1 %v8702_v36, %s7722_s16  ;;  %v6990_v36 = vpack.c.bf16 %v5207_v38, %v5206_v34 }
0x3104   : > { %v4895_v4 = vpop.xlane.xlu0 %4894 }
0x3105   : > { %7475 = vrcp.f32 %v4895_v4 }
0x3108   : > { %v4897_v14 = vpop.xlane.xlu1 %4896 }
0x3109   : > { %7477 = vrcp.f32 %v4897_v14 }
0x310f   : > { %v7476_v0 = vpop.eup %7475 }
0x3110   : > { %v4906_v31 = vmul.f32 %v7476_v0, %v7468_v55  ;;  %v5336_v55 = vld [vmem:[#allocation2 + $0x4] sm:$0xf] (!%p5759_p13) }
0x3111   : > { %5339 = vst.msk [vmem:[#allocation11 + $0x4] sm:$0xf] (!%p5759_p13), %vm5337_vm7, %v5336_v55 }
0x3112   : > { %6481 = vmatmul.mubr.f32.vlgmr.msra.gmra.mrb[4].mxu1 %v4906_v31  ;;  %5327 = vst [vmem:[%s7899_s19] sm:$0xff] %v4906_v31 }
0x3113   : > { %v7478_v33 = vpop.eup %7477  ;;  %6944 = vmatpush3.bf16.msra.mxu1 %v8893_v24  ;;  %6550 = vmatprep.mubr.msk.f32.mxu1 %vm7720_vm4, %v7721_v30  ;;  %v5208_v24 = vld [vmem:[%s9372_s11 + $0x10] sm:$0xff] }
0x3114   : > { %v4907_v22 = vmul.f32 %v7478_v33, %v7470_v56  ;;  %6945 = vmatprep.subr.bf16.mxu1 %v7719_v29  ;;  %v5340_v56 = vld [vmem:[#allocation3] sm:$0xf] (!%p5759_p13) }
0x3115   : > { %5342 = vst.msk [vmem:[#allocation12] sm:$0xf] (!%p5759_p13), %vm5337_vm7, %v5340_v56 }
0x3116   : > { %6516 = vmatmul.mubr.f32.vlgmr.msra.gmra.mrb[8].mxu0 %v4907_v22  ;;  %5328 = vst [vmem:[%s7899_s19 + $0x8] sm:$0xff] %v4907_v22 }
0x3117   : > { %6947 = vmatpush3.bf16.msra.mxu1 %v8927_v42  ;;  %6968 = vmatpush3.bf16.msra.mxu0 %v8891_v20 }
0x3118   : > { %6948 = vmatprep.subr.bf16.mxu1 %v7719_v29  ;;  %6969 = vmatprep.subr.bf16.mxu0 %v7719_v29 }
0x3119   : > { %6585 = vmatprep.mubr.msk.f32.mxu0 %vm7720_vm4, %v7721_v30 }
0x311b   : > { %6950 = vmatpush3.bf16.msra.mxu1 %v8951_v27  ;;  %6971 = vmatpush3.bf16.msra.mxu0 %v8925_v50  ;;  %v5209_v50 = vld [vmem:[%s9372_s11 + $0x18] sm:$0xff]  ;;  %v5210_v27 = vld [vmem:[%s9372_s11 + $0x20] sm:$0xff] }
0x311c   : > { %6951 = vmatprep.subr.bf16.mxu1 %v7719_v29  ;;  %6972 = vmatprep.subr.bf16.mxu0 %v7719_v29 }
0x311f   : > { %6953 = vmatpush3.bf16.msra.mxu1 %v8975_v15  ;;  %6974 = vmatpush3.bf16.msra.mxu0 %v8949_v52 }
0x3120   : > { %6954 = vmatprep.subr.bf16.mxu1 %v7719_v29  ;;  %6975 = vmatprep.subr.bf16.mxu0 %v7719_v29 }
0x3123   : > { %6956 = vmatpush3.bf16.msra.mxu1 %v8999_v17  ;;  %6977 = vmatpush3.bf16.msra.mxu0 %v8973_v6  ;;  %v5211_v6 = vld [vmem:[%s9372_s11 + $0x28] sm:$0xff] }
0x3124   : > { %6957 = vmatprep.subr.bf16.mxu1 %v7719_v29  ;;  %6978 = vmatprep.subr.bf16.mxu0 %v7719_v29  ;;  %v6998_v17 = vpack.c.bf16 %v5211_v6, %v5210_v27 }
0x3127   : > { %6959 = vmatpush3.bf16.msra.mxu1 %v9023_v12  ;;  %6980 = vmatpush3.bf16.msra.mxu0 %v8997_v5  ;;  %v5213_v12 = vld [vmem:[%s9372_s11 + $0x38] sm:$0xff] }
0x3128   : > { %6960 = vmatprep.subr.bf16.mxu1 %v7719_v29  ;;  %6981 = vmatprep.subr.bf16.mxu0 %v7719_v29 }
0x312b   : > { %6962 = vmatpush3.bf16.msra.mxu1 %v9047_v25  ;;  %6983 = vmatpush3.bf16.msra.mxu0 %v9021_v13  ;;  %v5212_v13 = vld [vmem:[%s9372_s11 + $0x30] sm:$0xff] }
0x312c   : > { %6963 = vmatprep.subr.bf16.mxu1 %v7719_v29  ;;  %6984 = vmatprep.subr.bf16.mxu0 %v7719_v29  ;;  %v7002_v19 = vpack.c.bf16 %v5213_v12, %v5212_v13 }
0x312f   : > { %6965 = vmatpush3.bf16.msra.mxu1 %v9071_v51  ;;  %6986 = vmatpush3.bf16.msra.mxu0 %v9045_v28 }
0x3130   : > { %6987 = vmatprep.subr.bf16.mxu0 %v7719_v29  ;;  %6991 = vmatprep.subr.bf16.mxu1 %v6990_v36  ;;  %v6994_v29 = vpack.c.bf16 %v5209_v50, %v5208_v24 }
0x3133   : > { %6989 = vmatpush3.bf16.msra.mxu0 %v9069_v45 }
0x3144   : > { %v4899_v30 = vpop.xlane.xlu0 %4898 }
0x3145   : > { %7479 = vrcp.f32 %v4899_v30 }
0x3148   : > { %v4901_v20 = vpop.xlane.xlu1 %4900  ;;  %v5191_v21 = vpop.permute.xlu0 %5190 }
0x3149   : > { %7481 = vrcp.f32 %v4901_v20 }
0x314c   : > { %v5193_v26 = vpop.permute.xlu1 %5192 }
0x314f   : > { %v7480_v42 = vpop.eup %7479 }
0x3150   : > { %v4908_v52 = vmul.f32 %v7480_v42, %v9121_v1  ;;  %v5195_v45 = vpop.permute.xlu1 %5194 }
0x3152   : > { %6551 = vmatmul.mubr.f32.vlgmr.msra.gmra.mrb[6].mxu1 %v4908_v52  ;;  %5329 = vst [vmem:[%s7899_s19 + $0x10] sm:$0xff] %v4908_v52 }
0x3153   : > { %v7482_v15 = vpop.eup %7481  ;;  %6993 = vmatpush3.bf16.msra.mxu1 %v6990_v36 }
0x3154   : > { %v4909_v5 = vmul.f32 %v7482_v15, %v9124_v9  ;;  %6995 = vmatprep.subr.bf16.mxu1 %v6994_v29  ;;  %v5197_v40 = vpop.permute.xlu1 %5196 }
0x3156   : > { %6586 = vmatmul.mubr.f32.vlgmr.msra.gmra.mrb[10].mxu0 %v4909_v5  ;;  %5330 = vst [vmem:[%s7899_s19 + $0x18] sm:$0xff] %v4909_v5 }
0x3157   : > { %6997 = vmatpush3.bf16.msra.mxu1 %v6994_v29 }
0x3158   : > { %6999 = vmatprep.subr.bf16.mxu1 %v6998_v17 }
0x315b   : > { %7001 = vmatpush3.bf16.msra.mxu1 %v6998_v17 }
0x315c   : > { %7003 = vmatprep.subr.bf16.mxu1 %v7002_v19 }
0x315f   : > { %7005 = vmatpush3.bf16.msra.mxu1 %v7002_v19 }
0x31e5   : > { %v4976_v23 = vpop.f32.mrb[4].mxu1 }
0x31e6   : > { %v5202_v28 = vsel %vm4221_vm2, %v4976_v23, %v5191_v21  ;;  %v6482_v25 = vpop.f32.mrb[5].mxu1 }
0x31e7   : > { %6604 = vmatprep.mubr.msk.f32.mxu1 %vm5221_vm6, %v5202_v28 }
0x31e9   : > { %v5046_v39 = vpop.f32.mrb[8].mxu0 }
0x31ea   : > { %v5203_v43 = vsel %vm4221_vm2, %v5046_v39, %v5193_v26  ;;  %v6517_v44 = vpop.f32.mrb[9].mxu0 }
0x31eb   : > { %6605 = vmatmul.mubr.msk.f32.vlgmr.msra.gmra.mrb[8].mxu1 %vm5221_vm6, %v5203_v43 }
0x3225   : > { %v5116_v51 = vpop.f32.mrb[6].mxu1 }
0x3226   : > { %v5204_v32 = vsel %vm4221_vm2, %v5116_v51, %v5195_v45  ;;  %v6552_v37 = vpop.f32.mrb[7].mxu1 }
0x3227   : > { %6607 = vmatprep.mubr.msk.f32.mxu1 %vm5221_vm6, %v5204_v32 }
0x3229   : > { %v5186_v35 = vpop.f32.mrb[10].mxu0 }
0x322a   : > { %v5205_v49 = vsel %vm4221_vm2, %v5186_v35, %v5197_v40  ;;  %v6587_v48 = vpop.f32.mrb[11].mxu0 }
0x322b   : > { %6608 = vmatmul.mubr.msk.f32.gmra.mrb[10].mxu1 %vm5221_vm6, %v5205_v49 }
0x32be   : > { %v6606_v54 = vpop.f32.mrb[8].mxu1 }
0x32bf   : > { %v5306_v60 = vadd.f32 %v6606_v54, %v5754_v46  ;;  %v5300_v59 = vpop.f32.mrb[9].mxu1 }
0x32c0   : > { %v5301_v3 = vadd.f32 %v5754_v46, %v5300_v59 }
0x32c1   : > { %7483 = vtanh.f32 %v5306_v60 }
0x32c2   : > { %7485 = vtanh.f32 %v5301_v3 }
0x32cb   : > { %v7484_v63 = vpop.eup %7483 }
0x32cc   : > { %v7486_v7 = vpop.eup %7485  ;;  %5324 = vst [vmem:[%s7897_s29 + $0x8] sm:$0xff] %v7484_v63 }
0x32cd   : > { %5323 = vst [vmem:[%s7897_s29] sm:$0xff] %v7486_v7 }
0x32fe   : > { %v6609_v2 = vpop.f32.mrb[10].mxu1 }
0x32ff   : > { %v5316_v18 = vadd.f32 %v6609_v2, %v5754_v46  ;;  %v5310_v8 = vpop.f32.mrb[11].mxu1 }
0x3300   : > { %v5311_v10 = vadd.f32 %v5754_v46, %v5310_v8 }
0x3301   : > { %7487 = vtanh.f32 %v5316_v18 }
0x3302   : > { %7489 = vtanh.f32 %v5311_v10 }
0x3307   : > { %5334 = sbr.rel (%p5759_p13) target bundleno = 13070 (0x330e), region = 150 }
0x330b   : > { %v7488_v11 = vpop.eup %7487 }
0x330c   : > { %v7490_v41 = vpop.eup %7489  ;;  %5326 = vst [vmem:[%s7897_s29 + $0x18] sm:$0xff] %v7488_v11 }
0x330d   : > { %5325 = vst [vmem:[%s7897_s29 + $0x10] sm:$0xff] %v7490_v41 }
0x330e PF: > { %s9413_s25 = sadd.s32 4294967295, %s7661_s26   ;;  %s9390_s20 = sshll.u32 %s7653_s24, 7 }
0x330f   : > { %s9213_s0 = sand.u32 1, %s9413_s25   ;;  %s9221_s27 = scalar_lea.hbm %s9375_s14, %s9390_s20 }
0x3310   : > { %s5383_s18 = sshll.u32 %s7899_s19, 4  ;;  %s5350_s30 = scalar_lea.sflag [#allocation10], %s9213_s0  ;;  %s9224_s18 = int_to_ptr.vmem [resolvable:$true] %s5383_s18 }
0x3311   : > { %s7491_s28 = scalar_lea.vmem %s9224_s18, 512  ;;  %s7723_s23 = smov [#allocation9]  }
0x3312   : > { %p7492_p0 = scmp.ne.s32.totalorder %s9224_s18, %s7491_s28  ;;  %s7495_s15 = sshll.u32 %s7723_s23, 4  ;;  %s7496_s15 = int_to_ptr.vmem [resolvable:$false] %s7495_s15 }
0x3313   : > { %s7497_s25 = scalar_lea.vmem %s7496_s15, 1024  ;;  %p7498_p4 = scmp.lt.s32.totalorder %s9224_s18, %s7496_s15 }
0x3314   : > { %p7493_p1 = pnand %p7492_p0, %p7864_p5  ;;  %p7499_p6 = scmp.lt.s32.totalorder %s7497_s25, %s7491_s28 }
0x3316   : > { %p7494_p2 = pneg %p7493_p1  ;;  %p7500_p7 = por %p7499_p6, %p7498_p4 }
0x3318   : > { %p7501_p8 = pnand %p7500_p7, %p7494_p2 }
0x331a   : > { %7504 = shalt.err (!%p7501_p8)
}
0x331b   : > { %s7505_s19 = scalar_lea.hbm %s9221_s27, 512  ;;  %s7509_s23 = scalar_lea.hbm %s9375_s14, 1024 }
0x331c   : > { %p7506_p11 = scmp.ne.s32.totalorder %s9221_s27, %s7505_s19  ;;  %p7510_p0 = scmp.lt.u32.totalorder %s9221_s27, %s9375_s14 }
0x331d   : > { %p7511_p1 = scmp.lt.u32.totalorder %s7509_s23, %s7505_s19  ;;  %p7513_p4 = scmp.lt.u32.totalorder %s7505_s19, %s9221_s27 }
0x331e   : > { %p7507_p12 = pnand %p7506_p11, %p7864_p5 }
0x331f   : > { %p7512_p2 = por %p7511_p1, %p7510_p0 }
0x3320   : > { %p7508_p13 = pneg %p7507_p12 }
0x3321   : > { %p7514_p6 = por %p7513_p4, %p7512_p2 }
0x3323   : > { %p7515_p7 = pnand %p7514_p6, %p7508_p13 }
0x3325   : > { %7518 = shalt.err (!%p7515_p7)
}
0x3326   : > { %s7724_s28 = smov 128   ;;  %s7725_s25 = smov 256  }
0x3327   : > { %s7726_s16 = smov 8   ;;  %s9414_s20 = sshll.u32 %s7653_s24, 7 }
0x3328   : > { %7009 = dma.vmem_to_hbm [thread:$0]  (%p7864_p5), %s9224_s18, 512, %s9221_s27, %s5350_s30, %s7724_s28, %s7725_s25, %s7726_s16  }
0x3329   : > { %s9258_s23 = scalar_lea.hbm %s9374_s13, %s9414_s20  ;;  %s5365_s15 = sshll.u32 %s7897_s29, 4  ;;  %s9261_s15 = int_to_ptr.vmem [resolvable:$true] %s5365_s15 }
0x332a   : > { %s9415_s1 = sand.u32 1, %s7645_s22   ;;  %s7519_s3 = scalar_lea.vmem %s9261_s15, 512 }
0x332b   : > { %s9265_s2 = scalar_lea.sflag [#allocation8], %s9415_s1  ;;  %p7520_p8 = scmp.ne.s32.totalorder %s9261_s15, %s7519_s3 }
0x332c   : > { %s7727_s24 = smov [#allocation7]  }
0x332d   : > { %p7521_p11 = pnand %p7520_p8, %p7864_p5  ;;  %s7523_s0 = sshll.u32 %s7727_s24, 4  ;;  %s7524_s0 = int_to_ptr.vmem [resolvable:$false] %s7523_s0 }
0x332e   : > { %s7525_s27 = scalar_lea.vmem %s7524_s0, 1024  ;;  %p7526_p13 = scmp.lt.s32.totalorder %s9261_s15, %s7524_s0 }
0x332f   : > { %p7522_p12 = pneg %p7521_p11  ;;  %p7527_p0 = scmp.lt.s32.totalorder %s7525_s27, %s7519_s3 }
0x3331   : > { %p7528_p1 = por %p7527_p0, %p7526_p13 }
0x3333   : > { %p7529_p2 = pnand %p7528_p1, %p7522_p12 }
0x3335   : > { %7532 = shalt.err (!%p7529_p2)
}
0x3336   : > { %s7533_s1 = scalar_lea.hbm %s9258_s23, 512  ;;  %s7537_s30 = scalar_lea.hbm %s9374_s13, 1024 }
0x3337   : > { %p7534_p4 = scmp.ne.s32.totalorder %s9258_s23, %s7533_s1  ;;  %p7538_p8 = scmp.lt.u32.totalorder %s9258_s23, %s9374_s13 }
0x3338   : > { %p7539_p11 = scmp.lt.u32.totalorder %s7537_s30, %s7533_s1  ;;  %p7541_p13 = scmp.lt.u32.totalorder %s7533_s1, %s9258_s23 }
0x3339   : > { %p7535_p6 = pnand %p7534_p4, %p7864_p5 }
0x333a   : > { %p7540_p12 = por %p7539_p11, %p7538_p8 }
0x333b   : > { %p7536_p7 = pneg %p7535_p6 }
0x333c   : > { %p7542_p0 = por %p7541_p13, %p7540_p12 }
0x333e   : > { %p7543_p1 = pnand %p7542_p0, %p7536_p7 }
0x3340   : > { %7546 = shalt.err (!%p7543_p1)
}
0x3341   : > { %7008 = dma.vmem_to_hbm [thread:$0]  (%p7864_p5), %s9261_s15, 512, %s9258_s23, %s9265_s2, %s7724_s28, %s7725_s25, %s7726_s16  }
0x3342   : > { %s7728_s21 = smov [#allocation11]  }
0x3343   : > { %s5398_s24 = sshll.u32 %s7728_s21, 4  ;;  %s5399_s24 = int_to_ptr.vmem [resolvable:$true] %s5398_s24 }
0x3344   : > { %s7547_s0 = scalar_lea.vmem %s5399_s24, 128  ;;  %p7554_p7 = scmp.lt.s32.totalorder %s5399_s24, %s5399_s24 }
0x3345   : > { %p7548_p2 = scmp.ne.s32.totalorder %s5399_s24, %s7547_s0  ;;  %p7555_p8 = scmp.lt.s32.totalorder %s7547_s0, %s7547_s0 }
0x3347   : > { %p7549_p4 = pnand %p7548_p2, %p7856_p3  ;;  %p7556_p11 = por %p7555_p8, %p7554_p7 }
0x3349   : > { %p7550_p6 = pneg %p7549_p4 }
0x334b   : > { %p7557_p12 = pnand %p7556_p11, %p7550_p6 }
0x334d   : > { %7560 = shalt.err (!%p7557_p12)
}
0x334e   : > { %s9417_s1 = sld [smem:[#allocation29_spill]] }
0x3354   : > { %s7561_s29 = scalar_lea.hbm %s9417_s1, 128 }
0x3355   : > { %p7562_p5 = scmp.ne.s32.totalorder %s9417_s1, %s7561_s29  ;;  %p7567_p1 = scmp.lt.u32.totalorder %s7561_s29, %s9417_s1 }
0x3357   : > { %p7563_p13 = pnand %p7562_p5, %p7856_p3 }
0x3359   : > { %p7564_p0 = pneg %p7563_p13 }
0x335b   : > { %p7569_p2 = pnand %p7567_p1, %p7564_p0 }
0x335d   : > { %7572 = shalt.err (!%p7569_p2)
}
0x335e   : > { %s7729_s16 = smov 64   ;;  %s7730_s23 = smov 4  }
0x335f   : > { %7011 = dma.vmem_to_hbm [thread:$0]  (%p7856_p3), %s5399_s24, 128, %s9417_s1, [#allocation10], %s7729_s16, %s7729_s16, %s7730_s23  }
0x3360   : > { %s7731_s20 = smov [#allocation12]  }
0x3361   : > { %s5413_s19 = sshll.u32 %s7731_s20, 4  ;;  %s5414_s19 = int_to_ptr.vmem [resolvable:$true] %s5413_s19 }
0x3362   : > { %s7573_s21 = scalar_lea.vmem %s5414_s19, 128  ;;  %p7580_p8 = scmp.lt.s32.totalorder %s5414_s19, %s5414_s19 }
0x3363   : > { %p7574_p4 = scmp.ne.s32.totalorder %s5414_s19, %s7573_s21  ;;  %p7581_p11 = scmp.lt.s32.totalorder %s7573_s21, %s7573_s21 }
0x3365   : > { %p7575_p6 = pnand %p7574_p4, %p7856_p3  ;;  %p7582_p12 = por %p7581_p11, %p7580_p8 }
0x3367   : > { %p7576_p7 = pneg %p7575_p6 }
0x3369   : > { %p7583_p5 = pnand %p7582_p12, %p7576_p7 }
0x336b   : > { %7586 = shalt.err (!%p7583_p5)
}
0x336c   : > { %s9418_s27 = sld [smem:[#allocation30_spill]] }
0x3372   : > { %s7587_s29 = scalar_lea.hbm %s9418_s27, 128 }
0x3373   : > { %p7588_p13 = scmp.ne.s32.totalorder %s9418_s27, %s7587_s29  ;;  %p7593_p2 = scmp.lt.u32.totalorder %s7587_s29, %s9418_s27 }
0x3375   : > { %p7589_p0 = pnand %p7588_p13, %p7856_p3 }
0x3377   : > { %p7590_p1 = pneg %p7589_p0 }
0x3379   : > { %p7595_p4 = pnand %p7593_p2, %p7590_p1 }
0x337b   : > { %7598 = shalt.err (!%p7595_p4)
}
0x337c   : > { %7013 = dma.vmem_to_hbm [thread:$0]  (%p7856_p3), %s5414_s19, 128, %s9418_s27, [#allocation13], %s7729_s16, %s7729_s16, %s7730_s23  }
0x337d   : > { %7624 = dma.done.wait (%p7856_p3), [#allocation10], 128  }
0x337e   : > { %7626 = vsyncadd (%p7856_p3), [#allocation10], 4294967168 }
0x337f   : > { %7628 = dma.done.wait (%p7856_p3), [#allocation13], 128  }
0x3380   : > { %7630 = vsyncadd (%p7856_p3), [#allocation13], 4294967168 }
0x3381 PF: > { %s9419_s30 = sld [smem:[#allocation18_spill]]  ;;  %p7021_p6 = pnand %p5603_p10, %p7877_p9 }
0x3387   : > { %s5436_s21 = sand.u32 1, %s9419_s30  }
0x3388   : > { %s5437_s16 = scalar_lea.sflag [#allocation8], %s5436_s21 }
0x3389   : > { %7632 = dma.done.wait (!%p7021_p6), %s5437_s16, 512  }
0x338a   : > { %7634 = vsyncadd (!%p7021_p6), %s5437_s16, 4294966784  ;;  %s9421_s23 = sadd.s32 4294967294, %s7661_s26  }
0x338b   : > { %s5445_s19 = sand.u32 1, %s9421_s23  }
0x338c   : > { %s5446_s0 = scalar_lea.sflag [#allocation10], %s5445_s19 }
0x338d   : > { %7636 = dma.done.wait (!%p7021_p6), %s5446_s0, 512  }
0x338e   : > { %7638 = vsyncadd (!%p7021_p6), %s5446_s0, 4294966784  ;;  %s34_s26 = sadd.s32 1, %s7661_s26   ;;  %s9422_s3 = sld [smem:[#allocation19_spill]] }
0x338f   : > { %p31_p3 = scmp.ge.s32.totalorder %s34_s26, 4   ;;  %s9423_s23 = sld [smem:[#allocation23_spill]] }
0x3390   : > { %s9424_s24 = sld [smem:[#allocation20_spill]]  ;;  %s9425_s25 = sld [smem:[#allocation22_spill]] }
0x3391   : > { %s9426_s21 = smov %s7645_s22  ;;  %33 = sbr.rel (!%p31_p3) target bundleno = 14 (0xe), region = 250 }
0x3394   : > { %s9427_s22 = smov %s9422_s3 }
0x3398   :  { %5451 = vsyncpa [#allocation8], 1 }
0x3399   :  { %5453 = vsyncpa [#allocation8 + $0x1], 1 }
0x339a   :  { %5454 = vsyncpa [#allocation10], 1 }
0x339b   :  { %5456 = vsyncpa [#allocation10 + $0x1], 1 }
0x339c   :  { %5457 = vsyncpa [#allocation13], 1 }

</bundles_post_ra>
